<compile_context>
chip_gen: v7x
topology: tpu7x:2x2x1
jax: 0.10.0
libtpu: 0.0.40
codegen_flags: <defaults>
</compile_context>

<pallas_src>
import jax
import jax.numpy as jnp
from jax import lax
from jax.experimental import pallas as pl
from jax.experimental.pallas import tpu as pltpu


# --------------------------------- fused kernel --------------------------------- #

def _net_kernel(x_ref, sel1_ref, sel2_ref,
                c1w_ref, c1b_ref, c2w_ref, c2b_ref,
                f1w_ref, f1b_ref, f2w_ref, f2b_ref, f3w_ref, f3b_ref,
                o_ref):
    f32, bf16 = jnp.float32, jnp.bfloat16
    r1 = x_ref.shape[0]          # B*32 stacked input rows (32 rows per image)
    b = r1 // 32                 # images handled by this grid step
    r2 = 16 * b                  # rows of p1 (16 per image: 15 valid + 1 zero pad)

    x = x_ref[...]               # (B*32, 32) f32

    # conv1 + bias + ReLU: banded MXU matmuls over the 3 kernel rows.  Output lane
    # layout co*30 + j (all 6 channels side by side).  Rows 30/31 of each image are
    # cross-image garbage and are never selected downstream.
    a1 = c1b_ref[...]                                            # (1, 180) f32
    for kh in range(3):
        a1 = a1 + jnp.dot(x[kh:kh + r1 - 2, :].astype(bf16), c1w_ref[kh],
                          preferred_element_type=f32)            # (B*32-2, 180)
    a1 = jnp.maximum(a1, 0.0)

    # pool1 (2x2, stride 2): row-pair + column-pair max in f32; stride-2 row pick is
    # the precomputed 0/1 select matmul sel1; the stride-2 column pick is folded into
    # the conv2 band weights (odd columns multiply exact zeros).
    m1 = jnp.maximum(a1[:-1, :], a1[1:, :])                      # (B*32-3, 180)
    m1 = jnp.maximum(m1[:, :-1], m1[:, 1:])                      # (B*32-3, 179)
    p1 = jnp.dot(sel1_ref[...], m1.astype(bf16),
                 preferred_element_type=f32)                     # (B*16, 179)

    # conv2 + bias + ReLU (same banded scheme); lane layout co*13 + j.
    a2 = c2b_ref[...]                                            # (1, 208) f32
    for kh in range(3):
        a2 = a2 + jnp.dot(p1[kh:kh + r2 - 2, :].astype(bf16), c2w_ref[kh],
                          preferred_element_type=f32)            # (B*16-2, 208)
    a2 = jnp.maximum(a2, 0.0)

    # pool2 (2x2, stride 2, floor): same trick.  sel2 also regroups rows so that
    # image b / pooled-row s2 lands at row s2*B + b -> fc1 gets 8-aligned M=B blocks.
    m2 = jnp.maximum(a2[:-1, :], a2[1:, :])                      # (B*16-3, 208)
    m2 = jnp.maximum(m2[:, :-1], m2[:, 1:])                      # (B*16-3, 207)
    p2 = jnp.dot(sel2_ref[...], m2.astype(bf16),
                 preferred_element_type=f32)                     # (6*B, 207)

    # fc1: torch's NCHW .view(-1, 576) flatten and the pool-2 column pick are folded
    # into f1w (6, 207, 120); six M=B matmuls over aligned row blocks of p2.
    h = f1b_ref[...]                                             # (1, 120) f32
    for s2 in range(6):
        h = h + jnp.dot(p2[s2 * b:(s2 + 1) * b, :].astype(bf16), f1w_ref[s2],
                        preferred_element_type=f32)              # (B, 120)
    h = jnp.maximum(h, 0.0)

    # fc2 + ReLU, fc3 (padded to 128 output lanes -> dense, unmasked (B,128) store).
    h = jnp.maximum(jnp.dot(h.astype(bf16), f2w_ref[...],
                            preferred_element_type=f32) + f2b_ref[...], 0.0)
    o_ref[...] = jnp.dot(h.astype(bf16), f3w_ref[...],
                         preferred_element_type=f32) + f3b_ref[...]


# --------------------------- one-time parameter repack --------------------------- #

def prepare_params(params, *, block_b=8):
    """Repack PyTorch-layout parameters into MXU-friendly bf16 operands (done once).

    block_b = images per grid step; raise it (e.g. 16/32) for large batches on
    v6e/v7x to fill 256 MXU rows.  The pool select matrices are sized for block_b.
    """
    f32, bf16 = jnp.float32, jnp.bfloat16
    B = block_b
    w1, b1 = params["conv1_w"], params["conv1_b"]        # (6,1,3,3), (6,)
    w2, b2 = params["conv2_w"], params["conv2_b"]        # (16,6,3,3), (16,)
    fw1, fb1 = params["fc1_w"], params["fc1_b"]          # (120,576), (120,)
    fw2, fb2 = params["fc2_w"], params["fc2_b"]          # (84,120), (84,)
    fw3, fb3 = params["fc3_w"], params["fc3_b"]          # (10,84), (10,)

    # conv1 band: c1w[kh, p, co*30 + j] = w1[co, 0, kh, p - j] for 0 <= p-j < 3.
    p = jnp.arange(32)[:, None]
    j = jnp.arange(30)[None, :]
    d = p - j
    msk = (d >= 0) & (d < 3)
    band1 = w1[:, 0][:, :, jnp.clip(d, 0, 2)] * msk                  # (6,3,32,30)
    c1w = jnp.transpose(band1, (1, 2, 0, 3)).reshape(3, 32, 180)
    c1b = jnp.repeat(b1, 30)[None, :].astype(f32)                    # (1, 180)

    # conv2 band with the pool-1 stride-2 column pick folded in (odd q -> zero):
    #   c2w[kh, ci*30 + q, co*13 + j] = w2[co, ci, kh, q//2 - j]  (q even, 0<=q//2-j<3)
    q = jnp.arange(30)[:, None]
    j = jnp.arange(13)[None, :]
    kw = q // 2 - j
    msk = (q % 2 == 0) & (kw >= 0) & (kw < 3)
    band2 = w2[:, :, :, jnp.clip(kw, 0, 2)] * msk                    # (16,6,3,30,13)
    c2w = jnp.transpose(band2, (2, 1, 3, 0, 4)).reshape(3, 180, 208)[:, :179, :]
    # The fused pooling relies on the masked band positions being exactly zero.
    assert bool(jnp.all(c2w[:, 1::2, :] == 0.0))
    c2b = jnp.repeat(b2, 13)[None, :].astype(f32)                    # (1, 208)

    # fc1 with torch's NCHW flatten and the pool-2 column pick folded in:
    #   f1w[s2, c*13 + 2t, o] = fc1_w[o, c*36 + s2*6 + t]
    vals = jnp.transpose(fw1.reshape(120, 16, 6, 6), (2, 1, 3, 0))   # (6,16,6,120)
    f1w = jnp.zeros((6, 16, 13, 120), f32).at[:, :, 0:12:2, :].set(vals)
    f1w = f1w.reshape(6, 208, 120)[:, :207, :]

    # fc3 padded to 128 output lanes (dense, unmasked output stores).
    f3w = jnp.zeros((84, 128), f32).at[:, :10].set(fw3.T)
    f3b = jnp.zeros((1, 128), f32).at[:, :10].set(fb3[None, :])

    # 0/1 pool row-select matrices for B images per grid step.
    #   sel1[16b + s,  32b + 2s ] = 1 for s  < 15   (rows s = 15 are zero padding)
    #   sel2[s2*B + b, 16b + 2s2] = 1 for s2 < 6    (also regroups rows for fc1)
    r = jnp.arange(16 * B)
    col = 32 * (r // 16) + 2 * (r % 16)
    sel1 = ((jnp.arange(32 * B - 3)[None, :] == col[:, None])
            & ((r % 16) < 15)[:, None])
    r = jnp.arange(6 * B)
    col = 16 * (r % B) + 2 * (r // B)
    sel2 = jnp.arange(16 * B - 3)[None, :] == col[:, None]

    return dict(
        sel1=sel1.astype(bf16), sel2=sel2.astype(bf16),
        c1w=c1w.astype(bf16), c1b=c1b,
        c2w=c2w.astype(bf16), c2b=c2b,
        f1w=f1w.astype(bf16), f1b=fb1[None, :].astype(f32),
        f2w=fw2.T.astype(bf16), f2b=fb2[None, :].astype(f32),
        f3w=f3w.astype(bf16), f3b=f3b,
    )


# ------------------------------------ forward ------------------------------------ #

def _const_spec(a):
    nd = a.ndim

    def imap(i):
        return (0,) * nd

    return pl.BlockSpec(a.shape, imap)


def net_forward(ops, x):
    n = x.shape[0]
    b = ops["sel2"].shape[0] // 6            # images per grid step (from prepare_params)
    steps = pl.cdiv(n, b)
    n_pad = steps * b

    x2 = x.reshape(n, 32, 32).astype(jnp.float32)
    if n_pad != n:                           # pad batch to a multiple of block_b
        x2 = jnp.concatenate(
            [x2, jnp.zeros((n_pad - n, 32, 32), jnp.float32)], axis=0)
    x2 = x2.reshape(n_pad * 32, 32)          # images stacked along the row axis

    names = ["sel1", "sel2", "c1w", "c1b", "c2w", "c2b",
             "f1w", "f1b", "f2w", "f2b", "f3w", "f3b"]

    out = pl.pallas_call(
        _net_kernel,
        out_shape=jax.ShapeDtypeStruct((n_pad, 128), jnp.float32),
        grid=(steps,),
        in_specs=[pl.BlockSpec((b * 32, 32), lambda i: (i, 0))]      # B images / step
                 + [_const_spec(ops[k]) for k in names],             # resident weights
        out_specs=pl.BlockSpec((b, 128), lambda i: (i, 0)),          # lane-dense out
        compiler_params=pltpu.CompilerParams(
            dimension_semantics=("parallel",)),
    )(x2, *[ops[k] for k in names])
    return out[:n, :10]


# ------------------------ pure-JAX reference (for checking) ----------------------- #

def net_reference(params, x):
    hi = lax.Precision.HIGHEST
    dn = ("NCHW", "OIHW", "NCHW")
    y = lax.conv_general_dilated(x, params["conv1_w"], (1, 1), "VALID",
                                 dimension_numbers=dn, precision=hi)
    y = jnp.maximum(y + params["conv1_b"][None, :, None, None], 0.0)
    y = lax.reduce_window(y, -jnp.inf, lax.max, (1, 1, 2, 2), (1, 1, 2, 2), "VALID")
    y = lax.conv_general_dilated(y, params["conv2_w"], (1, 1), "VALID",
                                 dimension_numbers=dn, precision=hi)
    y = jnp.maximum(y + params["conv2_b"][None, :, None, None], 0.0)
    y = lax.reduce_window(y, -jnp.inf, lax.max, (1, 1, 2, 2), (1, 1, 2, 2), "VALID")
    f = y.reshape(y.shape[0], -1)
    h = jnp.maximum(jnp.dot(f, params["fc1_w"].T, precision=hi) + params["fc1_b"], 0.0)
    h = jnp.maximum(jnp.dot(h, params["fc2_w"].T, precision=hi) + params["fc2_b"], 0.0)
    return jnp.dot(h, params["fc3_w"].T, precision=hi) + params["fc3_b"]


def init_params(key):
    ks = jax.random.split(key, 10)

    def u(k, shape, fan_in):  # PyTorch-style uniform(-1/sqrt(fan_in), 1/sqrt(fan_in))
        bound = 1.0 / (fan_in ** 0.5)
        return jax.random.uniform(k, shape, jnp.float32, -bound, bound)

    return {
        "conv1_w": u(ks[0], (6, 1, 3, 3), 1 * 9),
        "conv1_b": u(ks[1], (6,), 1 * 9),
        "conv2_w": u(ks[2], (16, 6, 3, 3), 6 * 9),
        "conv2_b": u(ks[3], (16,), 6 * 9),
        "fc1_w":   u(ks[4], (120, 576), 576),
        "fc1_b":   u(ks[5], (120,), 576),
        "fc2_w":   u(ks[6], (84, 120), 120),
        "fc2_b":   u(ks[7], (84,), 120),
        "fc3_w":   u(ks[8], (10, 84), 84),
        "fc3_b":   u(ks[9], (10,), 84),
    }


if __name__ == "__main__":
    key = jax.random.PRNGKey(0)
    pkey, xkey = jax.random.split(key)
    params = init_params(pkey)
    # 8 images per grid step -> conv1 M=254, conv2 M=126; with n=16 the grid has 2
    # steps so both v7x TensorCores stay busy.  Use block_b=16/32 for large batches.
    ops = prepare_params(params, block_b=8)

    n = 16
    # fc1 expects 16*6*6 = 576 features => input must be (N, 1, 32, 32).
    x = jax.random.normal(xkey, (n, 1, 32, 32), jnp.float32)

    out = jax.jit(net_forward)(ops, x)
    out = jax.block_until_ready(out)
    assert out.shape == (n, 10) and out.dtype == jnp.float32

    ref = net_reference(params, x)
    err = float(jnp.max(jnp.abs(out - ref)))
    assert err < 2e-2, f"kernel/reference mismatch: max abs err = {err}"
    print("KERNEL_OK")
</pallas_src>

<mosaic_0001>
module attributes {stable_mosaic.version = 11 : i64} {
  func.func @_net_kernel(%arg0: i32, %arg1: memref<256x32xf32, #tpu.memory_space<vmem>>, %arg2: memref<128x253xbf16, #tpu.memory_space<vmem>>, %arg3: memref<48x125xbf16, #tpu.memory_space<vmem>>, %arg4: memref<3x32x180xbf16, #tpu.memory_space<vmem>>, %arg5: memref<1x180xf32, #tpu.memory_space<vmem>>, %arg6: memref<3x179x208xbf16, #tpu.memory_space<vmem>>, %arg7: memref<1x208xf32, #tpu.memory_space<vmem>>, %arg8: memref<6x207x120xbf16, #tpu.memory_space<vmem>>, %arg9: memref<1x120xf32, #tpu.memory_space<vmem>>, %arg10: memref<120x84xbf16, #tpu.memory_space<vmem>>, %arg11: memref<1x84xf32, #tpu.memory_space<vmem>>, %arg12: memref<84x128xbf16, #tpu.memory_space<vmem>>, %arg13: memref<1x128xf32, #tpu.memory_space<vmem>>, %arg14: memref<8x128xf32, #tpu.memory_space<vmem>>) attributes {dimension_semantics = [#tpu.dimension_semantics<parallel>], iteration_bounds = array<i64: 2>, scalar_prefetch = 0 : i64, scratch_operands = 0 : i64, tpu.core_type = #tpu.core_type<tc>, window_params = [{transform_indices = @transform_0, window_bounds = array<i64: 256, 32>}, {pipeline_mode = #tpu.pipeline_mode<synchronous>, transform_indices = @transform_1, window_bounds = array<i64: 128, 253>}, {pipeline_mode = #tpu.pipeline_mode<synchronous>, transform_indices = @transform_2, window_bounds = array<i64: 48, 125>}, {pipeline_mode = #tpu.pipeline_mode<synchronous>, transform_indices = @transform_3, window_bounds = array<i64: 3, 32, 180>}, {pipeline_mode = #tpu.pipeline_mode<synchronous>, transform_indices = @transform_4, window_bounds = array<i64: 1, 180>}, {pipeline_mode = #tpu.pipeline_mode<synchronous>, transform_indices = @transform_5, window_bounds = array<i64: 3, 179, 208>}, {pipeline_mode = #tpu.pipeline_mode<synchronous>, transform_indices = @transform_6, window_bounds = array<i64: 1, 208>}, {pipeline_mode = #tpu.pipeline_mode<synchronous>, transform_indices = @transform_7, window_bounds = array<i64: 6, 207, 120>}, {pipeline_mode = #tpu.pipeline_mode<synchronous>, transform_indices = @transform_8, window_bounds = array<i64: 1, 120>}, {pipeline_mode = #tpu.pipeline_mode<synchronous>, transform_indices = @transform_9, window_bounds = array<i64: 120, 84>}, {pipeline_mode = #tpu.pipeline_mode<synchronous>, transform_indices = @transform_10, window_bounds = array<i64: 1, 84>}, {pipeline_mode = #tpu.pipeline_mode<synchronous>, transform_indices = @transform_11, window_bounds = array<i64: 84, 128>}, {pipeline_mode = #tpu.pipeline_mode<synchronous>, transform_indices = @transform_12, window_bounds = array<i64: 1, 128>}, {transform_indices = @transform_13, window_bounds = array<i64: 8, 128>}]} {
    %c0 = arith.constant 0 : index
    %c0_0 = arith.constant 0 : index
    %0 = vector.load %arg1[%c0, %c0_0] : memref<256x32xf32, #tpu.memory_space<vmem>>, vector<256x32xf32>
    %c0_1 = arith.constant 0 : index
    %c0_2 = arith.constant 0 : index
    %1 = vector.load %arg5[%c0_1, %c0_2] : memref<1x180xf32, #tpu.memory_space<vmem>>, vector<1x180xf32>
    %2 = vector.extract_strided_slice %0 {offsets = [0, 0], sizes = [254, 32], strides = [1, 1]} : vector<256x32xf32> to vector<254x32xf32>
    %3 = arith.truncf %2 : vector<254x32xf32> to vector<254x32xbf16>
    %c0_3 = arith.constant 0 : index
    %c0_4 = arith.constant 0 : index
    %c0_5 = arith.constant 0 : index
    %4 = vector.load %arg4[%c0_3, %c0_4, %c0_5] : memref<3x32x180xbf16, #tpu.memory_space<vmem>>, vector<1x32x180xbf16>
    %5 = vector.shape_cast %4 : vector<1x32x180xbf16> to vector<32x180xbf16>
    %cst = arith.constant dense<0.000000e+00> : vector<254x180xf32>
    %6 = tpu.matmul %3, %5, %cst {dimension_numbers = #tpu.dot_dimension_numbers<[1], [0], [0], [1], [0, 0, 1, 1], [], []>} : vector<254x32xbf16>, vector<32x180xbf16>, vector<254x180xf32> -> vector<254x180xf32>
    %7 = vector.broadcast %1 : vector<1x180xf32> to vector<254x180xf32>
    %8 = arith.addf %7, %6 : vector<254x180xf32>
    %9 = vector.extract_strided_slice %0 {offsets = [1, 0], sizes = [254, 32], strides = [1, 1]} : vector<256x32xf32> to vector<254x32xf32>
    %10 = arith.truncf %9 : vector<254x32xf32> to vector<254x32xbf16>
    %c1 = arith.constant 1 : index
    %c0_6 = arith.constant 0 : index
    %c0_7 = arith.constant 0 : index
    %11 = vector.load %arg4[%c1, %c0_6, %c0_7] : memref<3x32x180xbf16, #tpu.memory_space<vmem>>, vector<1x32x180xbf16>
    %12 = vector.shape_cast %11 : vector<1x32x180xbf16> to vector<32x180xbf16>
    %cst_8 = arith.constant dense<0.000000e+00> : vector<254x180xf32>
    %13 = tpu.matmul %10, %12, %cst_8 {dimension_numbers = #tpu.dot_dimension_numbers<[1], [0], [0], [1], [0, 0, 1, 1], [], []>} : vector<254x32xbf16>, vector<32x180xbf16>, vector<254x180xf32> -> vector<254x180xf32>
    %14 = arith.addf %8, %13 : vector<254x180xf32>
    %15 = vector.extract_strided_slice %0 {offsets = [2, 0], sizes = [254, 32], strides = [1, 1]} : vector<256x32xf32> to vector<254x32xf32>
    %16 = arith.truncf %15 : vector<254x32xf32> to vector<254x32xbf16>
    %c2 = arith.constant 2 : index
    %c0_9 = arith.constant 0 : index
    %c0_10 = arith.constant 0 : index
    %17 = vector.load %arg4[%c2, %c0_9, %c0_10] : memref<3x32x180xbf16, #tpu.memory_space<vmem>>, vector<1x32x180xbf16>
    %18 = vector.shape_cast %17 : vector<1x32x180xbf16> to vector<32x180xbf16>
    %cst_11 = arith.constant dense<0.000000e+00> : vector<254x180xf32>
    %19 = tpu.matmul %16, %18, %cst_11 {dimension_numbers = #tpu.dot_dimension_numbers<[1], [0], [0], [1], [0, 0, 1, 1], [], []>} : vector<254x32xbf16>, vector<32x180xbf16>, vector<254x180xf32> -> vector<254x180xf32>
    %20 = arith.addf %14, %19 : vector<254x180xf32>
    %cst_12 = arith.constant 0.000000e+00 : f32
    %21 = vector.broadcast %cst_12 : f32 to vector<254x180xf32>
    %22 = arith.maximumf %20, %21 : vector<254x180xf32>
    %23 = vector.extract_strided_slice %22 {offsets = [0, 0], sizes = [253, 180], strides = [1, 1]} : vector<254x180xf32> to vector<253x180xf32>
    %24 = vector.extract_strided_slice %22 {offsets = [1, 0], sizes = [253, 180], strides = [1, 1]} : vector<254x180xf32> to vector<253x180xf32>
    %25 = arith.maximumf %23, %24 : vector<253x180xf32>
    %26 = vector.extract_strided_slice %25 {offsets = [0, 0], sizes = [253, 179], strides = [1, 1]} : vector<253x180xf32> to vector<253x179xf32>
    %27 = vector.extract_strided_slice %25 {offsets = [0, 1], sizes = [253, 179], strides = [1, 1]} : vector<253x180xf32> to vector<253x179xf32>
    %28 = arith.maximumf %26, %27 : vector<253x179xf32>
    %c0_13 = arith.constant 0 : index
    %c0_14 = arith.constant 0 : index
    %29 = vector.load %arg2[%c0_13, %c0_14] : memref<128x253xbf16, #tpu.memory_space<vmem>>, vector<128x253xbf16>
    %30 = arith.truncf %28 : vector<253x179xf32> to vector<253x179xbf16>
    %cst_15 = arith.constant dense<0.000000e+00> : vector<128x179xf32>
    %31 = tpu.matmul %29, %30, %cst_15 {dimension_numbers = #tpu.dot_dimension_numbers<[1], [0], [0], [1], [0, 0, 1, 1], [], []>} : vector<128x253xbf16>, vector<253x179xbf16>, vector<128x179xf32> -> vector<128x179xf32>
    %c0_16 = arith.constant 0 : index
    %c0_17 = arith.constant 0 : index
    %32 = vector.load %arg7[%c0_16, %c0_17] : memref<1x208xf32, #tpu.memory_space<vmem>>, vector<1x208xf32>
    %33 = vector.extract_strided_slice %31 {offsets = [0, 0], sizes = [126, 179], strides = [1, 1]} : vector<128x179xf32> to vector<126x179xf32>
    %34 = arith.truncf %33 : vector<126x179xf32> to vector<126x179xbf16>
    %c0_18 = arith.constant 0 : index
    %c0_19 = arith.constant 0 : index
    %c0_20 = arith.constant 0 : index
    %35 = vector.load %arg6[%c0_18, %c0_19, %c0_20] : memref<3x179x208xbf16, #tpu.memory_space<vmem>>, vector<1x179x208xbf16>
    %36 = vector.shape_cast %35 : vector<1x179x208xbf16> to vector<179x208xbf16>
    %cst_21 = arith.constant dense<0.000000e+00> : vector<126x208xf32>
    %37 = tpu.matmul %34, %36, %cst_21 {dimension_numbers = #tpu.dot_dimension_numbers<[1], [0], [0], [1], [0, 0, 1, 1], [], []>} : vector<126x179xbf16>, vector<179x208xbf16>, vector<126x208xf32> -> vector<126x208xf32>
    %38 = vector.broadcast %32 : vector<1x208xf32> to vector<126x208xf32>
    %39 = arith.addf %38, %37 : vector<126x208xf32>
    %40 = vector.extract_strided_slice %31 {offsets = [1, 0], sizes = [126, 179], strides = [1, 1]} : vector<128x179xf32> to vector<126x179xf32>
    %41 = arith.truncf %40 : vector<126x179xf32> to vector<126x179xbf16>
    %c1_22 = arith.constant 1 : index
    %c0_23 = arith.constant 0 : index
    %c0_24 = arith.constant 0 : index
    %42 = vector.load %arg6[%c1_22, %c0_23, %c0_24] : memref<3x179x208xbf16, #tpu.memory_space<vmem>>, vector<1x179x208xbf16>
    %43 = vector.shape_cast %42 : vector<1x179x208xbf16> to vector<179x208xbf16>
    %cst_25 = arith.constant dense<0.000000e+00> : vector<126x208xf32>
    %44 = tpu.matmul %41, %43, %cst_25 {dimension_numbers = #tpu.dot_dimension_numbers<[1], [0], [0], [1], [0, 0, 1, 1], [], []>} : vector<126x179xbf16>, vector<179x208xbf16>, vector<126x208xf32> -> vector<126x208xf32>
    %45 = arith.addf %39, %44 : vector<126x208xf32>
    %46 = vector.extract_strided_slice %31 {offsets = [2, 0], sizes = [126, 179], strides = [1, 1]} : vector<128x179xf32> to vector<126x179xf32>
    %47 = arith.truncf %46 : vector<126x179xf32> to vector<126x179xbf16>
    %c2_26 = arith.constant 2 : index
    %c0_27 = arith.constant 0 : index
    %c0_28 = arith.constant 0 : index
    %48 = vector.load %arg6[%c2_26, %c0_27, %c0_28] : memref<3x179x208xbf16, #tpu.memory_space<vmem>>, vector<1x179x208xbf16>
    %49 = vector.shape_cast %48 : vector<1x179x208xbf16> to vector<179x208xbf16>
    %cst_29 = arith.constant dense<0.000000e+00> : vector<126x208xf32>
    %50 = tpu.matmul %47, %49, %cst_29 {dimension_numbers = #tpu.dot_dimension_numbers<[1], [0], [0], [1], [0, 0, 1, 1], [], []>} : vector<126x179xbf16>, vector<179x208xbf16>, vector<126x208xf32> -> vector<126x208xf32>
    %51 = arith.addf %45, %50 : vector<126x208xf32>
    %cst_30 = arith.constant 0.000000e+00 : f32
    %52 = vector.broadcast %cst_30 : f32 to vector<126x208xf32>
    %53 = arith.maximumf %51, %52 : vector<126x208xf32>
    %54 = vector.extract_strided_slice %53 {offsets = [0, 0], sizes = [125, 208], strides = [1, 1]} : vector<126x208xf32> to vector<125x208xf32>
    %55 = vector.extract_strided_slice %53 {offsets = [1, 0], sizes = [125, 208], strides = [1, 1]} : vector<126x208xf32> to vector<125x208xf32>
    %56 = arith.maximumf %54, %55 : vector<125x208xf32>
    %57 = vector.extract_strided_slice %56 {offsets = [0, 0], sizes = [125, 207], strides = [1, 1]} : vector<125x208xf32> to vector<125x207xf32>
    %58 = vector.extract_strided_slice %56 {offsets = [0, 1], sizes = [125, 207], strides = [1, 1]} : vector<125x208xf32> to vector<125x207xf32>
    %59 = arith.maximumf %57, %58 : vector<125x207xf32>
    %c0_31 = arith.constant 0 : index
    %c0_32 = arith.constant 0 : index
    %60 = vector.load %arg3[%c0_31, %c0_32] : memref<48x125xbf16, #tpu.memory_space<vmem>>, vector<48x125xbf16>
    %61 = arith.truncf %59 : vector<125x207xf32> to vector<125x207xbf16>
    %cst_33 = arith.constant dense<0.000000e+00> : vector<48x207xf32>
    %62 = tpu.matmul %60, %61, %cst_33 {dimension_numbers = #tpu.dot_dimension_numbers<[1], [0], [0], [1], [0, 0, 1, 1], [], []>} : vector<48x125xbf16>, vector<125x207xbf16>, vector<48x207xf32> -> vector<48x207xf32>
    %c0_34 = arith.constant 0 : index
    %c0_35 = arith.constant 0 : index
    %63 = vector.load %arg9[%c0_34, %c0_35] : memref<1x120xf32, #tpu.memory_space<vmem>>, vector<1x120xf32>
    %64 = vector.extract_strided_slice %62 {offsets = [0, 0], sizes = [8, 207], strides = [1, 1]} : vector<48x207xf32> to vector<8x207xf32>
    %65 = arith.truncf %64 : vector<8x207xf32> to vector<8x207xbf16>
    %c0_36 = arith.constant 0 : index
    %c0_37 = arith.constant 0 : index
    %c0_38 = arith.constant 0 : index
    %66 = vector.load %arg8[%c0_36, %c0_37, %c0_38] : memref<6x207x120xbf16, #tpu.memory_space<vmem>>, vector<1x207x120xbf16>
    %67 = vector.shape_cast %66 : vector<1x207x120xbf16> to vector<207x120xbf16>
    %cst_39 = arith.constant dense<0.000000e+00> : vector<8x120xf32>
    %68 = tpu.matmul %65, %67, %cst_39 {dimension_numbers = #tpu.dot_dimension_numbers<[1], [0], [0], [1], [0, 0, 1, 1], [], []>} : vector<8x207xbf16>, vector<207x120xbf16>, vector<8x120xf32> -> vector<8x120xf32>
    %69 = vector.broadcast %63 : vector<1x120xf32> to vector<8x120xf32>
    %70 = arith.addf %69, %68 : vector<8x120xf32>
    %71 = vector.extract_strided_slice %62 {offsets = [8, 0], sizes = [8, 207], strides = [1, 1]} : vector<48x207xf32> to vector<8x207xf32>
    %72 = arith.truncf %71 : vector<8x207xf32> to vector<8x207xbf16>
    %c1_40 = arith.constant 1 : index
    %c0_41 = arith.constant 0 : index
    %c0_42 = arith.constant 0 : index
    %73 = vector.load %arg8[%c1_40, %c0_41, %c0_42] : memref<6x207x120xbf16, #tpu.memory_space<vmem>>, vector<1x207x120xbf16>
    %74 = vector.shape_cast %73 : vector<1x207x120xbf16> to vector<207x120xbf16>
    %cst_43 = arith.constant dense<0.000000e+00> : vector<8x120xf32>
    %75 = tpu.matmul %72, %74, %cst_43 {dimension_numbers = #tpu.dot_dimension_numbers<[1], [0], [0], [1], [0, 0, 1, 1], [], []>} : vector<8x207xbf16>, vector<207x120xbf16>, vector<8x120xf32> -> vector<8x120xf32>
    %76 = arith.addf %70, %75 : vector<8x120xf32>
    %77 = vector.extract_strided_slice %62 {offsets = [16, 0], sizes = [8, 207], strides = [1, 1]} : vector<48x207xf32> to vector<8x207xf32>
    %78 = arith.truncf %77 : vector<8x207xf32> to vector<8x207xbf16>
    %c2_44 = arith.constant 2 : index
    %c0_45 = arith.constant 0 : index
    %c0_46 = arith.constant 0 : index
    %79 = vector.load %arg8[%c2_44, %c0_45, %c0_46] : memref<6x207x120xbf16, #tpu.memory_space<vmem>>, vector<1x207x120xbf16>
    %80 = vector.shape_cast %79 : vector<1x207x120xbf16> to vector<207x120xbf16>
    %cst_47 = arith.constant dense<0.000000e+00> : vector<8x120xf32>
    %81 = tpu.matmul %78, %80, %cst_47 {dimension_numbers = #tpu.dot_dimension_numbers<[1], [0], [0], [1], [0, 0, 1, 1], [], []>} : vector<8x207xbf16>, vector<207x120xbf16>, vector<8x120xf32> -> vector<8x120xf32>
    %82 = arith.addf %76, %81 : vector<8x120xf32>
    %83 = vector.extract_strided_slice %62 {offsets = [24, 0], sizes = [8, 207], strides = [1, 1]} : vector<48x207xf32> to vector<8x207xf32>
    %84 = arith.truncf %83 : vector<8x207xf32> to vector<8x207xbf16>
    %c3 = arith.constant 3 : index
    %c0_48 = arith.constant 0 : index
    %c0_49 = arith.constant 0 : index
    %85 = vector.load %arg8[%c3, %c0_48, %c0_49] : memref<6x207x120xbf16, #tpu.memory_space<vmem>>, vector<1x207x120xbf16>
    %86 = vector.shape_cast %85 : vector<1x207x120xbf16> to vector<207x120xbf16>
    %cst_50 = arith.constant dense<0.000000e+00> : vector<8x120xf32>
    %87 = tpu.matmul %84, %86, %cst_50 {dimension_numbers = #tpu.dot_dimension_numbers<[1], [0], [0], [1], [0, 0, 1, 1], [], []>} : vector<8x207xbf16>, vector<207x120xbf16>, vector<8x120xf32> -> vector<8x120xf32>
    %88 = arith.addf %82, %87 : vector<8x120xf32>
    %89 = vector.extract_strided_slice %62 {offsets = [32, 0], sizes = [8, 207], strides = [1, 1]} : vector<48x207xf32> to vector<8x207xf32>
    %90 = arith.truncf %89 : vector<8x207xf32> to vector<8x207xbf16>
    %c4 = arith.constant 4 : index
    %c0_51 = arith.constant 0 : index
    %c0_52 = arith.constant 0 : index
    %91 = vector.load %arg8[%c4, %c0_51, %c0_52] : memref<6x207x120xbf16, #tpu.memory_space<vmem>>, vector<1x207x120xbf16>
    %92 = vector.shape_cast %91 : vector<1x207x120xbf16> to vector<207x120xbf16>
    %cst_53 = arith.constant dense<0.000000e+00> : vector<8x120xf32>
    %93 = tpu.matmul %90, %92, %cst_53 {dimension_numbers = #tpu.dot_dimension_numbers<[1], [0], [0], [1], [0, 0, 1, 1], [], []>} : vector<8x207xbf16>, vector<207x120xbf16>, vector<8x120xf32> -> vector<8x120xf32>
    %94 = arith.addf %88, %93 : vector<8x120xf32>
    %95 = vector.extract_strided_slice %62 {offsets = [40, 0], sizes = [8, 207], strides = [1, 1]} : vector<48x207xf32> to vector<8x207xf32>
    %96 = arith.truncf %95 : vector<8x207xf32> to vector<8x207xbf16>
    %c5 = arith.constant 5 : index
    %c0_54 = arith.constant 0 : index
    %c0_55 = arith.constant 0 : index
    %97 = vector.load %arg8[%c5, %c0_54, %c0_55] : memref<6x207x120xbf16, #tpu.memory_space<vmem>>, vector<1x207x120xbf16>
    %98 = vector.shape_cast %97 : vector<1x207x120xbf16> to vector<207x120xbf16>
    %cst_56 = arith.constant dense<0.000000e+00> : vector<8x120xf32>
    %99 = tpu.matmul %96, %98, %cst_56 {dimension_numbers = #tpu.dot_dimension_numbers<[1], [0], [0], [1], [0, 0, 1, 1], [], []>} : vector<8x207xbf16>, vector<207x120xbf16>, vector<8x120xf32> -> vector<8x120xf32>
    %100 = arith.addf %94, %99 : vector<8x120xf32>
    %cst_57 = arith.constant 0.000000e+00 : f32
    %101 = vector.broadcast %cst_57 : f32 to vector<8x120xf32>
    %102 = arith.maximumf %100, %101 : vector<8x120xf32>
    %103 = arith.truncf %102 : vector<8x120xf32> to vector<8x120xbf16>
    %c0_58 = arith.constant 0 : index
    %c0_59 = arith.constant 0 : index
    %104 = vector.load %arg10[%c0_58, %c0_59] : memref<120x84xbf16, #tpu.memory_space<vmem>>, vector<120x84xbf16>
    %cst_60 = arith.constant dense<0.000000e+00> : vector<8x84xf32>
    %105 = tpu.matmul %103, %104, %cst_60 {dimension_numbers = #tpu.dot_dimension_numbers<[1], [0], [0], [1], [0, 0, 1, 1], [], []>} : vector<8x120xbf16>, vector<120x84xbf16>, vector<8x84xf32> -> vector<8x84xf32>
    %c0_61 = arith.constant 0 : index
    %c0_62 = arith.constant 0 : index
    %106 = vector.load %arg11[%c0_61, %c0_62] : memref<1x84xf32, #tpu.memory_space<vmem>>, vector<1x84xf32>
    %107 = vector.broadcast %106 : vector<1x84xf32> to vector<8x84xf32>
    %108 = arith.addf %105, %107 : vector<8x84xf32>
    %cst_63 = arith.constant 0.000000e+00 : f32
    %109 = vector.broadcast %cst_63 : f32 to vector<8x84xf32>
    %110 = arith.maximumf %108, %109 : vector<8x84xf32>
    %111 = arith.truncf %110 : vector<8x84xf32> to vector<8x84xbf16>
    %c0_64 = arith.constant 0 : index
    %c0_65 = arith.constant 0 : index
    %112 = vector.load %arg12[%c0_64, %c0_65] : memref<84x128xbf16, #tpu.memory_space<vmem>>, vector<84x128xbf16>
    %cst_66 = arith.constant dense<0.000000e+00> : vector<8x128xf32>
    %113 = tpu.matmul %111, %112, %cst_66 {dimension_numbers = #tpu.dot_dimension_numbers<[1], [0], [0], [1], [0, 0, 1, 1], [], []>} : vector<8x84xbf16>, vector<84x128xbf16>, vector<8x128xf32> -> vector<8x128xf32>
    %c0_67 = arith.constant 0 : index
    %c0_68 = arith.constant 0 : index
    %114 = vector.load %arg13[%c0_67, %c0_68] : memref<1x128xf32, #tpu.memory_space<vmem>>, vector<1x128xf32>
    %115 = vector.broadcast %114 : vector<1x128xf32> to vector<8x128xf32>
    %116 = arith.addf %113, %115 : vector<8x128xf32>
    %c0_69 = arith.constant 0 : index
    %c0_70 = arith.constant 0 : index
    %117 = vector.load %arg14[%c0_69, %c0_70] : memref<8x128xf32, #tpu.memory_space<vmem>>, vector<8x128xf32>
    tpu.vector_store %arg14[%c0_69, %c0_70], %116 {strides = array<i32>} : memref<8x128xf32, #tpu.memory_space<vmem>>, vector<8x128xf32>,
    return
  }
  func.func @transform_0(%arg0: i32) -> (i32, i32) {
    %c0_i32 = arith.constant 0 : i32
    %c0_i32_0 = arith.constant 0 : i32
    return %arg0, %c0_i32 : i32, i32
  }
  func.func @transform_1(%arg0: i32) -> (i32, i32) {
    %c0_i32 = arith.constant 0 : i32
    %c0_i32_0 = arith.constant 0 : i32
    %c0_i32_1 = arith.constant 0 : i32
    return %c0_i32, %c0_i32_0 : i32, i32
  }
  func.func @transform_2(%arg0: i32) -> (i32, i32) {
    %c0_i32 = arith.constant 0 : i32
    %c0_i32_0 = arith.constant 0 : i32
    %c0_i32_1 = arith.constant 0 : i32
    return %c0_i32, %c0_i32_0 : i32, i32
  }
  func.func @transform_3(%arg0: i32) -> (i32, i32, i32) {
    %c0_i32 = arith.constant 0 : i32
    %c0_i32_0 = arith.constant 0 : i32
    %c0_i32_1 = arith.constant 0 : i32
    %c0_i32_2 = arith.constant 0 : i32
    return %c0_i32, %c0_i32_0, %c0_i32_1 : i32, i32, i32
  }
  func.func @transform_4(%arg0: i32) -> (i32, i32) {
    %c0_i32 = arith.constant 0 : i32
    %c0_i32_0 = arith.constant 0 : i32
    %c0_i32_1 = arith.constant 0 : i32
    return %c0_i32, %c0_i32_0 : i32, i32
  }
  func.func @transform_5(%arg0: i32) -> (i32, i32, i32) {
    %c0_i32 = arith.constant 0 : i32
    %c0_i32_0 = arith.constant 0 : i32
    %c0_i32_1 = arith.constant 0 : i32
    %c0_i32_2 = arith.constant 0 : i32
    return %c0_i32, %c0_i32_0, %c0_i32_1 : i32, i32, i32
  }
  func.func @transform_6(%arg0: i32) -> (i32, i32) {
    %c0_i32 = arith.constant 0 : i32
    %c0_i32_0 = arith.constant 0 : i32
    %c0_i32_1 = arith.constant 0 : i32
    return %c0_i32, %c0_i32_0 : i32, i32
  }
  func.func @transform_7(%arg0: i32) -> (i32, i32, i32) {
    %c0_i32 = arith.constant 0 : i32
    %c0_i32_0 = arith.constant 0 : i32
    %c0_i32_1 = arith.constant 0 : i32
    %c0_i32_2 = arith.constant 0 : i32
    return %c0_i32, %c0_i32_0, %c0_i32_1 : i32, i32, i32
  }
  func.func @transform_8(%arg0: i32) -> (i32, i32) {
    %c0_i32 = arith.constant 0 : i32
    %c0_i32_0 = arith.constant 0 : i32
    %c0_i32_1 = arith.constant 0 : i32
    return %c0_i32, %c0_i32_0 : i32, i32
  }
  func.func @transform_9(%arg0: i32) -> (i32, i32) {
    %c0_i32 = arith.constant 0 : i32
    %c0_i32_0 = arith.constant 0 : i32
    %c0_i32_1 = arith.constant 0 : i32
    return %c0_i32, %c0_i32_0 : i32, i32
  }
  func.func @transform_10(%arg0: i32) -> (i32, i32) {
    %c0_i32 = arith.constant 0 : i32
    %c0_i32_0 = arith.constant 0 : i32
    %c0_i32_1 = arith.constant 0 : i32
    return %c0_i32, %c0_i32_0 : i32, i32
  }
  func.func @transform_11(%arg0: i32) -> (i32, i32) {
    %c0_i32 = arith.constant 0 : i32
    %c0_i32_0 = arith.constant 0 : i32
    %c0_i32_1 = arith.constant 0 : i32
    return %c0_i32, %c0_i32_0 : i32, i32
  }
  func.func @transform_12(%arg0: i32) -> (i32, i32) {
    %c0_i32 = arith.constant 0 : i32
    %c0_i32_0 = arith.constant 0 : i32
    %c0_i32_1 = arith.constant 0 : i32
    return %c0_i32, %c0_i32_0 : i32, i32
  }
  func.func @transform_13(%arg0: i32) -> (i32, i32) {
    %c0_i32 = arith.constant 0 : i32
    %c0_i32_0 = arith.constant 0 : i32
    return %arg0, %c0_i32 : i32, i32
  }
}

</mosaic_0001>

<bundles_post_ra>
// kernel: net_forward.1
= control target key start
LH: loop header
LB: loop body
LE: loop exit
PB: predicated region body
PF: predicated region fallthrough
CT: control target
= control target key end

     0   :  { %s8935_s0 = inlined_call_operand.hbm [shape: f32[512,32], index: 0, kind: input, shape index: {}]   ;;  %s8936_s1 = inlined_call_operand.vmem [shape: bf16[128,253], index: 1, kind: input, shape index: {}]   ;;  %s8937_s2 = inlined_call_operand.hbm [shape: bf16[48,125], index: 2, kind: input, shape index: {}]   ;;  %s8938_s3 = inlined_call_operand.hbm [shape: bf16[3,32,180], index: 3, kind: input, shape index: {}]   ;;  %s8939_s4 = inlined_call_operand.vmem [shape: f32[1,180], index: 4, kind: input, shape index: {}]   ;;  %s8940_s5 = inlined_call_operand.hbm [shape: bf16[3,179,208], index: 5, kind: input, shape index: {}]   ;;  %s8941_s6 = inlined_call_operand.vmem [shape: f32[1,208], index: 6, kind: input, shape index: {}]   ;;  %s8942_s7 = inlined_call_operand.hbm [shape: bf16[6,207,120], index: 7, kind: input, shape index: {}]   ;;  %s8943_s8 = inlined_call_operand.vmem [shape: f32[1,120], index: 8, kind: input, shape index: {}]   ;;  %s8944_s9 = inlined_call_operand.vmem [shape: bf16[120,84], index: 9, kind: input, shape index: {}]   ;;  %s8945_s10 = inlined_call_operand.vmem [shape: f32[1,84], index: 10, kind: input, shape index: {}]   ;;  %s8946_s11 = inlined_call_operand.hbm [shape: bf16[84,128], index: 11, kind: input, shape index: {}]   ;;  %s8947_s12 = inlined_call_operand.vmem [shape: f32[1,128], index: 12, kind: input, shape index: {}]   ;;  %s8948_s13 = inlined_call_operand.hbm [shape: f32[16,128], index: 13, kind: output, shape index: {}]  }
   0x1   :  { %8983 = sst [smem:[#allocation38_spill]] %s8937_s2 }
   0x2   :  { %8984 = sst [smem:[#allocation39_spill]] %s8943_s8 }
   0x3   :  { %8985 = sst [smem:[#allocation40_spill]] %s8944_s9 }
   0x4   :  { %8986 = sst [smem:[#allocation41_spill]] %s8945_s10 }
   0x5   :  { %8987 = sst [smem:[#allocation42_spill]] %s8947_s12 }
   0x6   :  { %8988 = sst [smem:[#allocation43_spill]] %s8948_s13 }
   0x7   :  { %18 = vsyncpa [#allocation3], 0 }
   0x8   :  { %20 = vsyncpa [#allocation3 + $0x1], 0 }
   0x9   :  { %21 = vsyncpa [#allocation6], 0 }
   0xa   :  { %22 = vsyncpa [#allocation9], 0 }
   0xb   :  { %23 = vsyncpa [#allocation12], 0 }
   0xc   :  { %24 = vsyncpa [#allocation4], 0 }
   0xd   :  { %26 = vsyncpa [#allocation4 + $0x1], 0  ;;  %s7258_s25 = smov 0   ;;  %s7260_s26 = smov 0  }
   0xe   :  { %s7262_s27 = smov 0   ;;  %s7264_s28 = smov 0  }
   0xf LB: > { %s7172_s29 = smov [#allocation5]   ;;  %s7279_s14 = sadd.s32 4294967295, %s7170_s28   ;;  %s7170_s28 = sphi %s7264_s28, %s9060_s28   ;;  %s7166_s27 = sphi %s7262_s27, %s9059_s27   ;;  %s7162_s26 = sphi %s7260_s26, %s9058_s26   ;;  %s7158_s25 = sphi %s7258_s25, %s9057_s25  }
  0x10   : > { %s356_s30 = sshll.u32 %s7172_s29, 4  ;;  %p5661_p0 = scmp.ge.s32.totalorder %s7170_s28, 1  ;;  %s7284_s30 = int_to_ptr.vmem [resolvable:$true] %s356_s30 }
  0x11   : > { %p8953_p1 = scmp.eq.s32.totalorder %s7279_s14, 0  ;;  %p341_p2 = scmp.lt.s32.totalorder %s7170_s28, 3 }
  0x12   : > { %s7173_s17 = smov [#allocation8]   ;;  %s7174_s19 = smov [#allocation7]  }
  0x13   : > { %p7286_p3 = pnand %p5661_p0, %p341_p2  ;;  %s385_s18 = sshll.u32 %s7173_s17, 4  ;;  %s7299_s18 = int_to_ptr.vmem [resolvable:$true] %s385_s18 }
  0x14   : > { %s7301_s20 = sshll.u32 %s7174_s19, 4  ;;  %s8991_s2 = sld [smem:[#allocation38_spill]]  ;;  %s370_s20 = int_to_ptr.vmem [resolvable:$true] %s7301_s20 }
  0x15   : > { %s8989_s15 = scalar_select %p7286_p3, 1, 0 }
  0x16   : > { %p6358_p5 = pneg %p7286_p3 }
  0x18   : > { %p7295_p6 = pnand %p6358_p5, %p8953_p1 }
  0x1a   : > { %s6922_s23 = scalar_lea.hbm %s8991_s2, 384  ;;  %p7311_p8 = pneg %p7295_p6 }
  0x1b   : > { %p6923_p7 = scmp.ne.s32.totalorder %s8991_s2, %s6922_s23  ;;  %p6929_p11 = scmp.lt.u32.totalorder %s6922_s23, %s8991_s2 }
  0x1d   : > { %p6925_p9 = pnand %p7311_p8, %p6923_p7 }
  0x1f   : > { %p6926_p10 = pneg %p6925_p9 }
  0x21   : > { %p6931_p12 = pnand %p6929_p11, %p6926_p10 }
  0x23   : > { %6934 = shalt.err (!%p6931_p12)
}
  0x24   : > { %s6935_s21 = scalar_lea.vmem %s7284_s30, 384  ;;  %p6943_p5 = scmp.lt.s32.totalorder %s7284_s30, %s7284_s30 }
  0x25   : > { %p6936_p13 = scmp.ne.s32.totalorder %s7284_s30, %s6935_s21  ;;  %p6944_p4 = scmp.lt.s32.totalorder %s6935_s21, %s6935_s21 }
  0x27   : > { %p6938_p0 = pnand %p6936_p13, %p7311_p8  ;;  %p6945_p7 = por %p6944_p4, %p6943_p5 }
  0x29   : > { %p6939_p2 = pneg %p6938_p0 }
  0x2b   : > { %p6946_p9 = pnand %p6945_p7, %p6939_p2 }
  0x2d   : > { %6949 = shalt.err (!%p6946_p9)
}
  0x2e   : > { %s8951_s22 = smov 64   ;;  %s8955_s23 = smov 4  }
  0x2f   : > { %6361 = dma.hbm_to_vmem [thread:$0]  (!%p7295_p6), %s8991_s2, 384, %s7284_s30, [#allocation6], %s8951_s22, %s8951_s22, %s8955_s23  }
  0x30   : > { %s6950_s21 = scalar_lea.hbm %s8940_s5, 8832 }
  0x31   : > { %p6951_p4 = scmp.ne.s32.totalorder %s8940_s5, %s6950_s21  ;;  %p6957_p12 = scmp.lt.u32.totalorder %s6950_s21, %s8940_s5 }
  0x33   : > { %p6953_p10 = pnand %p6951_p4, %p7311_p8 }
  0x35   : > { %p6954_p11 = pneg %p6953_p10 }
  0x37   : > { %p6959_p13 = pnand %p6957_p12, %p6954_p11 }
  0x39   : > { %6962 = shalt.err (!%p6959_p13)
}
  0x3a   : > { %s6963_s30 = scalar_lea.vmem %s7299_s18, 8832  ;;  %p6971_p7 = scmp.lt.s32.totalorder %s7299_s18, %s7299_s18 }
  0x3b   : > { %p6964_p0 = scmp.ne.s32.totalorder %s7299_s18, %s6963_s30  ;;  %p6972_p9 = scmp.lt.s32.totalorder %s6963_s30, %s6963_s30 }
  0x3d   : > { %p6966_p2 = pnand %p6964_p0, %p7311_p8  ;;  %p6973_p4 = por %p6972_p9, %p6971_p7 }
  0x3f   : > { %p6967_p5 = pneg %p6966_p2 }
  0x41   : > { %p6974_p10 = pnand %p6973_p4, %p6967_p5 }
  0x43   : > { %6977 = shalt.err (!%p6974_p10)
}
  0x44   : > { %s8957_s10 = smov 128   ;;  %s7178_s8 = smov 8  }
  0x45   : > { %6367 = dma.hbm_to_vmem [thread:$0]  (!%p7295_p6), %s8940_s5, 8832, %s7299_s18, [#allocation9], %s8957_s10, %s8957_s10, %s7178_s8  }
  0x46   : > { %s6978_s17 = scalar_lea.hbm %s8938_s3, 1536 }
  0x47   : > { %p6979_p11 = scmp.ne.s32.totalorder %s8938_s3, %s6978_s17  ;;  %p6985_p0 = scmp.lt.u32.totalorder %s6978_s17, %s8938_s3 }
  0x49   : > { %p6981_p12 = pnand %p6979_p11, %p7311_p8 }
  0x4b   : > { %p6982_p13 = pneg %p6981_p12 }
  0x4d   : > { %p6987_p2 = pnand %p6985_p0, %p6982_p13 }
  0x4f   : > { %6990 = shalt.err (!%p6987_p2)
}
  0x50   : > { %s6991_s9 = scalar_lea.vmem %s370_s20, 1536  ;;  %p6999_p4 = scmp.lt.s32.totalorder %s370_s20, %s370_s20 }
  0x51   : > { %p6992_p5 = scmp.ne.s32.totalorder %s370_s20, %s6991_s9  ;;  %p7000_p10 = scmp.lt.s32.totalorder %s6991_s9, %s6991_s9 }
  0x53   : > { %p6994_p7 = pnand %p6992_p5, %p7311_p8  ;;  %p7001_p1 = por %p7000_p10, %p6999_p4 }
  0x55   : > { %p6995_p9 = pneg %p6994_p7 }
  0x57   : > { %p7002_p3 = pnand %p7001_p1, %p6995_p9 }
  0x59   : > { %7005 = shalt.err (!%p7002_p3)
}
  0x5a   : > { %6364 = dma.hbm_to_vmem [thread:$0]  (!%p7295_p6), %s8938_s3, 1536, %s370_s20, [#allocation6], %s8957_s10, %s8957_s10, %s7178_s8  }
  0x5b   : > { %s7179_s12 = smov [#allocation10]   ;;  %s7180_s29 = smov [#allocation11]  }
  0x5c   : > { %s401_s24 = sshll.u32 %s7179_s12, 4  ;;  %s423_s17 = sshll.u32 %s7180_s29, 4  ;;  %s402_s24 = int_to_ptr.vmem [resolvable:$true] %s401_s24  ;;  %s424_s17 = int_to_ptr.vmem [resolvable:$true] %s423_s17 }
  0x5d   : > { %s7006_s30 = scalar_lea.hbm %s8942_s7, 9984 }
  0x5e   : > { %p7007_p1 = scmp.ne.s32.totalorder %s8942_s7, %s7006_s30  ;;  %p7013_p12 = scmp.lt.u32.totalorder %s7006_s30, %s8942_s7 }
  0x60   : > { %p7009_p3 = pnand %p7007_p1, %p7311_p8 }
  0x62   : > { %p7010_p11 = pneg %p7009_p3 }
  0x64   : > { %p7015_p13 = pnand %p7013_p12, %p7010_p11 }
  0x66   : > { %7018 = shalt.err (!%p7015_p13)
}
  0x67   : > { %s7019_s20 = scalar_lea.vmem %s402_s24, 9984  ;;  %p7027_p7 = scmp.lt.s32.totalorder %s402_s24, %s402_s24 }
  0x68   : > { %p7020_p0 = scmp.ne.s32.totalorder %s402_s24, %s7019_s20  ;;  %p7028_p9 = scmp.lt.s32.totalorder %s7019_s20, %s7019_s20 }
  0x6a   : > { %p7022_p2 = pnand %p7020_p0, %p7311_p8  ;;  %p7029_p4 = por %p7028_p9, %p7027_p7 }
  0x6c   : > { %p7023_p5 = pneg %p7022_p2 }
  0x6e   : > { %p7030_p10 = pnand %p7029_p4, %p7023_p5 }
  0x70   : > { %7033 = shalt.err (!%p7030_p10)
}
  0x71   : > { %s8993_s23 = smov 4   ;;  %s8994_s22 = smov 64  }
  0x72   : > { %6370 = dma.hbm_to_vmem [thread:$0]  (!%p7295_p6), %s8942_s7, 9984, %s402_s24, [#allocation9], %s8994_s22, %s8994_s22, %s8993_s23  }
  0x73   : > { %s7034_s21 = scalar_lea.hbm %s8946_s11, 704 }
  0x74   : > { %p7035_p1 = scmp.ne.s32.totalorder %s8946_s11, %s7034_s21  ;;  %p7041_p12 = scmp.lt.u32.totalorder %s7034_s21, %s8946_s11 }
  0x76   : > { %p7037_p3 = pnand %p7035_p1, %p7311_p8 }
  0x78   : > { %p7038_p11 = pneg %p7037_p3 }
  0x7a   : > { %p7043_p13 = pnand %p7041_p12, %p7038_p11 }
  0x7c   : > { %7046 = shalt.err (!%p7043_p13)
}
  0x7d   : > { %s7047_s2 = scalar_lea.vmem %s424_s17, 704  ;;  %p7055_p7 = scmp.lt.s32.totalorder %s424_s17, %s424_s17 }
  0x7e   : > { %p7048_p0 = scmp.ne.s32.totalorder %s424_s17, %s7047_s2  ;;  %p7056_p9 = scmp.lt.s32.totalorder %s7047_s2, %s7047_s2 }
  0x80   : > { %p7050_p2 = pnand %p7048_p0, %p7311_p8  ;;  %p7057_p4 = por %p7056_p9, %p7055_p7 }
  0x82   : > { %p7051_p5 = pneg %p7050_p2 }
  0x84   : > { %p7058_p10 = pnand %p7057_p4, %p7051_p5 }
  0x86   : > { %7061 = shalt.err (!%p7058_p10)
}
  0x87   : > { %6373 = dma.hbm_to_vmem [thread:$0]  (!%p7295_p6), %s8946_s11, 704, %s424_s17, [#allocation12], %s8994_s22, %s8994_s22, %s8993_s23  }
  0x88   : > { %s5660_s13 = sadd.s32 4294967294, %s7170_s28   ;;  %s7427_s16 = sadd.s32 1, %s7170_s28  }
  0x89   : > { %s39_s29 = sadd.s32 1, %s7166_s27  ;;  %s36_s19 = ssub.s32 %s7170_s28, %s7427_s16 }
  0x8a   : > { %p46_p8 = scmp.ne.s32.totalorder %s7166_s27, %s7162_s26  ;;  %p37_p1 = scmp.eq.s32.totalorder %s36_s19, 0 }
  0x8b   : > { %p47_p3 = scmp.eq.s32.totalorder %s7170_s28, 0  ;;  %p52_p11 = scmp.ne.s32.totalorder %s7162_s26, %s7158_s25 }
  0x8c   : > { %p328_p12 = scmp.eq.s32.totalorder %s7279_s14, 1  ;;  %p8995_p0 = scmp.eq.s32.totalorder %s7279_s14, 0 }
  0x8d   : > { %s7439_s21 = scalar_select %p37_p1, %s7166_s27, %s39_s29  }
  0x8e   : > { %p48_p13 = por %p47_p3, %p46_p8  ;;  %p7443_p2 = por %p8995_p0, %p52_p11 }
  0x8f   : > { %p7447_p6 = por %p328_p12, %p46_p8  ;;  %p334_p5 = scmp.eq.s32.totalorder %s5660_s13, 1 }
  0x90   : > { %p6387_p7 = scmp.lt.s32.totalorder %s7170_s28, 2  ;;  %s440_s23 = sand.u32 1, %s7166_s27  }
  0x91   : > { %s8997_s17 = scalar_select %p7447_p6, 1, 0 }
  0x92   : > { %p7453_p9 = por %p334_p5, %p52_p11  ;;  %s5668_s9 = sshll.u32 %s440_s23, 8 }
  0x93   : > { %s5972_s18 = sshll.u32 %s7170_s28, 12  ;;  %s444_s12 = scalar_lea.vmem [#allocation2], %s5668_s9 }
  0x94   : > { %s8998_s22 = scalar_select %p7453_p9, 1, 0 }
  0x95   : > { %s7461_s24 = scalar_lea.hbm %s8935_s0, %s5972_s18  ;;  %s451_s29 = sshll.u32 %s444_s12, 4  ;;  %s7467_s29 = int_to_ptr.vmem [resolvable:$true] %s451_s29 }
  0x96   : > { %p7463_p4 = pnand %p6387_p7, %p48_p13  ;;  %s7469_s19 = scalar_lea.sflag [#allocation3], %s440_s23 }
  0x97   : > { %s7062_s10 = scalar_lea.hbm %s7461_s24, 4096  ;;  %s7067_s20 = scalar_lea.hbm %s8935_s0, 8192 }
  0x98   : > { %p7063_p10 = scmp.ne.s32.totalorder %s7461_s24, %s7062_s10  ;;  %p7064_p8 = pneg %p7463_p4 }
  0x99   : > { %p7068_p11 = scmp.lt.u32.totalorder %s7461_s24, %s8935_s0  ;;  %p7069_p12 = scmp.lt.u32.totalorder %s7067_s20, %s7062_s10 }
  0x9a   : > { %p7065_p1 = pnand %p7064_p8, %p7063_p10  ;;  %p7071_p0 = scmp.lt.u32.totalorder %s7062_s10, %s7461_s24 }
  0x9b   : > { %p7070_p13 = por %p7069_p12, %p7068_p11 }
  0x9c   : > { %p7066_p3 = pneg %p7065_p1 }
  0x9d   : > { %p7072_p5 = por %p7071_p0, %p7070_p13 }
  0x9f   : > { %p7073_p7 = pnand %p7072_p5, %p7066_p3 }
  0xa1   : > { %7076 = shalt.err (!%p7073_p7)
}
  0xa2   : > { %s7077_s23 = scalar_lea.vmem %s7467_s29, 4096  ;;  %s7181_s9 = smov [#allocation2]  }
  0xa3   : > { %p7078_p10 = scmp.ne.s32.totalorder %s7467_s29, %s7077_s23  ;;  %s7082_s18 = sshll.u32 %s7181_s9, 4  ;;  %s7083_s18 = int_to_ptr.vmem [resolvable:$false] %s7082_s18 }
  0xa4   : > { %s7084_s2 = scalar_lea.vmem %s7083_s18, 8192  ;;  %p7085_p6 = scmp.lt.s32.totalorder %s7467_s29, %s7083_s18 }
  0xa5   : > { %p7080_p1 = pnand %p7078_p10, %p7064_p8  ;;  %p7086_p11 = scmp.lt.s32.totalorder %s7084_s2, %s7077_s23 }
  0xa7   : > { %p7081_p9 = pneg %p7080_p1  ;;  %p7087_p12 = por %p7086_p11, %p7085_p6 }
  0xa9   : > { %p7088_p13 = pnand %p7087_p12, %p7081_p9 }
  0xab   : > { %7091 = shalt.err (!%p7088_p13)
}
  0xac   : > { %s9000_s10 = smov 128   ;;  %p9001_p8 = scmp.ne.s32.totalorder %s8989_s15, 0 }
  0xad   : > { %6377 = dma.hbm_to_vmem [thread:$0]  (!%p7463_p4), %s7461_s24, 4096, %s7467_s29, %s7469_s19, %s9000_s10, %s9000_s10, %s7178_s8  }
  0xae   : > { %463 = sbr.rel (%p9001_p8) target bundleno = 2832 (0xb10), region = 72 }
  0xb5   : > { %s7503_s20 = sand.u32 1, %s7162_s26  }
  0xb6   : > { %s5672_s12 = sshll.u32 %s7503_s20, 8  ;;  %s466_s23 = scalar_lea.sflag [#allocation3], %s7503_s20 }
  0xb7   : > { %s7507_s9 = scalar_lea.vmem [#allocation2], %s5672_s12 }
  0xb8   : > { %7137 = dma.done.wait (%p7443_p2), %s466_s23, 4096  }
  0xb9   : > { %7139 = vsyncadd (%p7443_p2), %s466_s23, 4294963200  ;;  %p9002_p6 = scmp.eq.s32.totalorder %s7279_s14, 0 }
  0xbb   : > { %7141 = dma.done.wait (%p9002_p6), [#allocation6], 1920   ;;  %p9003_p9 = pmov %p9002_p6 }
  0xbc   : > { %p9004_p4 = pmov %p9002_p6 }
  0xbd   : > { %7143 = vsyncadd (%p9003_p9), [#allocation6], 4294965376 }
  0xbe   : > { %7145 = dma.done.wait (%p9004_p4), [#allocation9], 18816   ;;  %p9005_p3 = pmov %p9004_p4 }
  0xc0   : > { %7147 = vsyncadd (%p9005_p3), [#allocation9], 4294948480  ;;  %p9006_p0 = pmov %p9005_p3 }
  0xc2   : > { %7149 = dma.done.wait (%p9006_p0), [#allocation12], 704   ;;  %p9007_p5 = pmov %p9006_p0 }
  0xc3   : > { %v8961_v0 = vmov 0   ;;  %v6680_v1 = vld [vmem:[#allocation7 + $0x4] ss:$8 sps:$4 sm:$0xff]   ;;  %v6682_v2 = vld [vmem:[#allocation7] ss:$8 sps:$4 sm:$0xff]   ;;  %v535_v6 = vld [vmem:[%s7507_s9 + $0x8] sm:$0xff] }
  0xc4   : > { %7151 = vsyncadd (%p9007_p5), [#allocation12], 4294966592  ;;  %688 = vmatprep.mubr.bf16.mxu0 %v8961_v0  ;;  %656 = vmatprep.subr.bf16.mxu0 %v6680_v1  ;;  %v6683_v3 = vld [vmem:[#allocation7 + $0x14] ss:$8 sps:$4 sm:$0xff]   ;;  %v6685_v4 = vld [vmem:[#allocation7 + $0x10] ss:$8 sps:$4 sm:$0xff]  }
  0xc5   : > { %v534_v5 = vld [vmem:[%s7507_s9] sm:$0xff]  ;;  %657 = vmatpush1.bf16.msra.mxu0 %v6682_v2  ;;  %vm607_vm0 = vcmask 261120   ;;  %v536_v10 = vld [vmem:[%s7507_s9 + $0x10] sm:$0xff]  ;;  %v537_v11 = vld [vmem:[%s7507_s9 + $0x18] sm:$0xff]  ;;  %vm929_vm1 = vsmask.f32 7424 }
  0xc6   : > { %658 = vmatprep.subr.bf16.mxu0 %v6683_v3  ;;  %v6688_v7 = vld [vmem:[#allocation7 + $0x24] ss:$8 sps:$4 sm:$0xff]   ;;  %v7528_v8 = vpack.c.bf16 %v535_v6, %v534_v5  ;;  %v6686_v9 = vld [vmem:[#allocation7 + $0x20] ss:$8 sps:$4 sm:$0xff]   ;;  %v6689_v12 = vld [vmem:[#allocation7 + $0x30] ss:$8 sps:$4 sm:$0xff]   ;;  %v7535_v14 = vpack.c.bf16 %v537_v11, %v536_v10 }
  0xc7   : > { %v6691_v13 = vld [vmem:[#allocation7 + $0x34] ss:$8 sps:$4 sm:$0xff]   ;;  %v538_v15 = vld [vmem:[%s7507_s9 + $0x20] sm:$0xff]  ;;  %v541_v20 = vld [vmem:[%s7507_s9 + $0x38] sm:$0xff]  ;;  %vm1387_vm2 = vcmask 1046528   ;;  %s7183_s30 = smov 127  }
  0xc8   : > { %v539_v16 = vld [vmem:[%s7507_s9 + $0x28] sm:$0xff]  ;;  %v6694_v17 = vld [vmem:[#allocation7 + $0x44] ss:$8 sps:$4 sm:$0xff]   ;;  %v540_v19 = vld [vmem:[%s7507_s9 + $0x30] sm:$0xff]  ;;  %v932_v57 = vshll.u32 %v7528_v8, 16  ;;  %v930_v59 = vshrl.u32 %v7528_v8, 16 }
  0xc9   : > { %659 = vmatpush1.bf16.msra.mxu0 %v6685_v4  ;;  %v7542_v18 = vpack.c.bf16 %v539_v16, %v538_v15  ;;  %v7549_v21 = vpack.c.bf16 %v541_v20, %v540_v19  ;;  %v542_v22 = vld [vmem:[%s7507_s9 + $0x40] sm:$0xff]  ;;  %v543_v23 = vld [vmem:[%s7507_s9 + $0x48] sm:$0xff]  ;;  %v544_v25 = vld [vmem:[%s7507_s9 + $0x50] sm:$0xff]  ;;  %v936_v61 = vshll.u32 %v7535_v14, 16  ;;  %v940_v3 = vshrl.u32 %v7535_v14, 16  ;;  %s9049_s8 = sld [smem:[#allocation40_spill]] }
  0xca   : > { %1109 = vmatprep.subr.bf16.mxu0 %v6688_v7  ;;  %v7556_v24 = vpack.c.bf16 %v543_v23, %v542_v22  ;;  %v545_v26 = vld [vmem:[%s7507_s9 + $0x58] sm:$0xff]  ;;  %v546_v28 = vld [vmem:[%s7507_s9 + $0x60] sm:$0xff]  ;;  %v547_v29 = vld [vmem:[%s7507_s9 + $0x68] sm:$0xff]  ;;  %v934_v60 = vrot.slane %v932_v57, 1  ;;  %vm2319_vm3 = vcmask 1039360   ;;  %vm2600_vm4 = vcmask 1022976  }
  0xcb   : > { %v7563_v27 = vpack.c.bf16 %v545_v26, %v544_v25  ;;  %v7570_v30 = vpack.c.bf16 %v547_v29, %v546_v28  ;;  %v548_v31 = vld [vmem:[%s7507_s9 + $0x70] sm:$0xff]  ;;  %v549_v32 = vld [vmem:[%s7507_s9 + $0x78] sm:$0xff]  ;;  %v550_v34 = vld [vmem:[%s7507_s9 + $0x80] sm:$0xff]  ;;  %v938_v63 = vrot.slane %v936_v61, 1  ;;  %v943_v4 = vshll.u32 %v7542_v18, 16  ;;  %s9050_s18 = sld [smem:[#allocation39_spill]] }
  0xcc   : > { %5683 = vmatmul.mubr.msk.bf16.vlgmr.msra.gmra.mrb[0].mxu0 %vm607_vm0, %v7528_v8  ;;  %v7577_v33 = vpack.c.bf16 %v549_v32, %v548_v31  ;;  %v551_v35 = vld [vmem:[%s7507_s9 + $0x88] sm:$0xff]  ;;  %v552_v37 = vld [vmem:[%s7507_s9 + $0x90] sm:$0xff]  ;;  %v553_v38 = vld [vmem:[%s7507_s9 + $0x98] sm:$0xff]  ;;  %v935_v62 = vor.u32 %v934_v60, %v930_v59  ;;  %v947_v11 = vshrl.u32 %v7542_v18, 16  ;;  %v957_v19 = vshll.u32 %v7556_v24, 16  ;;  %s9051_s12 = sld [smem:[#allocation41_spill]] }
  0xcd   : > { %698 = vmatprep.mubr.bf16.mxu0 %v8961_v0  ;;  %1110 = vmatpush1.bf16.msra.mxu0 %v6686_v9  ;;  %v7584_v36 = vpack.c.bf16 %v551_v35, %v550_v34  ;;  %v7591_v39 = vpack.c.bf16 %v553_v38, %v552_v37  ;;  %v554_v40 = vld [vmem:[%s7507_s9 + $0xa0] sm:$0xff]  ;;  %v555_v41 = vld [vmem:[%s7507_s9 + $0xa8] sm:$0xff]  ;;  %v556_v43 = vld [vmem:[%s7507_s9 + $0xb0] sm:$0xff]  ;;  %v942_v6 = vor.u32 %v940_v3, %v938_v63  ;;  %v945_v7 = vrot.slane %v943_v4, 1  ;;  %s5678_s23 = sshll.u32 %s7503_s20, 3  ;;  %s9052_s15 = sld [smem:[#allocation42_spill]] }
  0xce   : > { %1111 = vmatprep.subr.bf16.mxu0 %v6691_v13  ;;  %v7598_v42 = vpack.c.bf16 %v555_v41, %v554_v40  ;;  %v557_v44 = vld [vmem:[%s7507_s9 + $0xb8] sm:$0xff]  ;;  %v558_v46 = vld [vmem:[%s7507_s9 + $0xc0] sm:$0xff]  ;;  %v559_v47 = vld [vmem:[%s7507_s9 + $0xc8] sm:$0xff]  ;;  %v939_v1 = vsel %vm929_vm1, %v935_v62, %v938_v63  ;;  %v959_v22 = vrot.slane %v957_v19, 1  ;;  %v961_v25 = vshrl.u32 %v7556_v24, 16  ;;  %s5969_s24 = sshll.u32 %s7279_s14, 7 }
  0xcf   : > { %v7605_v45 = vpack.c.bf16 %v557_v44, %v556_v43  ;;  %v7612_v48 = vpack.c.bf16 %v559_v47, %v558_v46  ;;  %v560_v49 = vld [vmem:[%s7507_s9 + $0xd0] sm:$0xff]  ;;  %v561_v50 = vld [vmem:[%s7507_s9 + $0xd8] sm:$0xff]  ;;  %v562_v52 = vld [vmem:[%s7507_s9 + $0xe0] sm:$0xff]  ;;  %v946_v10 = vsel %vm929_vm1, %v942_v6, %v945_v7  ;;  %v949_v13 = vor.u32 %v947_v11, %v945_v7  ;;  %s531_s29 = scalar_lea.vmem [#allocation13], %s5678_s23  ;;  %s9053_s2 = sld [smem:[#allocation43_spill]] }
  0xd0   : > { %v7619_v51 = vpack.c.bf16 %v561_v50, %v560_v49  ;;  %v563_v53 = vld [vmem:[%s7507_s9 + $0xe8] sm:$0xff]  ;;  %v564_v55 = vld [vmem:[%s7507_s9 + $0xf0] sm:$0xff]  ;;  %v565_v56 = vld [vmem:[%s7507_s9 + $0xf8] sm:$0xff]  ;;  %v964_v26 = vshll.u32 %v7563_v27, 16  ;;  %v963_v28 = vor.u32 %v961_v25, %v959_v22  ;;  %v968_v32 = vshrl.u32 %v7563_v27, 16  ;;  %s5542_s13 = sshll.u32 %s531_s29, 4  ;;  %s8893_s13 = int_to_ptr.vmem [resolvable:$true] %s5542_s13 }
  0xd1   : > { %1112 = vmatpush1.bf16.msra.mxu0 %v6689_v12  ;;  %v7626_v54 = vpack.c.bf16 %v563_v53, %v562_v52  ;;  %v7634_v58 = vpack.c.bf16 %v565_v56, %v564_v55  ;;  %v6692_v2 = vld [vmem:[#allocation7 + $0x40] ss:$8 sps:$4 sm:$0xff]   ;;  %v6697_v5 = vld [vmem:[#allocation7 + $0x54] ss:$8 sps:$4 sm:$0xff]   ;;  %v6695_v9 = vld [vmem:[#allocation7 + $0x50] ss:$8 sps:$4 sm:$0xff]  }
  0xd2   : > { %1487 = vmatprep.subr.bf16.mxu0 %v6694_v17  ;;  %v950_v12 = vshll.u32 %v7549_v21, 16  ;;  %v954_v17 = vshrl.u32 %v7549_v21, 16  ;;  %v966_v29 = vrot.slane %v964_v26, 1  ;;  %v971_v34 = vshll.u32 %v7570_v30, 16  ;;  %s7092_s14 = scalar_lea.vmem %s8893_s13, 128  ;;  %p9054_p7 = scmp.ne.s32.totalorder %s8997_s17, 0 }
  0xd3   : > { %v975_v40 = vshrl.u32 %v7570_v30, 16  ;;  %v978_v41 = vshll.u32 %v7577_v33, 16  ;;  %v982_v47 = vshrl.u32 %v7577_v33, 16  ;;  %v985_v49 = vshll.u32 %v7584_v36, 16  ;;  %p7093_p2 = scmp.ne.s32.totalorder %s8893_s13, %s7092_s14  ;;  %s7187_s23 = smov [#allocation13]  }
  0xd4   : > { %5684 = vmatmul.mubr.msk.bf16.gmra.mrb[4].mxu0 %vm607_vm0, %v7535_v14  ;;  %v952_v15 = vrot.slane %v950_v12, 1  ;;  %v967_v31 = vsel %vm929_vm1, %v963_v28, %v966_v29  ;;  %v970_v35 = vor.u32 %v968_v32, %v966_v29  ;;  %v973_v37 = vrot.slane %v971_v34, 1  ;;  %s7096_s9 = sshll.u32 %s7187_s23, 4  ;;  %s7097_s9 = int_to_ptr.vmem [resolvable:$false] %s7096_s9 }
  0xd5   : > { %708 = vmatprep.mubr.bf16.mxu0 %v8961_v0  ;;  %v980_v44 = vrot.slane %v978_v41, 1  ;;  %v987_v52 = vrot.slane %v985_v49, 1  ;;  %v989_v55 = vshrl.u32 %v7584_v36, 16  ;;  %v992_v56 = vshll.u32 %v7591_v39, 16  ;;  %s8891_s10 = scalar_lea.hbm %s9053_s2, %s5969_s24  ;;  %p7094_p10 = pnand %p7093_p2, %p9054_p7 }
  0xd6   : > { %v953_v16 = vsel %vm929_vm1, %v949_v13, %v952_v15  ;;  %v956_v20 = vor.u32 %v954_v17, %v952_v15  ;;  %v974_v38 = vsel %vm929_vm1, %v970_v35, %v973_v37  ;;  %v977_v43 = vor.u32 %v975_v40, %v973_v37  ;;  %p7099_p11 = scmp.lt.s32.totalorder %s8893_s13, %s7097_s9 }
  0xd7   : > { %v984_v50 = vor.u32 %v982_v47, %v980_v44  ;;  %v991_v57 = vor.u32 %v989_v55, %v987_v52  ;;  %v994_v59 = vrot.slane %v992_v56, 1  ;;  %v996_v61 = vshrl.u32 %v7591_v39, 16  ;;  %p7095_p1 = pneg %p7094_p10 }
  0xd8   : > { %v960_v23 = vsel %vm929_vm1, %v956_v20, %v959_v22  ;;  %v981_v46 = vsel %vm929_vm1, %v977_v43, %v980_v44  ;;  %v999_v62 = vshll.u32 %v7598_v42, 16  ;;  %v1003_v3 = vshrl.u32 %v7598_v42, 16 }
  0xd9   : > { %v988_v53 = vsel %vm929_vm1, %v984_v50, %v987_v52  ;;  %v995_v60 = vsel %vm929_vm1, %v991_v57, %v994_v59  ;;  %v998_v63 = vor.u32 %v996_v61, %v994_v59  ;;  %v1006_v4 = vshll.u32 %v7605_v45, 16 }
  0xda   : > { %v1017_v15 = vshrl.u32 %v7612_v48, 16  ;;  %v1024_v22 = vshrl.u32 %v7619_v51, 16  ;;  %v1031_v29 = vshrl.u32 %v7626_v54, 16  ;;  %v1038_v37 = vshrl.u32 %v7634_v58, 16 }
  0xdb   : > { %v1008_v6 = vrot.slane %v1006_v4, 1  ;;  %v1388_v40 = vrot.slane %v7528_v8, 1  ;;  %v1389_v41 = vrot.slane %v7535_v14, 1  ;;  %v1391_v44 = vrot.slane %v7542_v18, 1 }
  0xdc   : > { %5685 = vmatmul.mubr.msk.bf16.gmra.mrb[8].mxu0 %vm607_vm0, %v7542_v18  ;;  %v1393_v47 = vrot.slane %v7549_v21, 1  ;;  %v1395_v14 = vrot.slane %v7556_v24, 1  ;;  %v1397_v18 = vrot.slane %v7563_v27, 1  ;;  %vm2625_vm5 = vcmask 1045504  }
  0xdd   : > { %718 = vmatprep.mubr.bf16.mxu0 %v8961_v0  ;;  %v1390_v43 = vsel %vm1387_vm2, %v1388_v40, %v1389_v41  ;;  %vm2927_vm6 = vcmask 1040384   ;;  %vm2928_vm7 = vcmask 1041408   ;;  %vm2902_vm8 = vcmask 416768  }
  0xde   : > { %v1394_v8 = vsel %vm1387_vm2, %v1391_v44, %v1393_v47  ;;  %v1396_v49 = vsel %vm1387_vm2, %v1393_v47, %v1395_v14  ;;  %v1398_v50 = vsel %vm1387_vm2, %v1395_v14, %v1397_v18  ;;  %vm4492_vm9 = vcmask 1047552  }
  0xdf   : > { %vm4488_vm10 = vcmask 646144   ;;  %vm5383_vm11 = vcmask 1043456   ;;  %vm7186_vm12 = vmmov 0   ;;  %vm5379_vm13 = vcmask 982016  }
  0xe0   : > { %vm5480_vm14 = vcmask 687104  }
  0xe4   : > { %5686 = vmatmul.mubr.msk.bf16.gmra.mrb[12].mxu0 %vm607_vm0, %v7549_v21  ;;  %v1399_v21 = vrot.slane %v7570_v30, 1 }
  0xe5   : > { %728 = vmatprep.mubr.bf16.mxu0 %v8961_v0 }
  0xe6   : > { %v1400_v52 = vsel %vm1387_vm2, %v1397_v18, %v1399_v21 }
  0xec   : > { %5687 = vmatmul.mubr.msk.bf16.gmra.mrb[16].mxu0 %vm607_vm0, %v7556_v24  ;;  %v1401_v24 = vrot.slane %v7577_v33, 1 }
  0xed   : > { %738 = vmatprep.mubr.bf16.mxu0 %v8961_v0 }
  0xf4   : > { %5688 = vmatmul.mubr.msk.bf16.gmra.mrb[20].mxu0 %vm607_vm0, %v7563_v27  ;;  %v1403_v27 = vrot.slane %v7584_v36, 1 }
  0xf5   : > { %748 = vmatprep.mubr.bf16.mxu0 %v8961_v0 }
  0xf6   : > { %v1404_v55 = vsel %vm1387_vm2, %v1401_v24, %v1403_v27 }
  0xfc   : > { %5689 = vmatmul.mubr.msk.bf16.gmra.mrb[24].mxu0 %vm607_vm0, %v7570_v30  ;;  %v1405_v30 = vrot.slane %v7591_v39, 1 }
  0xfd   : > { %758 = vmatprep.mubr.bf16.mxu0 %v8961_v0 }
  0xfe   : > { %v1406_v56 = vsel %vm1387_vm2, %v1403_v27, %v1405_v30 }
 0x104   : > { %5690 = vmatmul.mubr.msk.bf16.gmra.mrb[28].mxu0 %vm607_vm0, %v7577_v33  ;;  %v1407_v33 = vrot.slane %v7598_v42, 1 }
 0x105   : > { %768 = vmatprep.mubr.bf16.mxu0 %v8961_v0 }
 0x106   : > { %v1408_v57 = vsel %vm1387_vm2, %v1405_v30, %v1407_v33 }
 0x10c   : > { %5691 = vmatmul.mubr.msk.bf16.gmra.mrb[32].mxu0 %vm607_vm0, %v7584_v36  ;;  %v1409_v36 = vrot.slane %v7605_v45, 1 }
 0x10d   : > { %778 = vmatprep.mubr.bf16.mxu0 %v8961_v0 }
 0x10e   : > { %v1410_v59 = vsel %vm1387_vm2, %v1407_v33, %v1409_v36 }
 0x114   : > { %5692 = vmatmul.mubr.msk.bf16.gmra.mrb[36].mxu0 %vm607_vm0, %v7591_v39  ;;  %v1411_v39 = vrot.slane %v7612_v48, 1 }
 0x115   : > { %788 = vmatprep.mubr.bf16.mxu0 %v8961_v0 }
 0x11c   : > { %5693 = vmatmul.mubr.msk.bf16.gmra.mrb[40].mxu0 %vm607_vm0, %v7598_v42  ;;  %v1413_v42 = vrot.slane %v7619_v51, 1 }
 0x11d   : > { %798 = vmatprep.mubr.bf16.mxu0 %v8961_v0 }
 0x11e   : > { %v1414_v61 = vsel %vm1387_vm2, %v1411_v39, %v1413_v42 }
 0x124   : > { %5694 = vmatmul.mubr.msk.bf16.gmra.mrb[44].mxu0 %vm607_vm0, %v7605_v45 }
 0x125   : > { %808 = vmatprep.mubr.bf16.mxu0 %v8961_v0 }
 0x12c   : > { %5695 = vmatmul.mubr.msk.bf16.gmra.mrb[48].mxu0 %vm607_vm0, %v7612_v48 }
 0x12d   : > { %818 = vmatprep.mubr.bf16.mxu0 %v8961_v0 }
 0x134   : > { %5696 = vmatmul.mubr.msk.bf16.gmra.mrb[52].mxu0 %vm607_vm0, %v7619_v51 }
 0x135   : > { %828 = vmatprep.mubr.bf16.mxu0 %v8961_v0 }
 0x13c   : > { %5697 = vmatmul.mubr.msk.bf16.gmra.mrb[56].mxu0 %vm607_vm0, %v7626_v54 }
 0x13d   : > { %838 = vmatprep.mubr.bf16.mxu0 %v8961_v0 }
 0x144   : > { %5698 = vmatmul.mubr.msk.bf16.gmra.mrb[60].mxu0 %vm607_vm0, %v7634_v58 }
 0x145   : > { %1141 = vmatprep.mubr.bf16.mxu0 %v8961_v0 }
 0x14c   : > { %5703 = vmatmul.mubr.msk.bf16.vlgmr.msra.gmra.mrb[0].mxu0 %vm607_vm0, %v939_v1  ;;  %v1001_v1 = vrot.slane %v999_v62, 1 }
 0x14d   : > { %1151 = vmatprep.mubr.bf16.mxu0 %v8961_v0  ;;  %1488 = vmatpush1.bf16.msra.mxu0 %v6692_v2 }
 0x14e   : > { %1489 = vmatprep.subr.bf16.mxu0 %v6697_v5  ;;  %v1002_v2 = vsel %vm929_vm1, %v998_v63, %v1001_v1  ;;  %v1005_v5 = vor.u32 %v1003_v3, %v1001_v1 }
 0x150   : > { %v1009_v7 = vsel %vm929_vm1, %v1005_v5, %v1008_v6 }
 0x151   : > { %1490 = vmatpush1.bf16.msra.mxu0 %v6695_v9  ;;  %v1010_v9 = vshrl.u32 %v7605_v45, 16  ;;  %v1415_v45 = vrot.slane %v7626_v54, 1 }
 0x153   : > { %v1012_v11 = vor.u32 %v1010_v9, %v1008_v6  ;;  %v1416_v62 = vsel %vm1387_vm2, %v1413_v42, %v1415_v45 }
 0x154   : > { %5704 = vmatmul.mubr.msk.bf16.gmra.mrb[4].mxu0 %vm607_vm0, %v946_v10  ;;  %v1013_v10 = vshll.u32 %v7612_v48, 16  ;;  %v1417_v48 = vrot.slane %v7634_v58, 1 }
 0x155   : > { %1161 = vmatprep.mubr.bf16.mxu0 %v8961_v0 }
 0x156   : > { %v1015_v12 = vrot.slane %v1013_v10, 1  ;;  %v1418_v63 = vsel %vm1387_vm2, %v1415_v45, %v1417_v48 }
 0x158   : > { %v1016_v13 = vsel %vm929_vm1, %v1012_v11, %v1015_v12  ;;  %v1019_v17 = vor.u32 %v1017_v15, %v1015_v12 }
 0x15c   : > { %5705 = vmatmul.mubr.msk.bf16.gmra.mrb[8].mxu0 %vm607_vm0, %v953_v16  ;;  %v1020_v16 = vshll.u32 %v7619_v51, 16  ;;  %v850_v51 = vlaneseq }
 0x15d   : > { %1171 = vmatprep.mubr.bf16.mxu0 %v8961_v0 }
 0x15e   : > { %v1022_v19 = vrot.slane %v1020_v16, 1  ;;  %v7779_v1 = vshrl.u32 %v850_v51, 7 }
 0x160   : > { %v1023_v20 = vsel %vm929_vm1, %v1019_v17, %v1022_v19  ;;  %v1026_v25 = vor.u32 %v1024_v22, %v1022_v19  ;;  %9008 = vst [vmem:[#allocation19_spill] sm:$0xff] %v7779_v1  ;;  %v8959_v3 = vsub.s32 1, %v7779_v1 }
 0x164   : > { %5706 = vmatmul.mubr.msk.bf16.gmra.mrb[12].mxu0 %vm607_vm0, %v960_v23  ;;  %v1027_v23 = vshll.u32 %v7626_v54, 16  ;;  %v8960_v54 = vsub.s32 0, %v7779_v1 }
 0x165   : > { %1181 = vmatprep.mubr.bf16.mxu0 %v8961_v0 }
 0x166   : > { %v1029_v26 = vrot.slane %v1027_v23, 1 }
 0x168   : > { %v1030_v28 = vsel %vm929_vm1, %v1026_v25, %v1029_v26  ;;  %v1033_v32 = vor.u32 %v1031_v29, %v1029_v26 }
 0x16c   : > { %5707 = vmatmul.mubr.msk.bf16.gmra.mrb[16].mxu0 %vm607_vm0, %v967_v31  ;;  %v1034_v31 = vshll.u32 %v7634_v58, 16 }
 0x16d   : > { %1191 = vmatprep.mubr.bf16.mxu0 %v8961_v0 }
 0x16e   : > { %v1036_v34 = vrot.slane %v1034_v31, 1 }
 0x170   : > { %v1037_v35 = vsel %vm929_vm1, %v1033_v32, %v1036_v34 }
 0x174   : > { %5708 = vmatmul.mubr.msk.bf16.gmra.mrb[20].mxu0 %vm607_vm0, %v974_v38  ;;  %v1040_v38 = vor.u32 %v1038_v37, %v1036_v34 }
 0x175   : > { %1201 = vmatprep.mubr.bf16.mxu0 %v8961_v0 }
 0x17c   : > { %5709 = vmatmul.mubr.msk.bf16.gmra.mrb[24].mxu0 %vm607_vm0, %v981_v46  ;;  %v1392_v46 = vsel %vm1387_vm2, %v1389_v41, %v1391_v44 }
 0x17d   : > { %1211 = vmatprep.mubr.bf16.mxu0 %v8961_v0 }
 0x184   : > { %5710 = vmatmul.mubr.msk.bf16.gmra.mrb[28].mxu0 %vm607_vm0, %v988_v53  ;;  %v1402_v53 = vsel %vm1387_vm2, %v1399_v21, %v1401_v24 }
 0x185   : > { %1221 = vmatprep.mubr.bf16.mxu0 %v8961_v0 }
 0x18c   : > { %5711 = vmatmul.mubr.msk.bf16.gmra.mrb[32].mxu0 %vm607_vm0, %v995_v60  ;;  %v1412_v60 = vsel %vm1387_vm2, %v1409_v36, %v1411_v39 }
 0x18d   : > { %1231 = vmatprep.mubr.bf16.mxu0 %v8961_v0 }
 0x194   : > { %5712 = vmatmul.mubr.msk.bf16.gmra.mrb[36].mxu0 %vm607_vm0, %v1002_v2  ;;  %v566_v2 = vld [vmem:[%s8939_s4] sm:$0x3] }
 0x195   : > { %1241 = vmatprep.mubr.bf16.mxu0 %v8961_v0  ;;  %v7788_v58 = vrot.slane %v566_v2, %v8960_v54  ;;  %v7792_v4 = vrot.slane %v566_v2, %v8959_v3 }
 0x19c   : > { %5713 = vmatmul.mubr.msk.bf16.gmra.mrb[40].mxu0 %vm607_vm0, %v1009_v7 }
 0x19d   : > { %1251 = vmatprep.mubr.bf16.mxu0 %v8961_v0 }
 0x1a4   : > { %5714 = vmatmul.mubr.msk.bf16.gmra.mrb[44].mxu0 %vm607_vm0, %v1016_v13 }
 0x1a5   : > { %1261 = vmatprep.mubr.bf16.mxu0 %v8961_v0 }
 0x1ac   : > { %5715 = vmatmul.mubr.msk.bf16.gmra.mrb[48].mxu0 %vm607_vm0, %v1023_v20 }
 0x1ad   : > { %1271 = vmatprep.mubr.bf16.mxu0 %v8961_v0 }
 0x1b4   : > { %5716 = vmatmul.mubr.msk.bf16.gmra.mrb[52].mxu0 %vm607_vm0, %v1030_v28 }
 0x1b5   : > { %1281 = vmatprep.mubr.bf16.mxu0 %v8961_v0 }
 0x1bc   : > { %5717 = vmatmul.mubr.msk.bf16.gmra.mrb[56].mxu0 %vm607_vm0, %v1037_v35 }
 0x1bd   : > { %1291 = vmatprep.mubr.bf16.mxu0 %v8961_v0 }
 0x1c4   : > { %5718 = vmatmul.mubr.msk.bf16.gmra.mrb[60].mxu0 %vm607_vm0, %v1040_v38 }
 0x1c5   : > { %1519 = vmatprep.mubr.bf16.mxu0 %v8961_v0 }
 0x1cc   : > { %5723 = vmatmul.mubr.msk.bf16.vlgmr.msra.gmra.mrb[0].mxu0 %vm607_vm0, %v1390_v43 }
 0x1cd   : > { %1529 = vmatprep.mubr.bf16.mxu0 %v8961_v0 }
 0x1d4   : > { %5724 = vmatmul.mubr.msk.bf16.gmra.mrb[4].mxu0 %vm607_vm0, %v1392_v46 }
 0x1d5   : > { %1539 = vmatprep.mubr.bf16.mxu0 %v8961_v0 }
 0x1dc   : > { %5725 = vmatmul.mubr.msk.bf16.gmra.mrb[8].mxu0 %vm607_vm0, %v1394_v8 }
 0x1dd   : > { %1549 = vmatprep.mubr.bf16.mxu0 %v8961_v0 }
 0x1e4   : > { %5726 = vmatmul.mubr.msk.bf16.gmra.mrb[12].mxu0 %vm607_vm0, %v1396_v49 }
 0x1e5   : > { %1559 = vmatprep.mubr.bf16.mxu0 %v8961_v0 }
 0x1ec   : > { %5727 = vmatmul.mubr.msk.bf16.gmra.mrb[16].mxu0 %vm607_vm0, %v1398_v50 }
 0x1ed   : > { %1569 = vmatprep.mubr.bf16.mxu0 %v8961_v0 }
 0x1f4   : > { %5728 = vmatmul.mubr.msk.bf16.gmra.mrb[20].mxu0 %vm607_vm0, %v1400_v52 }
 0x1f5   : > { %1579 = vmatprep.mubr.bf16.mxu0 %v8961_v0 }
 0x1fc   : > { %5729 = vmatmul.mubr.msk.bf16.gmra.mrb[24].mxu0 %vm607_vm0, %v1402_v53 }
 0x1fd   : > { %1589 = vmatprep.mubr.bf16.mxu0 %v8961_v0 }
 0x204   : > { %5730 = vmatmul.mubr.msk.bf16.gmra.mrb[28].mxu0 %vm607_vm0, %v1404_v55 }
 0x205   : > { %1599 = vmatprep.mubr.bf16.mxu0 %v8961_v0 }
 0x20c   : > { %5731 = vmatmul.mubr.msk.bf16.gmra.mrb[32].mxu0 %vm607_vm0, %v1406_v56 }
 0x20d   : > { %1609 = vmatprep.mubr.bf16.mxu0 %v8961_v0 }
 0x214   : > { %5732 = vmatmul.mubr.msk.bf16.gmra.mrb[36].mxu0 %vm607_vm0, %v1408_v57 }
 0x215   : > { %1619 = vmatprep.mubr.bf16.mxu0 %v8961_v0 }
 0x21c   : > { %5733 = vmatmul.mubr.msk.bf16.gmra.mrb[40].mxu0 %vm607_vm0, %v1410_v59 }
 0x21d   : > { %1629 = vmatprep.mubr.bf16.mxu0 %v8961_v0 }
 0x224   : > { %5734 = vmatmul.mubr.msk.bf16.gmra.mrb[44].mxu0 %vm607_vm0, %v1412_v60 }
 0x225   : > { %1639 = vmatprep.mubr.bf16.mxu0 %v8961_v0 }
 0x22c   : > { %5735 = vmatmul.mubr.msk.bf16.gmra.mrb[48].mxu0 %vm607_vm0, %v1414_v61 }
 0x22d   : > { %1649 = vmatprep.mubr.bf16.mxu0 %v8961_v0 }
 0x234   : > { %5736 = vmatmul.mubr.msk.bf16.gmra.mrb[52].mxu0 %vm607_vm0, %v1416_v62 }
 0x235   : > { %1659 = vmatprep.mubr.bf16.mxu0 %v8961_v0 }
 0x23c   : > { %5737 = vmatmul.mubr.msk.bf16.gmra.mrb[56].mxu0 %vm607_vm0, %v1418_v63 }
 0x23d   : > { %1669 = vmatprep.mubr.bf16.mxu0 %v8961_v0 }
 0x244   : > { %5738 = vmatmul.mubr.msk.bf16.gmra.mrb[60].mxu0 %vm607_vm0, %v1417_v48 }
 0x29f   : > { %v1521_v5 = vpop.f32.mrb[0].mxu0 }
 0x2a0   : > { %v6025_v6 = vadd.f32 %v1521_v5, %v7788_v58  ;;  %v1523_v7 = vpop.f32.mrb[1].mxu0 }
 0x2a1   : > { %v6026_v9 = vadd.f32 %v1523_v7, %v7792_v4  ;;  %v1525_v10 = vpop.f32.mrb[2].mxu0 }
 0x2a2   : > { %v1744_v11 = vmax.f32 %v6025_v6, 0.0  ;;  %v6027_v12 = vadd.f32 %v1525_v10, %v7788_v58  ;;  %v1527_v13 = vpop.f32.mrb[3].mxu0 }
 0x2a3   : > { %v1745_v15 = vmax.f32 %v6026_v9, 0.0  ;;  %v6028_v16 = vadd.f32 %v1527_v13, %v7792_v4 }
 0x2a4   : > { %v1746_v17 = vmax.f32 %v6027_v12, 0.0  ;;  %v1873_v20 = vrot.slane %v1744_v11, 1 }
 0x2a5   : > { %v1747_v19 = vmax.f32 %v6028_v16, 0.0  ;;  %v1876_v23 = vrot.slane %v1745_v15, 1 }
 0x2a6   : > { %v1874_v22 = vrot.slane %v1746_v17, 1 }
 0x2a7   : > { %v1877_v25 = vrot.slane %v1747_v19, 1  ;;  %v1531_v26 = vpop.f32.mrb[4].mxu0 }
 0x2a8   : > { %v6029_v28 = vadd.f32 %v1531_v26, %v7788_v58  ;;  %v1533_v29 = vpop.f32.mrb[5].mxu0  ;;  %v1875_v31 = vsel %vm1387_vm2, %v1873_v20, %v1874_v22 }
 0x2a9   : > { %v6030_v32 = vadd.f32 %v1533_v29, %v7792_v4  ;;  %v1535_v34 = vpop.f32.mrb[6].mxu0  ;;  %v1878_v35 = vsel %vm1387_vm2, %v1876_v23, %v1877_v25  ;;  %v7802_v37 = vmax.f32 %v1744_v11, %v1875_v31 }
 0x2aa   : > { %v1748_v38 = vmax.f32 %v6029_v28, 0.0  ;;  %v6031_v40 = vadd.f32 %v1535_v34, %v7788_v58  ;;  %v1537_v41 = vpop.f32.mrb[7].mxu0  ;;  %v7805_v43 = vmax.f32 %v1745_v15, %v1878_v35 }
 0x2ab   : > { %v1749_v44 = vmax.f32 %v6030_v32, 0.0  ;;  %v6032_v46 = vadd.f32 %v1537_v41, %v7792_v4 }
 0x2ac   : > { %v1879_v47 = vrot.slane %v1748_v38, 1  ;;  %v1750_v8 = vmax.f32 %v6031_v40, 0.0  ;;  %v6440_v14 = vpack.i.bf16 %v7805_v43, %v7802_v37 }
 0x2ad   : > { %v1881_v49 = vrot.slane %v1749_v44, 1  ;;  %v1751_v18 = vmax.f32 %v6032_v46, 0.0 }
 0x2ae   : > { %v1883_v50 = vrot.slane %v1750_v8, 1  ;;  %6441 = vrot.lane.b32.xlu0 %v6440_v14, %s7183_s30  ;;  %v1880_v21 = vsel %vm1387_vm2, %v1874_v22, %v1879_v47 }
 0x2af   : > { %v1885_v52 = vrot.slane %v1751_v18, 1  ;;  %v1541_v24 = vpop.f32.mrb[8].mxu0  ;;  %v1882_v53 = vsel %vm1387_vm2, %v1877_v25, %v1881_v49  ;;  %v7813_v27 = vmax.f32 %v1746_v17, %v1880_v21 }
 0x2b0   : > { %v6033_v55 = vadd.f32 %v1541_v24, %v7788_v58  ;;  %v1543_v30 = vpop.f32.mrb[9].mxu0  ;;  %v7816_v56 = vmax.f32 %v1747_v19, %v1882_v53  ;;  %v1884_v33 = vsel %vm1387_vm2, %v1879_v47, %v1883_v50 }
 0x2b1   : > { %v6034_v57 = vadd.f32 %v1543_v30, %v7792_v4  ;;  %v1545_v36 = vpop.f32.mrb[10].mxu0  ;;  %v1886_v59 = vsel %vm1387_vm2, %v1881_v49, %v1885_v52  ;;  %v7821_v39 = vmax.f32 %v1748_v38, %v1884_v33 }
 0x2b2   : > { %v1752_v60 = vmax.f32 %v6033_v55, 0.0  ;;  %v6035_v42 = vadd.f32 %v1545_v36, %v7788_v58  ;;  %v1547_v61 = vpop.f32.mrb[11].mxu0  ;;  %v6445_v45 = vpack.i.bf16 %v7816_v56, %v7813_v27  ;;  %v7826_v62 = vmax.f32 %v1749_v44, %v1886_v59 }
 0x2b3   : > { %v1753_v48 = vmax.f32 %v6034_v57, 0.0  ;;  %v6036_v63 = vadd.f32 %v1547_v61, %v7792_v4 }
 0x2b4   : > { %v1887_v51 = vrot.slane %v1752_v60, 1  ;;  %v1754_v2 = vmax.f32 %v6035_v42, 0.0  ;;  %6446 = vrot.lane.b32.xlu0 %v6445_v45, %s7183_s30  ;;  %v6450_v5 = vpack.i.bf16 %v7826_v62, %v7821_v39 }
 0x2b5   : > { %v1889_v6 = vrot.slane %v1753_v48, 1  ;;  %v1755_v7 = vmax.f32 %v6036_v63, 0.0 }
 0x2b6   : > { %v1891_v9 = vrot.slane %v1754_v2, 1  ;;  %6451 = vrot.lane.b32.xlu1 %v6450_v5, %s7183_s30  ;;  %v1888_v10 = vsel %vm1387_vm2, %v1883_v50, %v1887_v51 }
 0x2b7   : > { %v1893_v11 = vrot.slane %v1755_v7, 1  ;;  %v1551_v12 = vpop.f32.mrb[12].mxu0  ;;  %v1890_v13 = vsel %vm1387_vm2, %v1885_v52, %v1889_v6  ;;  %v7835_v15 = vmax.f32 %v1750_v8, %v1888_v10 }
 0x2b8   : > { %v6037_v16 = vadd.f32 %v1551_v12, %v7788_v58  ;;  %v1553_v17 = vpop.f32.mrb[13].mxu0  ;;  %v7838_v19 = vmax.f32 %v1751_v18, %v1890_v13  ;;  %v1892_v20 = vsel %vm1387_vm2, %v1887_v51, %v1891_v9 }
 0x2b9   : > { %v6038_v22 = vadd.f32 %v1553_v17, %v7792_v4  ;;  %v1555_v23 = vpop.f32.mrb[14].mxu0  ;;  %v1894_v25 = vsel %vm1387_vm2, %v1889_v6, %v1893_v11  ;;  %v7843_v26 = vmax.f32 %v1752_v60, %v1892_v20 }
 0x2ba   : > { %v1756_v28 = vmax.f32 %v6037_v16, 0.0  ;;  %v6039_v29 = vadd.f32 %v1555_v23, %v7788_v58  ;;  %v1557_v31 = vpop.f32.mrb[15].mxu0  ;;  %v6455_v32 = vpack.i.bf16 %v7838_v19, %v7835_v15  ;;  %v7848_v34 = vmax.f32 %v1753_v48, %v1894_v25 }
 0x2bb   : > { %v1757_v35 = vmax.f32 %v6038_v22, 0.0  ;;  %v6040_v38 = vadd.f32 %v1557_v31, %v7792_v4 }
 0x2bc   : > { %v1895_v40 = vrot.slane %v1756_v28, 1  ;;  %v1758_v41 = vmax.f32 %v6039_v29, 0.0  ;;  %6456 = vrot.lane.b32.xlu1 %v6455_v32, %s7183_s30  ;;  %v6460_v44 = vpack.i.bf16 %v7848_v34, %v7843_v26 }
 0x2bd   : > { %v1897_v46 = vrot.slane %v1757_v35, 1  ;;  %v1759_v47 = vmax.f32 %v6040_v38, 0.0 }
 0x2be   : > { %v1899_v8 = vrot.slane %v1758_v41, 1  ;;  %6461 = vrot.lane.b32.xlu0 %v6460_v44, %s7183_s30  ;;  %v1896_v14 = vsel %vm1387_vm2, %v1891_v9, %v1895_v40 }
 0x2bf   : > { %v1901_v49 = vrot.slane %v1759_v47, 1  ;;  %v1561_v18 = vpop.f32.mrb[16].mxu0  ;;  %v1898_v50 = vsel %vm1387_vm2, %v1893_v11, %v1897_v46  ;;  %v7857_v21 = vmax.f32 %v1754_v2, %v1896_v14 }
 0x2c0   : > { %v6041_v52 = vadd.f32 %v1561_v18, %v7788_v58  ;;  %v1563_v24 = vpop.f32.mrb[17].mxu0  ;;  %v7860_v53 = vmax.f32 %v1755_v7, %v1898_v50  ;;  %v1900_v55 = vsel %vm1387_vm2, %v1895_v40, %v1899_v8 }
 0x2c1   : > { %v6042_v30 = vadd.f32 %v1563_v24, %v7792_v4  ;;  %v1565_v33 = vpop.f32.mrb[18].mxu0  ;;  %v1902_v57 = vsel %vm1387_vm2, %v1897_v46, %v1901_v49  ;;  %v7865_v36 = vmax.f32 %v1756_v28, %v1900_v55 }
 0x2c2   : > { %v1760_v59 = vmax.f32 %v6041_v52, 0.0  ;;  %v6043_v60 = vadd.f32 %v1565_v33, %v7788_v58  ;;  %v1567_v42 = vpop.f32.mrb[19].mxu0  ;;  %v6465_v61 = vpack.i.bf16 %v7860_v53, %v7857_v21  ;;  %v7870_v45 = vmax.f32 %v1757_v35, %v1902_v57 }
 0x2c3   : > { %v1761_v48 = vmax.f32 %v6042_v30, 0.0  ;;  %v6044_v63 = vadd.f32 %v1567_v42, %v7792_v4 }
 0x2c4   : > { %v1903_v51 = vrot.slane %v1760_v59, 1  ;;  %v1762_v2 = vmax.f32 %v6043_v60, 0.0  ;;  %6466 = vrot.lane.b32.xlu1 %v6465_v61, %s7183_s30  ;;  %v6470_v5 = vpack.i.bf16 %v7870_v45, %v7865_v36 }
 0x2c5   : > { %v1905_v6 = vrot.slane %v1761_v48, 1  ;;  %v1763_v7 = vmax.f32 %v6044_v63, 0.0 }
 0x2c6   : > { %v1907_v9 = vrot.slane %v1762_v2, 1  ;;  %6471 = vrot.lane.b32.xlu0 %v6470_v5, %s7183_s30  ;;  %v1904_v10 = vsel %vm1387_vm2, %v1899_v8, %v1903_v51 }
 0x2c7   : > { %v1909_v11 = vrot.slane %v1763_v7, 1  ;;  %v1571_v12 = vpop.f32.mrb[20].mxu0  ;;  %v1906_v13 = vsel %vm1387_vm2, %v1901_v49, %v1905_v6  ;;  %v7879_v16 = vmax.f32 %v1758_v41, %v1904_v10 }
 0x2c8   : > { %v6045_v17 = vadd.f32 %v1571_v12, %v7788_v58  ;;  %v1573_v20 = vpop.f32.mrb[21].mxu0  ;;  %v7882_v22 = vmax.f32 %v1759_v47, %v1906_v13  ;;  %v1908_v23 = vsel %vm1387_vm2, %v1903_v51, %v1907_v9 }
 0x2c9   : > { %v6046_v25 = vadd.f32 %v1573_v20, %v7792_v4  ;;  %v1575_v28 = vpop.f32.mrb[22].mxu0  ;;  %v1910_v29 = vsel %vm1387_vm2, %v1905_v6, %v1909_v11  ;;  %v7887_v31 = vmax.f32 %v1760_v59, %v1908_v23 }
 0x2ca   : > { %v1764_v32 = vmax.f32 %v6045_v17, 0.0  ;;  %v6047_v35 = vadd.f32 %v1575_v28, %v7788_v58  ;;  %v1577_v38 = vpop.f32.mrb[23].mxu0  ;;  %v6475_v40 = vpack.i.bf16 %v7882_v22, %v7879_v16  ;;  %v7892_v41 = vmax.f32 %v1761_v48, %v1910_v29 }
 0x2cb   : > { %v1765_v44 = vmax.f32 %v6046_v25, 0.0  ;;  %v6048_v46 = vadd.f32 %v1577_v38, %v7792_v4 }
 0x2cc   : > { %v1911_v47 = vrot.slane %v1764_v32, 1  ;;  %v1766_v8 = vmax.f32 %v6047_v35, 0.0  ;;  %6476 = vrot.lane.b32.xlu1 %v6475_v40, %s7183_s30  ;;  %v6480_v14 = vpack.i.bf16 %v7892_v41, %v7887_v31 }
 0x2cd   : > { %v1913_v49 = vrot.slane %v1765_v44, 1  ;;  %v1767_v18 = vmax.f32 %v6048_v46, 0.0 }
 0x2ce   : > { %v1915_v50 = vrot.slane %v1766_v8, 1  ;;  %6481 = vrot.lane.b32.xlu0 %v6480_v14, %s7183_s30  ;;  %v1912_v52 = vsel %vm1387_vm2, %v1907_v9, %v1911_v47 }
 0x2cf   : > { %v1917_v24 = vrot.slane %v1767_v18, 1  ;;  %v1581_v55 = vpop.f32.mrb[24].mxu0  ;;  %v1914_v30 = vsel %vm1387_vm2, %v1909_v11, %v1913_v49  ;;  %v7901_v33 = vmax.f32 %v1762_v2, %v1912_v52 }
 0x2d0   : > { %v6049_v57 = vadd.f32 %v1581_v55, %v7788_v58  ;;  %v1583_v59 = vpop.f32.mrb[25].mxu0  ;;  %v7904_v60 = vmax.f32 %v1763_v7, %v1914_v30  ;;  %v1916_v42 = vsel %vm1387_vm2, %v1911_v47, %v1915_v50 }
 0x2d1   : > { %v6050_v61 = vadd.f32 %v1583_v59, %v7792_v4  ;;  %v1585_v48 = vpop.f32.mrb[26].mxu0  ;;  %v1918_v63 = vsel %vm1387_vm2, %v1913_v49, %v1917_v24  ;;  %v7909_v51 = vmax.f32 %v1764_v32, %v1916_v42 }
 0x2d2   : > { %v1768_v5 = vmax.f32 %v6049_v57, 0.0  ;;  %v6051_v6 = vadd.f32 %v1585_v48, %v7788_v58  ;;  %v1587_v9 = vpop.f32.mrb[27].mxu0  ;;  %v6485_v2 = vpack.i.bf16 %v7904_v60, %v7901_v33  ;;  %v7914_v10 = vmax.f32 %v1765_v44, %v1918_v63 }
 0x2d3   : > { %v1769_v7 = vmax.f32 %v6050_v61, 0.0  ;;  %v6052_v11 = vadd.f32 %v1587_v9, %v7792_v4 }
 0x2d4   : > { %v1919_v12 = vrot.slane %v1768_v5, 1  ;;  %v1770_v13 = vmax.f32 %v6051_v6, 0.0  ;;  %6486 = vrot.lane.b32.xlu1 %v6485_v2, %s7183_s30  ;;  %v6490_v17 = vpack.i.bf16 %v7914_v10, %v7909_v51 }
 0x2d5   : > { %v1921_v20 = vrot.slane %v1769_v7, 1  ;;  %v1771_v23 = vmax.f32 %v6052_v11, 0.0 }
 0x2d6   : > { %v1923_v25 = vrot.slane %v1770_v13, 1  ;;  %6491 = vrot.lane.b32.xlu0 %v6490_v17, %s7183_s30  ;;  %v1920_v28 = vsel %vm1387_vm2, %v1915_v50, %v1919_v12 }
 0x2d7   : > { %v1925_v29 = vrot.slane %v1771_v23, 1  ;;  %v1591_v32 = vpop.f32.mrb[28].mxu0  ;;  %v1922_v35 = vsel %vm1387_vm2, %v1917_v24, %v1921_v20  ;;  %v7923_v38 = vmax.f32 %v1766_v8, %v1920_v28 }
 0x2d8   : > { %v6053_v40 = vadd.f32 %v1591_v32, %v7788_v58  ;;  %v1593_v44 = vpop.f32.mrb[29].mxu0  ;;  %v7926_v46 = vmax.f32 %v1767_v18, %v1922_v35  ;;  %v1924_v47 = vsel %vm1387_vm2, %v1919_v12, %v1923_v25 }
 0x2d9   : > { %v6054_v14 = vadd.f32 %v1593_v44, %v7792_v4  ;;  %v1595_v49 = vpop.f32.mrb[30].mxu0  ;;  %v1926_v52 = vsel %vm1387_vm2, %v1921_v20, %v1925_v29  ;;  %v7931_v55 = vmax.f32 %v1768_v5, %v1924_v47 }
 0x2da   : > { %v1772_v50 = vmax.f32 %v6053_v40, 0.0  ;;  %v6055_v30 = vadd.f32 %v1595_v49, %v7788_v58  ;;  %v1597_v24 = vpop.f32.mrb[31].mxu0  ;;  %v6495_v8 = vpack.i.bf16 %v7926_v46, %v7923_v38  ;;  %v7936_v57 = vmax.f32 %v1769_v7, %v1926_v52 }
 0x2db   : > { %v1773_v18 = vmax.f32 %v6054_v14, 0.0  ;;  %v6056_v59 = vadd.f32 %v1597_v24, %v7792_v4 }
 0x2dc   : > { %v1927_v42 = vrot.slane %v1772_v50, 1  ;;  %v1774_v61 = vmax.f32 %v6055_v30, 0.0  ;;  %6496 = vrot.lane.b32.xlu1 %v6495_v8, %s7183_s30  ;;  %v6500_v48 = vpack.i.bf16 %v7936_v57, %v7931_v55 }
 0x2dd   : > { %v1929_v63 = vrot.slane %v1773_v18, 1  ;;  %v1775_v5 = vmax.f32 %v6056_v59, 0.0 }
 0x2de   : > { %v1931_v6 = vrot.slane %v1774_v61, 1  ;;  %6501 = vrot.lane.b32.xlu0 %v6500_v48, %s7183_s30  ;;  %v1928_v9 = vsel %vm1387_vm2, %v1923_v25, %v1927_v42 }
 0x2df   : > { %v1933_v2 = vrot.slane %v1775_v5, 1  ;;  %v1601_v7 = vpop.f32.mrb[32].mxu0  ;;  %v1930_v11 = vsel %vm1387_vm2, %v1925_v29, %v1929_v63  ;;  %v7945_v12 = vmax.f32 %v1770_v13, %v1928_v9 }
 0x2e0   : > { %v6057_v17 = vadd.f32 %v1601_v7, %v7788_v58  ;;  %v1603_v20 = vpop.f32.mrb[33].mxu0  ;;  %v7948_v28 = vmax.f32 %v1771_v23, %v1930_v11  ;;  %v1932_v32 = vsel %vm1387_vm2, %v1927_v42, %v1931_v6 }
 0x2e1   : > { %v6058_v35 = vadd.f32 %v1603_v20, %v7792_v4  ;;  %v1605_v40 = vpop.f32.mrb[34].mxu0  ;;  %v1934_v44 = vsel %vm1387_vm2, %v1929_v63, %v1933_v2  ;;  %v7953_v47 = vmax.f32 %v1772_v50, %v1932_v32 }
 0x2e2   : > { %v1776_v25 = vmax.f32 %v6057_v17, 0.0  ;;  %v6059_v14 = vadd.f32 %v1605_v40, %v7788_v58  ;;  %v1607_v29 = vpop.f32.mrb[35].mxu0  ;;  %v6505_v13 = vpack.i.bf16 %v7948_v28, %v7945_v12  ;;  %v7958_v49 = vmax.f32 %v1773_v18, %v1934_v44 }
 0x2e3   : > { %v1777_v23 = vmax.f32 %v6058_v35, 0.0  ;;  %v6060_v52 = vadd.f32 %v1607_v29, %v7792_v4 }
 0x2e4   : > { %v1935_v30 = vrot.slane %v1776_v25, 1  ;;  %v1778_v24 = vmax.f32 %v6059_v14, 0.0  ;;  %6506 = vrot.lane.b32.xlu1 %v6505_v13, %s7183_s30  ;;  %v6510_v50 = vpack.i.bf16 %v7958_v49, %v7953_v47 }
 0x2e5   : > { %v1937_v8 = vrot.slane %v1777_v23, 1  ;;  %v1779_v59 = vmax.f32 %v6060_v52, 0.0 }
 0x2e6   : > { %v1939_v42 = vrot.slane %v1778_v24, 1  ;;  %6511 = vrot.lane.b32.xlu0 %v6510_v50, %s7183_s30  ;;  %v1936_v48 = vsel %vm1387_vm2, %v1931_v6, %v1935_v30 }
 0x2e7   : > { %v1941_v63 = vrot.slane %v1779_v59, 1  ;;  %v1611_v18 = vpop.f32.mrb[36].mxu0  ;;  %v1938_v9 = vsel %vm1387_vm2, %v1933_v2, %v1937_v8  ;;  %v7967_v7 = vmax.f32 %v1774_v61, %v1936_v48 }
 0x2e8   : > { %v6061_v11 = vadd.f32 %v1611_v18, %v7788_v58  ;;  %v1613_v17 = vpop.f32.mrb[37].mxu0  ;;  %v7970_v20 = vmax.f32 %v1775_v5, %v1938_v9  ;;  %v1940_v32 = vsel %vm1387_vm2, %v1935_v30, %v1939_v42 }
 0x2e9   : > { %v6062_v35 = vadd.f32 %v1613_v17, %v7792_v4  ;;  %v1615_v40 = vpop.f32.mrb[38].mxu0  ;;  %v1942_v44 = vsel %vm1387_vm2, %v1937_v8, %v1941_v63  ;;  %v7975_v14 = vmax.f32 %v1776_v25, %v1940_v32 }
 0x2ea   : > { %v1780_v6 = vmax.f32 %v6061_v11, 0.0  ;;  %v6063_v29 = vadd.f32 %v1615_v40, %v7788_v58  ;;  %v1617_v2 = vpop.f32.mrb[39].mxu0  ;;  %v6515_v61 = vpack.i.bf16 %v7970_v20, %v7967_v7  ;;  %v7980_v13 = vmax.f32 %v1777_v23, %v1942_v44 }
 0x2eb   : > { %v1781_v5 = vmax.f32 %v6062_v35, 0.0  ;;  %v6064_v52 = vadd.f32 %v1617_v2, %v7792_v4 }
 0x2ec   : > { %v1943_v30 = vrot.slane %v1780_v6, 1  ;;  %v1782_v50 = vmax.f32 %v6063_v29, 0.0  ;;  %6516 = vrot.lane.b32.xlu1 %v6515_v61, %s7183_s30  ;;  %v6520_v25 = vpack.i.bf16 %v7980_v13, %v7975_v14 }
 0x2ed   : > { %v1945_v8 = vrot.slane %v1781_v5, 1  ;;  %v1783_v48 = vmax.f32 %v6064_v52, 0.0 }
 0x2ee   : > { %v1947_v18 = vrot.slane %v1782_v50, 1  ;;  %6521 = vrot.lane.b32.xlu0 %v6520_v25, %s7183_s30  ;;  %v1944_v9 = vsel %vm1387_vm2, %v1939_v42, %v1943_v30 }
 0x2ef   : > { %v1949_v11 = vrot.slane %v1783_v48, 1  ;;  %v1621_v23 = vpop.f32.mrb[40].mxu0  ;;  %v1946_v17 = vsel %vm1387_vm2, %v1941_v63, %v1945_v8  ;;  %v7989_v32 = vmax.f32 %v1778_v24, %v1944_v9 }
 0x2f0   : > { %v6065_v35 = vadd.f32 %v1621_v23, %v7788_v58  ;;  %v1623_v40 = vpop.f32.mrb[41].mxu0  ;;  %v7992_v44 = vmax.f32 %v1779_v59, %v1946_v17  ;;  %v1948_v29 = vsel %vm1387_vm2, %v1943_v30, %v1947_v18 }
 0x2f1   : > { %v6066_v2 = vadd.f32 %v1623_v40, %v7792_v4  ;;  %v1625_v61 = vpop.f32.mrb[42].mxu0  ;;  %v1950_v52 = vsel %vm1387_vm2, %v1945_v8, %v1949_v11  ;;  %v7997_v25 = vmax.f32 %v1780_v6, %v1948_v29 }
 0x2f2   : > { %v1784_v42 = vmax.f32 %v6065_v35, 0.0  ;;  %v6067_v3 = vadd.f32 %v1625_v61, %v7788_v58  ;;  %v1627_v63 = vpop.f32.mrb[43].mxu0  ;;  %v6525_v24 = vpack.i.bf16 %v7992_v44, %v7989_v32  ;;  %v8002_v9 = vmax.f32 %v1781_v5, %v1950_v52 }
 0x2f3   : > { %9009 = vst [vmem:[#allocation20_spill] sm:$0xff] %v7997_v25  ;;  %v1785_v59 = vmax.f32 %v6066_v2, 0.0  ;;  %v6068_v23 = vadd.f32 %v1627_v63, %v7792_v4 }
 0x2f4   : > { %v1951_v30 = vrot.slane %v1784_v42, 1  ;;  %v1786_v17 = vmax.f32 %v6067_v3, 0.0  ;;  %6526 = vrot.lane.b32.xlu1 %v6525_v24, %s7183_s30  ;;  %v6530_v6 = vpack.i.bf16 %v8002_v9, %v7997_v25 }
 0x2f5   : > { %v1953_v8 = vrot.slane %v1785_v59, 1  ;;  %v1787_v35 = vmax.f32 %v6068_v23, 0.0 }
 0x2f6   : > { %v1955_v40 = vrot.slane %v1786_v17, 1  ;;  %6531 = vrot.lane.b32.xlu0 %v6530_v6, %s7183_s30  ;;  %v1952_v29 = vsel %vm1387_vm2, %v1947_v18, %v1951_v30 }
 0x2f7   : > { %v1957_v61 = vrot.slane %v1787_v35, 1  ;;  %v1631_v5 = vpop.f32.mrb[44].mxu0  ;;  %v1954_v2 = vsel %vm1387_vm2, %v1949_v11, %v1953_v8  ;;  %v8011_v52 = vmax.f32 %v1782_v50, %v1952_v29 }
 0x2f8   : > { %v6069_v3 = vadd.f32 %v1631_v5, %v7788_v58  ;;  %v1633_v63 = vpop.f32.mrb[45].mxu0  ;;  %v8014_v24 = vmax.f32 %v1783_v48, %v1954_v2  ;;  %v1956_v54 = vsel %vm1387_vm2, %v1951_v30, %v1955_v40 }
 0x2f9   : > { %9010 = vst [vmem:[#allocation21_spill] sm:$0xff] %v8011_v52  ;;  %v6070_v23 = vadd.f32 %v1633_v63, %v7792_v4  ;;  %v1635_v0 = vpop.f32.mrb[46].mxu0  ;;  %v1958_v6 = vsel %vm1387_vm2, %v1953_v8, %v1957_v61  ;;  %v8019_v1 = vmax.f32 %v1784_v42, %v1956_v54 }
 0x2fa   : > { %9011 = vst [vmem:[#allocation22_spill] sm:$0xff] %v8014_v24  ;;  %v1788_v18 = vmax.f32 %v6069_v3, 0.0  ;;  %v6071_v25 = vadd.f32 %v1635_v0, %v7788_v58  ;;  %v1637_v11 = vpop.f32.mrb[47].mxu0  ;;  %v6535_v50 = vpack.i.bf16 %v8014_v24, %v8011_v52  ;;  %v8024_v29 = vmax.f32 %v1785_v59, %v1958_v6 }
 0x2fb   : > { %9012 = vst [vmem:[#allocation23_spill] sm:$0xff] %v8019_v1  ;;  %v1789_v48 = vmax.f32 %v6070_v23, 0.0  ;;  %v6072_v5 = vadd.f32 %v1637_v11, %v7792_v4 }
 0x2fc   : > { %9013 = vst [vmem:[#allocation24_spill] sm:$0xff] %v8024_v29  ;;  %v1959_v30 = vrot.slane %v1788_v18, 1  ;;  %v1790_v2 = vmax.f32 %v6071_v25, 0.0  ;;  %6536 = vrot.lane.b32.xlu1 %v6535_v50, %s7183_s30  ;;  %v6540_v54 = vpack.i.bf16 %v8024_v29, %v8019_v1 }
 0x2fd   : > { %v1961_v42 = vrot.slane %v1789_v48, 1  ;;  %v1791_v8 = vmax.f32 %v6072_v5, 0.0 }
 0x2fe   : > { %v1963_v3 = vrot.slane %v1790_v2, 1  ;;  %6541 = vrot.lane.b32.xlu0 %v6540_v54, %s7183_s30  ;;  %v1960_v0 = vsel %vm1387_vm2, %v1955_v40, %v1959_v30 }
 0x2ff   : > { %v1965_v63 = vrot.slane %v1791_v8, 1  ;;  %v1641_v59 = vpop.f32.mrb[48].mxu0  ;;  %v1962_v23 = vsel %vm1387_vm2, %v1957_v61, %v1961_v42  ;;  %v8033_v6 = vmax.f32 %v1786_v17, %v1960_v0 }
 0x300   : > { %v6073_v25 = vadd.f32 %v1641_v59, %v7788_v58  ;;  %v1643_v11 = vpop.f32.mrb[49].mxu0  ;;  %v8036_v50 = vmax.f32 %v1787_v35, %v1962_v23  ;;  %v1964_v1 = vsel %vm1387_vm2, %v1959_v30, %v1963_v3 }
 0x301   : > { %9014 = vst [vmem:[#allocation25_spill] sm:$0xff] %v8033_v6  ;;  %v6074_v5 = vadd.f32 %v1643_v11, %v7792_v4  ;;  %v1645_v29 = vpop.f32.mrb[50].mxu0  ;;  %v1966_v54 = vsel %vm1387_vm2, %v1961_v42, %v1965_v63  ;;  %v8041_v52 = vmax.f32 %v1788_v18, %v1964_v1 }
 0x302   : > { %9015 = vst [vmem:[#allocation26_spill] sm:$0xff] %v8036_v50  ;;  %v1792_v40 = vmax.f32 %v6073_v25, 0.0  ;;  %v6075_v24 = vadd.f32 %v1645_v29, %v7788_v58  ;;  %v1647_v61 = vpop.f32.mrb[51].mxu0  ;;  %v6545_v17 = vpack.i.bf16 %v8036_v50, %v8033_v6  ;;  %v8046_v0 = vmax.f32 %v1789_v48, %v1966_v54 }
 0x303   : > { %9016 = vst [vmem:[#allocation27_spill] sm:$0xff] %v8041_v52  ;;  %v1793_v35 = vmax.f32 %v6074_v5, 0.0  ;;  %v6076_v59 = vadd.f32 %v1647_v61, %v7792_v4 }
 0x304   : > { %9017 = vst [vmem:[#allocation28_spill] sm:$0xff] %v8046_v0  ;;  %v1967_v30 = vrot.slane %v1792_v40, 1  ;;  %v1794_v23 = vmax.f32 %v6075_v24, 0.0  ;;  %6546 = vrot.lane.b32.xlu1 %v6545_v17, %s7183_s30  ;;  %v6550_v1 = vpack.i.bf16 %v8046_v0, %v8041_v52 }
 0x305   : > { %v1969_v18 = vrot.slane %v1793_v35, 1  ;;  %v1795_v42 = vmax.f32 %v6076_v59, 0.0 }
 0x306   : > { %v1971_v25 = vrot.slane %v1794_v23, 1  ;;  %6551 = vrot.lane.b32.xlu0 %v6550_v1, %s7183_s30  ;;  %v1968_v29 = vsel %vm1387_vm2, %v1963_v3, %v1967_v30 }
 0x307   : > { %v1973_v11 = vrot.slane %v1795_v42, 1  ;;  %v1651_v48 = vpop.f32.mrb[52].mxu0  ;;  %v1970_v5 = vsel %vm1387_vm2, %v1965_v63, %v1969_v18  ;;  %v8055_v54 = vmax.f32 %v1790_v2, %v1968_v29 }
 0x308   : > { %v6077_v24 = vadd.f32 %v1651_v48, %v7788_v58  ;;  %v1653_v61 = vpop.f32.mrb[53].mxu0  ;;  %v8058_v17 = vmax.f32 %v1791_v8, %v1970_v5  ;;  %v1972_v52 = vsel %vm1387_vm2, %v1967_v30, %v1971_v25 }
 0x309   : > { %9018 = vst [vmem:[#allocation29_spill] sm:$0xff] %v8055_v54  ;;  %v6078_v59 = vadd.f32 %v1653_v61, %v7792_v4  ;;  %v1655_v0 = vpop.f32.mrb[54].mxu0  ;;  %v1974_v1 = vsel %vm1387_vm2, %v1969_v18, %v1973_v11  ;;  %v8063_v6 = vmax.f32 %v1792_v40, %v1972_v52 }
 0x30a   : > { %9019 = vst [vmem:[#allocation30_spill] sm:$0xff] %v8058_v17  ;;  %v1796_v3 = vmax.f32 %v6077_v24, 0.0  ;;  %v6079_v50 = vadd.f32 %v1655_v0, %v7788_v58  ;;  %v1657_v63 = vpop.f32.mrb[55].mxu0  ;;  %v6555_v2 = vpack.i.bf16 %v8058_v17, %v8055_v54  ;;  %v8068_v29 = vmax.f32 %v1793_v35, %v1974_v1 }
 0x30b   : > { %9020 = vst [vmem:[#allocation31_spill] sm:$0xff] %v8063_v6  ;;  %v1797_v8 = vmax.f32 %v6078_v59, 0.0  ;;  %v6080_v48 = vadd.f32 %v1657_v63, %v7792_v4 }
 0x30c   : > { %9021 = vst [vmem:[#allocation32_spill] sm:$0xff] %v8068_v29  ;;  %v1975_v30 = vrot.slane %v1796_v3, 1  ;;  %v1798_v5 = vmax.f32 %v6079_v50, 0.0  ;;  %6556 = vrot.lane.b32.xlu1 %v6555_v2, %s7183_s30  ;;  %v6560_v52 = vpack.i.bf16 %v8068_v29, %v8063_v6 }
 0x30d   : > { %v1977_v40 = vrot.slane %v1797_v8, 1  ;;  %v1799_v18 = vmax.f32 %v6080_v48, 0.0 }
 0x30e   : > { %v1979_v24 = vrot.slane %v1798_v5, 1  ;;  %6561 = vrot.lane.b32.xlu0 %v6560_v52, %s7183_s30  ;;  %v1976_v0 = vsel %vm1387_vm2, %v1971_v25, %v1975_v30 }
 0x30f   : > { %v1981_v61 = vrot.slane %v1799_v18, 1  ;;  %v1661_v35 = vpop.f32.mrb[56].mxu0  ;;  %v1978_v59 = vsel %vm1387_vm2, %v1973_v11, %v1977_v40  ;;  %v8077_v1 = vmax.f32 %v1794_v23, %v1976_v0 }
 0x310   : > { %v6081_v50 = vadd.f32 %v1661_v35, %v7788_v58  ;;  %v1663_v63 = vpop.f32.mrb[57].mxu0  ;;  %v8080_v2 = vmax.f32 %v1795_v42, %v1978_v59  ;;  %v1980_v6 = vsel %vm1387_vm2, %v1975_v30, %v1979_v24 }
 0x311   : > { %9022 = vst [vmem:[#allocation33_spill] sm:$0xff] %v8077_v1  ;;  %v6082_v48 = vadd.f32 %v1663_v63, %v7792_v4  ;;  %v1665_v29 = vpop.f32.mrb[58].mxu0  ;;  %v1982_v52 = vsel %vm1387_vm2, %v1977_v40, %v1981_v61  ;;  %v8085_v54 = vmax.f32 %v1796_v3, %v1980_v6 }
 0x312   : > { %9023 = vst [vmem:[#allocation34_spill] sm:$0xff] %v8080_v2  ;;  %v1800_v25 = vmax.f32 %v6081_v50, 0.0  ;;  %v6083_v17 = vadd.f32 %v1665_v29, %v7788_v58  ;;  %v1667_v11 = vpop.f32.mrb[59].mxu0  ;;  %v6565_v23 = vpack.i.bf16 %v8080_v2, %v8077_v1  ;;  %v8090_v0 = vmax.f32 %v1797_v8, %v1982_v52 }
 0x313   : > { %9024 = vst [vmem:[#allocation35_spill] sm:$0xff] %v8085_v54  ;;  %v1801_v42 = vmax.f32 %v6082_v48, 0.0  ;;  %v6084_v35 = vadd.f32 %v1667_v11, %v7792_v4 }
 0x314   : > { %9025 = vst [vmem:[#allocation36_spill] sm:$0xff] %v8090_v0  ;;  %v1983_v30 = vrot.slane %v1800_v25, 1  ;;  %v1802_v59 = vmax.f32 %v6083_v17, 0.0  ;;  %6566 = vrot.lane.b32.xlu1 %v6565_v23, %s7183_s30  ;;  %v6570_v6 = vpack.i.bf16 %v8090_v0, %v8085_v54 }
 0x315   : > { %v1985_v3 = vrot.slane %v1801_v42, 1  ;;  %v1803_v40 = vmax.f32 %v6084_v35, 0.0 }
 0x316   : > { %v1987_v50 = vrot.slane %v1802_v59, 1  ;;  %6571 = vrot.lane.b32.xlu0 %v6570_v6, %s7183_s30  ;;  %v1984_v29 = vsel %vm1387_vm2, %v1979_v24, %v1983_v30 }
 0x317   : > { %v1989_v63 = vrot.slane %v1803_v40, 1  ;;  %v1671_v8 = vpop.f32.mrb[60].mxu0  ;;  %v1986_v48 = vsel %vm1387_vm2, %v1981_v61, %v1985_v3  ;;  %v8099_v52 = vmax.f32 %v1798_v5, %v1984_v29 }
 0x318   : > { %v6085_v17 = vadd.f32 %v1671_v8, %v7788_v58  ;;  %v1673_v11 = vpop.f32.mrb[61].mxu0  ;;  %v8102_v23 = vmax.f32 %v1799_v18, %v1986_v48  ;;  %v1988_v54 = vsel %vm1387_vm2, %v1983_v30, %v1987_v50 }
 0x319   : > { %v6086_v35 = vadd.f32 %v1673_v11, %v7792_v4  ;;  %v1675_v0 = vpop.f32.mrb[62].mxu0  ;;  %v1990_v6 = vsel %vm1387_vm2, %v1985_v3, %v1989_v63  ;;  %v8107_v1 = vmax.f32 %v1800_v25, %v1988_v54 }
 0x31a   : > { %v1804_v24 = vmax.f32 %v6085_v17, 0.0  ;;  %v6087_v2 = vadd.f32 %v1675_v0, %v7788_v58  ;;  %v1677_v61 = vpop.f32.mrb[63].mxu0  ;;  %v6575_v5 = vpack.i.bf16 %v8102_v23, %v8099_v52  ;;  %v8112_v29 = vmax.f32 %v1801_v42, %v1990_v6 }
 0x31b   : > { %v1805_v18 = vmax.f32 %v6086_v35, 0.0  ;;  %v6088_v8 = vadd.f32 %v1677_v61, %v7792_v4 }
 0x31c   : > { %v1991_v30 = vrot.slane %v1804_v24, 1  ;;  %v1806_v48 = vmax.f32 %v6087_v2, 0.0  ;;  %6576 = vrot.lane.b32.xlu1 %v6575_v5, %s7183_s30  ;;  %v6580_v54 = vpack.i.bf16 %v8112_v29, %v8107_v1 }
 0x31d   : > { %v1993_v25 = vrot.slane %v1805_v18, 1  ;;  %v1807_v3 = vmax.f32 %v6088_v8, 0.0 }
 0x31e   : > { %v1995_v17 = vrot.slane %v1806_v48, 1  ;;  %6581 = vrot.lane.b32.xlu0 %v6580_v54, %s7183_s30  ;;  %v1992_v58 = vsel %vm1387_vm2, %v1987_v50, %v1991_v30 }
 0x31f   : > { %v1997_v0 = vrot.slane %v1807_v3, 1  ;;  %v1994_v42 = vsel %vm1387_vm2, %v1989_v63, %v1993_v25  ;;  %v8121_v11 = vmax.f32 %v1802_v59, %v1992_v58 }
 0x320   : > { %v6442_v4 = vpop.permute.xlu0 %6441  ;;  %v8123_v35 = vmax.f32 %v1803_v40, %v1994_v42  ;;  %v1996_v2 = vsel %vm1387_vm2, %v1991_v30, %v1995_v17  ;;  %v8126_v6 = vmax.f32 %v1806_v48, %v1995_v17  ;;  %v6700_v30 = vld [vmem:[%s8936_s1 + $0x4] ss:$8 sps:$4 sm:$0xff]  }
 0x321   : > { %v1998_v61 = vsel %vm1387_vm2, %v1993_v25, %v1997_v0  ;;  %v8129_v5 = vmax.f32 %v1807_v3, %v1997_v0  ;;  %v8133_v50 = vmax.f32 %v1804_v24, %v1996_v2  ;;  %v6444_v59 = vunpack.i.h.bf16 %v6442_v4  ;;  %5755 = vmatprep.mubr.msk.bf16.mxu0 %vm2600_vm4, %v6700_v30 }
 0x322   : > { %9026 = vst [vmem:[#allocation37_spill] sm:$0xff] %v8126_v6  ;;  %v6585_v8 = vpack.i.bf16 %v8123_v35, %v8121_v11  ;;  %v8135_v54 = vmax.f32 %v1805_v18, %v1998_v61  ;;  %v6443_v63 = vunpack.i.l.bf16 %v6442_v4 }
 0x323   : > { %v6595_v24 = vpack.i.bf16 %v8129_v5, %v8126_v6  ;;  %v2417_v58 = vmax.f32 %v7805_v43, %v6444_v59 }
 0x324   : > { %6586 = vrot.lane.b32.xlu1 %v6585_v8, %s7183_s30  ;;  %v6590_v40 = vpack.i.bf16 %v8135_v54, %v8133_v50  ;;  %v2320_v18 = vsel %vm2319_vm3, %v6443_v63, %v6444_v59 }
 0x325   : > { %v2416_v4 = vmax.f32 %v7802_v37, %v2320_v18 }
 0x326   : > { %v6447_v48 = vpop.permute.xlu0 %6446  ;;  %6591 = vrot.lane.b32.xlu0 %v6590_v40, %s7183_s30 }
 0x327   : > { %v6449_v25 = vunpack.i.h.bf16 %v6447_v48  ;;  %v6448_v3 = vunpack.i.l.bf16 %v6447_v48 }
 0x328   : > { %v6452_v17 = vpop.permute.xlu1 %6451  ;;  %6596 = vrot.lane.b32.xlu1 %v6595_v24, %s7183_s30 }
 0x329   : > { %v2419_v0 = vmax.f32 %v7816_v56, %v6449_v25  ;;  %v2321_v42 = vsel %vm2319_vm3, %v6448_v3, %v6449_v25  ;;  %v6454_v61 = vunpack.i.h.bf16 %v6452_v17  ;;  %v6453_v8 = vunpack.i.l.bf16 %v6452_v17 }
 0x32a   : > { %v2418_v2 = vmax.f32 %v7813_v27, %v2321_v42 }
 0x32b   : > { %v2497_v40 = vpack.c.bf16 %v2419_v0, %v2417_v58  ;;  %v2322_v48 = vsel %vm2319_vm3, %v6453_v8, %v6454_v61  ;;  %v2421_v56 = vmax.f32 %v7826_v62, %v6454_v61 }
 0x32c   : > { %v2496_v30 = vpack.c.bf16 %v2418_v2, %v2416_v4  ;;  %v2420_v27 = vmax.f32 %v7821_v39, %v2322_v48 }
 0x32d   : > { %2634 = vmatprep.subr.bf16.mxu0 %v2497_v40 }
 0x32e   : > { %2635 = vmatpush1.bf16.msra.mxu0 %v2496_v30  ;;  %v6457_v63 = vpop.permute.xlu1 %6456 }
 0x32f   : > { %v6459_v24 = vunpack.i.h.bf16 %v6457_v63  ;;  %v6458_v6 = vunpack.i.l.bf16 %v6457_v63 }
 0x330   : > { %v6462_v43 = vpop.permute.xlu0 %6461 }
 0x331   : > { %v2423_v59 = vmax.f32 %v7838_v19, %v6459_v24  ;;  %v2323_v37 = vsel %vm2319_vm3, %v6458_v6, %v6459_v24  ;;  %v6464_v25 = vunpack.i.h.bf16 %v6462_v43  ;;  %v6463_v3 = vunpack.i.l.bf16 %v6462_v43 }
 0x332   : > { %v2422_v18 = vmax.f32 %v7835_v15, %v2323_v37 }
 0x333   : > { %v2499_v17 = vpack.c.bf16 %v2423_v59, %v2421_v56  ;;  %v2324_v42 = vsel %vm2319_vm3, %v6463_v3, %v6464_v25  ;;  %v2425_v19 = vmax.f32 %v7848_v34, %v6464_v25 }
 0x334   : > { %v2498_v58 = vpack.c.bf16 %v2422_v18, %v2420_v27  ;;  %v2424_v15 = vmax.f32 %v7843_v26, %v2324_v42 }
 0x335   : > { %2636 = vmatprep.subr.bf16.mxu0 %v2499_v17 }
 0x336   : > { %2637 = vmatpush1.bf16.msra.mxu0 %v2498_v58  ;;  %v6467_v0 = vpop.permute.xlu1 %6466 }
 0x337   : > { %v6469_v4 = vunpack.i.h.bf16 %v6467_v0  ;;  %v6468_v2 = vunpack.i.l.bf16 %v6467_v0 }
 0x338   : > { %v6472_v62 = vpop.permute.xlu0 %6471 }
 0x339   : > { %v2427_v6 = vmax.f32 %v7860_v53, %v6469_v4  ;;  %v2325_v39 = vsel %vm2319_vm3, %v6468_v2, %v6469_v4  ;;  %v6474_v8 = vunpack.i.h.bf16 %v6472_v62  ;;  %v6473_v40 = vunpack.i.l.bf16 %v6472_v62 }
 0x33a   : > { %v2426_v61 = vmax.f32 %v7857_v21, %v2325_v39 }
 0x33b   : > { %v2501_v30 = vpack.c.bf16 %v2427_v6, %v2425_v19  ;;  %v2326_v24 = vsel %vm2319_vm3, %v6473_v40, %v6474_v8  ;;  %v2429_v53 = vmax.f32 %v7870_v45, %v6474_v8 }
 0x33c   : > { %v2500_v63 = vpack.c.bf16 %v2426_v61, %v2424_v15  ;;  %v2428_v21 = vmax.f32 %v7865_v36, %v2326_v24 }
 0x33d   : > { %2638 = vmatprep.subr.bf16.mxu0 %v2501_v30 }
 0x33e   : > { %2639 = vmatpush1.bf16.msra.mxu0 %v2500_v63  ;;  %v6477_v48 = vpop.permute.xlu1 %6476 }
 0x33f   : > { %v6479_v43 = vunpack.i.h.bf16 %v6477_v48  ;;  %v6478_v56 = vunpack.i.l.bf16 %v6477_v48 }
 0x340   : > { %v6482_v34 = vpop.permute.xlu0 %6481 }
 0x341   : > { %v2431_v59 = vmax.f32 %v7882_v22, %v6479_v43  ;;  %v2327_v26 = vsel %vm2319_vm3, %v6478_v56, %v6479_v43  ;;  %v6484_v27 = vunpack.i.h.bf16 %v6482_v34  ;;  %v6483_v18 = vunpack.i.l.bf16 %v6482_v34 }
 0x342   : > { %v2430_v37 = vmax.f32 %v7879_v16, %v2327_v26 }
 0x343   : > { %v2503_v25 = vpack.c.bf16 %v2431_v59, %v2429_v53  ;;  %v2328_v58 = vsel %vm2319_vm3, %v6483_v18, %v6484_v27  ;;  %v2433_v22 = vmax.f32 %v7892_v41, %v6484_v27 }
 0x344   : > { %v2502_v3 = vpack.c.bf16 %v2430_v37, %v2428_v21  ;;  %v2432_v16 = vmax.f32 %v7887_v31, %v2328_v58 }
 0x345   : > { %2640 = vmatprep.subr.bf16.mxu0 %v2503_v25 }
 0x346   : > { %2641 = vmatpush1.bf16.msra.mxu0 %v2502_v3  ;;  %v6487_v17 = vpop.permute.xlu1 %6486 }
 0x347   : > { %v6489_v0 = vunpack.i.h.bf16 %v6487_v17  ;;  %v6488_v42 = vunpack.i.l.bf16 %v6487_v17 }
 0x348   : > { %v6492_v45 = vpop.permute.xlu0 %6491 }
 0x349   : > { %v2435_v4 = vmax.f32 %v7904_v60, %v6489_v0  ;;  %v2329_v36 = vsel %vm2319_vm3, %v6488_v42, %v6489_v0  ;;  %v6494_v62 = vunpack.i.h.bf16 %v6492_v45  ;;  %v6493_v19 = vunpack.i.l.bf16 %v6492_v45  ;;  %v6724_v45 = vld [vmem:[#allocation8] ss:$8 sps:$4 sm:$0xff]  }
 0x34a   : > { %v2434_v2 = vmax.f32 %v7901_v33, %v2329_v36 }
 0x34b   : > { %v2505_v6 = vpack.c.bf16 %v2435_v4, %v2433_v22  ;;  %v2330_v61 = vsel %vm2319_vm3, %v6493_v19, %v6494_v62  ;;  %v2437_v60 = vmax.f32 %v7914_v10, %v6494_v62 }
 0x34c   : > { %v2504_v39 = vpack.c.bf16 %v2434_v2, %v2432_v16  ;;  %v2436_v33 = vmax.f32 %v7909_v51, %v2330_v61  ;;  %v6727_v2 = vld [vmem:[#allocation8 + $0x10] ss:$8 sps:$4 sm:$0xff]  }
 0x34d   : > { %2642 = vmatprep.subr.bf16.mxu0 %v2505_v6 }
 0x34e   : > { %2643 = vmatpush1.bf16.msra.mxu0 %v2504_v39  ;;  %v6497_v15 = vpop.permute.xlu1 %6496  ;;  %v6728_v39 = vld [vmem:[#allocation8 + $0x24] ss:$8 sps:$4 sm:$0xff]  }
 0x34f   : > { %v6499_v8 = vunpack.i.h.bf16 %v6497_v15  ;;  %v6498_v40 = vunpack.i.l.bf16 %v6497_v15 }
 0x350   : > { %v6502_v41 = vpop.permute.xlu0 %6501 }
 0x351   : > { %v2439_v30 = vmax.f32 %v7926_v46, %v6499_v8  ;;  %v2331_v31 = vsel %vm2319_vm3, %v6498_v40, %v6499_v8  ;;  %v6504_v48 = vunpack.i.h.bf16 %v6502_v41  ;;  %v6503_v24 = vunpack.i.l.bf16 %v6502_v41 }
 0x352   : > { %v2438_v63 = vmax.f32 %v7923_v38, %v2331_v31 }
 0x353   : > { %v2507_v43 = vpack.c.bf16 %v2439_v30, %v2437_v60  ;;  %v2332_v53 = vsel %vm2319_vm3, %v6503_v24, %v6504_v48  ;;  %v2441_v46 = vmax.f32 %v7936_v57, %v6504_v48  ;;  %v6722_v57 = vld [vmem:[#allocation8 + $0x4] ss:$8 sps:$4 sm:$0xff]  }
 0x354   : > { %v2506_v56 = vpack.c.bf16 %v2438_v63, %v2436_v33  ;;  %v2440_v38 = vmax.f32 %v7931_v55, %v2332_v53  ;;  %2937 = vmatprep.subr.bf16.mxu1 %v6722_v57  ;;  %v6733_v63 = vld [vmem:[#allocation8 + $0x30] ss:$8 sps:$4 sm:$0xff]  }
 0x355   : > { %2644 = vmatprep.subr.bf16.mxu0 %v2507_v43  ;;  %2938 = vmatpush1.bf16.msra.mxu1 %v6724_v45 }
 0x356   : > { %2645 = vmatpush1.bf16.msra.mxu0 %v2506_v56  ;;  %v6507_v34 = vpop.permute.xlu1 %6506  ;;  %v6734_v56 = vld [vmem:[#allocation8 + $0x44] ss:$8 sps:$4 sm:$0xff]  }
 0x357   : > { %v6509_v59 = vunpack.i.h.bf16 %v6507_v34  ;;  %v6508_v26 = vunpack.i.l.bf16 %v6507_v34 }
 0x358   : > { %v6512_v10 = vpop.permute.xlu0 %6511 }
 0x359   : > { %v2443_v21 = vmax.f32 %v7948_v28, %v6509_v59  ;;  %v2333_v51 = vsel %vm2319_vm3, %v6508_v26, %v6509_v59  ;;  %v6514_v27 = vunpack.i.h.bf16 %v6512_v10  ;;  %v6513_v18 = vunpack.i.l.bf16 %v6512_v10  ;;  %v6725_v28 = vld [vmem:[#allocation8 + $0x14] ss:$8 sps:$4 sm:$0xff]  }
 0x35a   : > { %v2442_v37 = vmax.f32 %v7945_v12, %v2333_v51  ;;  %2939 = vmatprep.subr.bf16.mxu1 %v6725_v28 }
 0x35b   : > { %v2509_v25 = vpack.c.bf16 %v2443_v21, %v2441_v46  ;;  %v2334_v58 = vsel %vm2319_vm3, %v6513_v18, %v6514_v27  ;;  %v2445_v4 = vmax.f32 %v7958_v49, %v6514_v27  ;;  %2940 = vmatpush1.bf16.msra.mxu1 %v6727_v2  ;;  %v9027_v46 = vld [vmem:[#allocation22_spill] sm:$0xff]  ;;  %v9029_v27 = vld [vmem:[#allocation21_spill] sm:$0xff] }
 0x35c   : > { %v2508_v3 = vpack.c.bf16 %v2442_v37, %v2440_v38  ;;  %v2444_v36 = vmax.f32 %v7953_v47, %v2334_v58  ;;  %2941 = vmatprep.subr.bf16.mxu1 %v6728_v39  ;;  %v6731_v47 = vld [vmem:[#allocation8 + $0x34] ss:$8 sps:$4 sm:$0xff]   ;;  %v9033_v39 = vld [vmem:[#allocation25_spill] sm:$0xff] }
 0x35d   : > { %2646 = vmatprep.subr.bf16.mxu0 %v2509_v25  ;;  %v9028_v38 = vld [vmem:[#allocation20_spill] sm:$0xff]  ;;  %v6739_v25 = vld [vmem:[#allocation8 + $0x50] ss:$8 sps:$4 sm:$0xff]  }
 0x35e   : > { %2647 = vmatpush1.bf16.msra.mxu0 %v2508_v3  ;;  %v6517_v17 = vpop.permute.xlu1 %6516 }
 0x35f   : > { %v6519_v0 = vunpack.i.h.bf16 %v6517_v17  ;;  %v6518_v42 = vunpack.i.l.bf16 %v6517_v17 }
 0x360   : > { %v6522_v22 = vpop.permute.xlu0 %6521 }
 0x361   : > { %v2447_v55 = vmax.f32 %v7970_v20, %v6519_v0  ;;  %v2335_v12 = vsel %vm2319_vm3, %v6518_v42, %v6519_v0  ;;  %v6524_v62 = vunpack.i.h.bf16 %v6522_v22  ;;  %v6523_v19 = vunpack.i.l.bf16 %v6522_v22  ;;  %v6730_v20 = vld [vmem:[#allocation8 + $0x20] ss:$8 sps:$4 sm:$0xff]   ;;  %v6740_v0 = vld [vmem:[#allocation8 + $0x64] ss:$8 sps:$4 sm:$0xff]  }
 0x362   : > { %v2446_v16 = vmax.f32 %v7967_v7, %v2335_v12  ;;  %2942 = vmatpush1.bf16.msra.mxu1 %v6730_v20  ;;  %v9030_v12 = vld [vmem:[#allocation24_spill] sm:$0xff] }
 0x363   : > { %v2511_v6 = vpack.c.bf16 %v2447_v55, %v2445_v4  ;;  %v2336_v61 = vsel %vm2319_vm3, %v6523_v19, %v6524_v62  ;;  %v2449_v41 = vmax.f32 %v7980_v13, %v6524_v62  ;;  %2943 = vmatprep.subr.bf16.mxu1 %v6731_v47  ;;  %v6736_v13 = vld [vmem:[#allocation8 + $0x40] ss:$8 sps:$4 sm:$0xff]   ;;  %v6743_v4 = vld [vmem:[#allocation8 + $0x74] ss:$8 sps:$4 sm:$0xff]  }
 0x364   : > { %v2510_v15 = vpack.c.bf16 %v2446_v16, %v2444_v36  ;;  %v2448_v31 = vmax.f32 %v7975_v14, %v2336_v61  ;;  %v6737_v14 = vld [vmem:[#allocation8 + $0x54] ss:$8 sps:$4 sm:$0xff]   ;;  %v9031_v16 = vld [vmem:[#allocation26_spill] sm:$0xff] }
 0x365   : > { %2648 = vmatprep.subr.bf16.mxu0 %v2511_v6  ;;  %v9032_v19 = vld [vmem:[#allocation23_spill] sm:$0xff] }
 0x366   : > { %2649 = vmatpush1.bf16.msra.mxu0 %v2510_v15  ;;  %v6527_v49 = vpop.permute.xlu1 %6526  ;;  %2944 = vmatpush1.bf16.msra.mxu1 %v6733_v63 }
 0x367   : > { %v6529_v8 = vunpack.i.h.bf16 %v6527_v49  ;;  %v6528_v40 = vunpack.i.l.bf16 %v6527_v49  ;;  %2945 = vmatprep.subr.bf16.mxu1 %v6734_v56  ;;  %v6745_v49 = vld [vmem:[#allocation8 + $0x70] ss:$8 sps:$4 sm:$0xff]  }
 0x368   : > { %v6532_v7 = vpop.permute.xlu0 %6531 }
 0x369   : > { %v2451_v60 = vmax.f32 %v7992_v44, %v6529_v8  ;;  %v2337_v30 = vsel %vm2319_vm3, %v6528_v40, %v6529_v8  ;;  %v6534_v48 = vunpack.i.h.bf16 %v6532_v7  ;;  %v6533_v24 = vunpack.i.l.bf16 %v6532_v7  ;;  %v6746_v40 = vld [vmem:[#allocation8 + $0x84] ss:$8 sps:$4 sm:$0xff]  }
 0x36a   : > { %v2450_v33 = vmax.f32 %v7989_v32, %v2337_v30  ;;  %2946 = vmatpush1.bf16.msra.mxu1 %v6736_v13 }
 0x36b   : > { %v2513_v43 = vpack.c.bf16 %v2451_v60, %v2449_v41  ;;  %v2338_v44 = vsel %vm2319_vm3, %v6533_v24, %v6534_v48  ;;  %v2453_v10 = vmax.f32 %v8002_v9, %v6534_v48  ;;  %2947 = vmatprep.subr.bf16.mxu1 %v6737_v14  ;;  %v6742_v9 = vld [vmem:[#allocation8 + $0x60] ss:$8 sps:$4 sm:$0xff]  }
 0x36c   : > { %v2512_v34 = vpack.c.bf16 %v2450_v33, %v2448_v31  ;;  %v2452_v37 = vmax.f32 %v9028_v38, %v2338_v44  ;;  %v6748_v41 = vld [vmem:[#allocation8 + $0x80] ss:$8 sps:$4 sm:$0xff]   ;;  %v6749_v33 = vld [vmem:[#allocation8 + $0x94] ss:$8 sps:$4 sm:$0xff]  }
 0x36d   : > { %2650 = vmatprep.subr.bf16.mxu0 %v2513_v43  ;;  %v9034_v48 = vld [vmem:[#allocation28_spill] sm:$0xff]  ;;  %v9035_v43 = vld [vmem:[#allocation30_spill] sm:$0xff]  ;;  %v9037_v44 = vld [vmem:[#allocation29_spill] sm:$0xff] }
 0x36e   : > { %2651 = vmatpush1.bf16.msra.mxu0 %v2512_v34  ;;  %v6537_v53 = vpop.permute.xlu1 %6536  ;;  %2948 = vmatpush1.bf16.msra.mxu1 %v6739_v25  ;;  %v9038_v25 = vld [vmem:[#allocation32_spill] sm:$0xff] }
 0x36f   : > { %v6539_v59 = vunpack.i.h.bf16 %v6537_v53  ;;  %v6538_v26 = vunpack.i.l.bf16 %v6537_v53  ;;  %2949 = vmatprep.subr.bf16.mxu1 %v6740_v0  ;;  %v9036_v53 = vld [vmem:[#allocation27_spill] sm:$0xff] }
 0x370   : > { %v6542_v32 = vpop.permute.xlu0 %6541 }
 0x371   : > { %v2455_v21 = vmax.f32 %v9027_v46, %v6539_v59  ;;  %v2339_v51 = vsel %vm2319_vm3, %v6538_v26, %v6539_v59  ;;  %v6544_v3 = vunpack.i.h.bf16 %v6542_v32  ;;  %v6543_v17 = vunpack.i.l.bf16 %v6542_v32  ;;  %v6751_v26 = vld [vmem:[#allocation8 + $0x90] ss:$8 sps:$4 sm:$0xff]   ;;  %v6752_v46 = vld [vmem:[#allocation8 + $0xa4] ss:$8 sps:$4 sm:$0xff]  }
 0x372   : > { %v2454_v18 = vmax.f32 %v9029_v27, %v2339_v51  ;;  %2950 = vmatpush1.bf16.msra.mxu1 %v6742_v9  ;;  %v9041_v9 = vld [vmem:[#allocation33_spill] sm:$0xff] }
 0x373   : > { %v2515_v58 = vpack.c.bf16 %v2455_v21, %v2453_v10  ;;  %v2340_v45 = vsel %vm2319_vm3, %v6543_v17, %v6544_v3  ;;  %v2457_v36 = vmax.f32 %v9030_v12, %v6544_v3  ;;  %2951 = vmatprep.subr.bf16.mxu1 %v6743_v4  ;;  %v9039_v17 = vld [vmem:[#allocation34_spill] sm:$0xff] }
 0x374   : > { %v2514_v42 = vpack.c.bf16 %v2454_v18, %v2452_v37  ;;  %v2456_v6 = vmax.f32 %v9032_v19, %v2340_v45  ;;  %v9042_v19 = vld [vmem:[#allocation36_spill] sm:$0xff] }
 0x375   : > { %2652 = vmatprep.subr.bf16.mxu0 %v2515_v58 }
 0x376   : > { %2653 = vmatpush1.bf16.msra.mxu0 %v2514_v42  ;;  %v6547_v57 = vpop.permute.xlu1 %6546  ;;  %2952 = vmatpush1.bf16.msra.mxu1 %v6745_v49  ;;  %v9040_v42 = vld [vmem:[#allocation31_spill] sm:$0xff] }
 0x377   : > { %v6549_v28 = vunpack.i.h.bf16 %v6547_v57  ;;  %v6548_v22 = vunpack.i.l.bf16 %v6547_v57  ;;  %2953 = vmatprep.subr.bf16.mxu1 %v6746_v40  ;;  %v9043_v49 = vld [vmem:[#allocation35_spill] sm:$0xff] }
 0x378   : > { %v6552_v55 = vpop.permute.xlu0 %6551 }
 0x379   : > { %v2459_v2 = vmax.f32 %v9031_v16, %v6549_v28  ;;  %v2341_v62 = vsel %vm2319_vm3, %v6548_v22, %v6549_v28  ;;  %v6554_v20 = vunpack.i.h.bf16 %v6552_v55  ;;  %v6553_v61 = vunpack.i.l.bf16 %v6552_v55 }
 0x37a   : > { %v2458_v15 = vmax.f32 %v9033_v39, %v2341_v62  ;;  %2954 = vmatpush1.bf16.msra.mxu1 %v6748_v41 }
 0x37b   : > { %v2517_v8 = vpack.c.bf16 %v2459_v2, %v2457_v36  ;;  %v2342_v60 = vsel %vm2319_vm3, %v6553_v61, %v6554_v20  ;;  %v2461_v24 = vmax.f32 %v9034_v48, %v6554_v20  ;;  %2955 = vmatprep.subr.bf16.mxu1 %v6749_v33 }
 0x37c   : > { %v2516_v47 = vpack.c.bf16 %v2458_v15, %v2456_v6  ;;  %v2460_v13 = vmax.f32 %v9036_v53, %v2342_v60 }
 0x37d   : > { %2654 = vmatprep.subr.bf16.mxu0 %v2517_v8 }
 0x37e   : > { %2655 = vmatpush1.bf16.msra.mxu0 %v2516_v47  ;;  %v6557_v7 = vpop.permute.xlu1 %6556  ;;  %2956 = vmatpush1.bf16.msra.mxu1 %v6751_v26 }
 0x37f   : > { %v6559_v30 = vunpack.i.h.bf16 %v6557_v7  ;;  %v6558_v31 = vunpack.i.l.bf16 %v6557_v7  ;;  %2957 = vmatprep.subr.bf16.mxu1 %v6752_v46  ;;  %v9044_v46 = vld [vmem:[#allocation37_spill] sm:$0xff] }
 0x380   : > { %v6562_v63 = vpop.permute.xlu0 %6561 }
 0x381   : > { %v2463_v56 = vmax.f32 %v9035_v43, %v6559_v30  ;;  %v2343_v34 = vsel %vm2319_vm3, %v6558_v31, %v6559_v30  ;;  %v6564_v14 = vunpack.i.h.bf16 %v6562_v63  ;;  %v6563_v32 = vunpack.i.l.bf16 %v6562_v63 }
 0x382   : > { %v2462_v59 = vmax.f32 %v9037_v44, %v2343_v34 }
 0x383   : > { %v2519_v10 = vpack.c.bf16 %v2463_v56, %v2461_v24  ;;  %v2344_v38 = vsel %vm2319_vm3, %v6563_v32, %v6564_v14  ;;  %v2465_v3 = vmax.f32 %v9038_v25, %v6564_v14  ;;  %v6706_v25 = vld [vmem:[%s8936_s1 + $0x20] ss:$8 sps:$4 sm:$0xff]  }
 0x384   : > { %v2518_v21 = vpack.c.bf16 %v2462_v59, %v2460_v13  ;;  %v2464_v57 = vmax.f32 %v9040_v42, %v2344_v38  ;;  %v7184_v59 = vmov 65535   ;;  %v6713_v42 = vld [vmem:[%s8936_s1 + $0x54] ss:$8 sps:$4 sm:$0xff]  }
 0x385   : > { %2656 = vmatprep.subr.bf16.mxu0 %v2519_v10  ;;  %v2626_v26 = vsel %vm2625_vm5, 4294967295, %v7184_v59 }
 0x386   : > { %2657 = vmatpush1.bf16.msra.mxu0 %v2518_v21  ;;  %v6567_v51 = vpop.permute.xlu1 %6566  ;;  %v8246_v21 = vsel %vm1387_vm2, %v2626_v26, 0 }
 0x387   : > { %v6569_v37 = vunpack.i.h.bf16 %v6567_v51  ;;  %v6568_v27 = vunpack.i.l.bf16 %v6567_v51 }
 0x388   : > { %v6572_v18 = vpop.permute.xlu0 %6571 }
 0x389   : > { %v2467_v58 = vmax.f32 %v9039_v17, %v6569_v37  ;;  %v2345_v0 = vsel %vm2319_vm3, %v6568_v27, %v6569_v37  ;;  %v6574_v28 = vunpack.i.h.bf16 %v6572_v18  ;;  %v6573_v22 = vunpack.i.l.bf16 %v6572_v18  ;;  %v6704_v18 = vld [vmem:[%s8936_s1 + $0x24] ss:$8 sps:$4 sm:$0xff]   ;;  %v6709_v17 = vld [vmem:[%s8936_s1 + $0x30] ss:$8 sps:$4 sm:$0xff]  }
 0x38a   : > { %v2466_v45 = vmax.f32 %v9041_v9, %v2345_v0  ;;  %v6712_v0 = vld [vmem:[%s8936_s1 + $0x40] ss:$8 sps:$4 sm:$0xff]   ;;  %v6716_v9 = vld [vmem:[%s8936_s1 + $0x64] ss:$8 sps:$4 sm:$0xff]  }
 0x38b   : > { %v2521_v4 = vpack.c.bf16 %v2467_v58, %v2465_v3  ;;  %v2346_v36 = vsel %vm2319_vm3, %v6573_v22, %v6574_v28  ;;  %v2469_v6 = vmax.f32 %v9042_v19, %v6574_v28  ;;  %v6707_v3 = vld [vmem:[%s8936_s1 + $0x34] ss:$8 sps:$4 sm:$0xff]   ;;  %v6710_v58 = vld [vmem:[%s8936_s1 + $0x44] ss:$8 sps:$4 sm:$0xff]   ;;  %v6721_v22 = vld [vmem:[%s8936_s1 + $0x70] ss:$8 sps:$4 sm:$0xff]  }
 0x38c   : > { %v2520_v55 = vpack.c.bf16 %v2466_v45, %v2464_v57  ;;  %v2468_v20 = vmax.f32 %v9043_v49, %v2346_v36  ;;  %v6715_v57 = vld [vmem:[%s8936_s1 + $0x50] ss:$8 sps:$4 sm:$0xff]   ;;  %v6718_v45 = vld [vmem:[%s8936_s1 + $0x60] ss:$8 sps:$4 sm:$0xff]   ;;  %v6719_v28 = vld [vmem:[%s8936_s1 + $0x74] ss:$8 sps:$4 sm:$0xff]  }
 0x38d   : > { %2658 = vmatprep.subr.bf16.mxu0 %v2521_v4  ;;  %v9045_v4 = vmov 0   ;;  %v2786_v36 = vld [vmem:[#allocation8 + $0xb0] sm:$0x33] }
 0x38e   : > { %2659 = vmatpush1.bf16.msra.mxu0 %v2520_v55  ;;  %v6577_v12 = vpop.permute.xlu1 %6576  ;;  %v2929_v55 = vsel %vm2927_vm6, 4294967295, %v7184_v59 }
 0x38f   : > { %v6579_v16 = vunpack.i.h.bf16 %v6577_v12  ;;  %v6578_v2 = vunpack.i.l.bf16 %v6577_v12  ;;  %v6754_v12 = vld [vmem:[#allocation8 + $0xa0] ss:$8 sps:$4 sm:$0xff]  }
 0x390   : > { %v6582_v62 = vpop.permute.xlu0 %6581  ;;  %2958 = vmatpush1.bf16.msra.mxu1 %v6754_v12 }
 0x391   : > { %v2471_v39 = vmax.f32 %v8102_v23, %v6579_v16  ;;  %v2347_v15 = vsel %vm2319_vm3, %v6578_v2, %v6579_v16  ;;  %v6584_v8 = vunpack.i.h.bf16 %v6582_v62  ;;  %v6583_v40 = vunpack.i.l.bf16 %v6582_v62 }
 0x392   : > { %v2470_v61 = vmax.f32 %v8099_v52, %v2347_v15  ;;  %v5786_v16 = vcombine.high %v2786_v36, %v2786_v36  ;;  %v8305_v2 = vsel %vm2928_vm7, %v2929_v55, 0  ;;  %v5785_v62 = vcombine.low %v2786_v36, %v2786_v36 }
 0x393   : > { %v2523_v47 = vpack.c.bf16 %v2471_v39, %v2469_v6  ;;  %v2348_v60 = vsel %vm2319_vm3, %v6583_v40, %v6584_v8  ;;  %v2473_v52 = vmax.f32 %v8112_v29, %v6584_v8  ;;  %v6759_v39 = vld [vmem:[#allocation8 + $0xbc] ss:$8 sps:$4 sm:$0xff]  }
 0x394   : > { %v2522_v7 = vpack.c.bf16 %v2470_v61, %v2468_v20  ;;  %v2472_v43 = vmax.f32 %v8107_v1, %v2348_v60  ;;  %v2935_v19 = vand.u32 %v5786_v16, %v8305_v2  ;;  %v2932_v6 = vand.u32 %v5785_v62, %v8305_v2 }
 0x395   : > { %2660 = vmatprep.subr.bf16.mxu0 %v2523_v47  ;;  %v6757_v47 = vld [vmem:[#allocation8 + $0xb8] ss:$8 sps:$4 sm:$0xff]  }
 0x396   : > { %2661 = vmatpush1.bf16.msra.mxu0 %v2522_v7  ;;  %v6587_v41 = vpop.permute.xlu1 %6586  ;;  %2959 = vmatprep.subr.bf16.mxu1 %v2935_v19  ;;  %v6762_v7 = vld [vmem:[#allocation8 + $0xcc] ss:$8 sps:$4 sm:$0xff]  }
 0x397   : > { %v6589_v30 = vunpack.i.h.bf16 %v6587_v41  ;;  %v6588_v31 = vunpack.i.l.bf16 %v6587_v41  ;;  %2960 = vmatpush1.bf16.msra.mxu1 %v2932_v6  ;;  %v6772_v6 = vld [vmem:[#allocation8 + $0x108] ss:$8 sps:$4 sm:$0xff]  }
 0x398   : > { %v6592_v33 = vpop.permute.xlu0 %6591  ;;  %3388 = vmatprep.subr.bf16.mxu1 %v6759_v39 }
 0x399   : > { %v2475_v23 = vmax.f32 %v8123_v35, %v6589_v30  ;;  %v2349_v63 = vsel %vm2319_vm3, %v6588_v31, %v6589_v30  ;;  %v6594_v48 = vunpack.i.h.bf16 %v6592_v33  ;;  %v6593_v24 = vunpack.i.l.bf16 %v6592_v33  ;;  %v6760_v31 = vld [vmem:[#allocation8 + $0xc8] ss:$8 sps:$4 sm:$0xff]  }
 0x39a   : > { %v2474_v56 = vmax.f32 %v8121_v11, %v2349_v63  ;;  %v6597_v34 = vpop.permute.xlu1 %6596 }
 0x39b   : > { %v2350_v53 = vsel %vm2319_vm3, %v6593_v24, %v6594_v48  ;;  %v6599_v13 = vunpack.i.h.bf16 %v6597_v34  ;;  %v6598_v44 = vunpack.i.l.bf16 %v6597_v34  ;;  %v2525_v14 = vpack.c.bf16 %v2475_v23, %v2473_v52  ;;  %v6765_v23 = vld [vmem:[#allocation8 + $0xdc] ss:$8 sps:$4 sm:$0xff]   ;;  %v6763_v34 = vld [vmem:[#allocation8 + $0xd8] ss:$8 sps:$4 sm:$0xff]  }
 0x39c   : > { %v2524_v35 = vpack.c.bf16 %v2474_v56, %v2472_v43  ;;  %v2477_v32 = vmax.f32 %v8135_v54, %v6594_v48  ;;  %v2476_v1 = vmax.f32 %v8133_v50, %v2350_v53  ;;  %v6701_v50 = vld [vmem:[%s8936_s1 + $0x14] ss:$8 sps:$4 sm:$0xff]   ;;  %v6703_v54 = vld [vmem:[%s8936_s1 + $0x10] ss:$8 sps:$4 sm:$0xff]  }
 0x39d   : > { %v2479_v10 = vmax.f32 %v8129_v5, %v6599_v13  ;;  %v2351_v29 = vsel %vm2319_vm3, %v6598_v44, %v6599_v13  ;;  %2662 = vmatprep.subr.bf16.mxu0 %v2525_v14  ;;  %v6698_v5 = vld [vmem:[%s8936_s1] ss:$8 sps:$4 sm:$0xff]   ;;  %v6768_v14 = vld [vmem:[#allocation8 + $0xec] ss:$8 sps:$4 sm:$0xff]  }
 0x39e   : > { %v2478_v11 = vmax.f32 %v9044_v46, %v2351_v29  ;;  %2663 = vmatpush1.bf16.msra.mxu0 %v2524_v35 }
 0x39f   : > { %v2527_v51 = vpack.c.bf16 %v2479_v10, %v2477_v32 }
 0x3a0   : > { %v2526_v38 = vpack.c.bf16 %v2478_v11, %v2476_v1 }
 0x3a1   : > { %v2632_v37 = vand.u32 %v8246_v21, %v2527_v51 }
 0x3a2   : > { %v2629_v27 = vand.u32 %v8246_v21, %v2526_v38  ;;  %v6766_v38 = vld [vmem:[#allocation8 + $0xe8] ss:$8 sps:$4 sm:$0xff]  }
 0x3a3   : > { %2664 = vmatprep.subr.bf16.mxu0 %v2632_v37 }
 0x3a4   : > { %2665 = vmatpush1.bf16.msra.mxu0 %v2629_v27 }
 0x3a7   : > { %2667 = vmatmul.mubr.bf16.vlgmr.msra.gmra.mrb[64].mxu0 %v6698_v5 }
 0x3a8   : > { %5756 = vmatprep.mubr.msk.bf16.mxu0 %vm2600_vm4, %v6701_v50 }
 0x3af   : > { %2677 = vmatmul.mubr.bf16.gmra.mrb[68].mxu0 %v6703_v54  ;;  %v6771_v54 = vld [vmem:[#allocation8 + $0xfc] ss:$8 sps:$4 sm:$0xff]  }
 0x3b0   : > { %5757 = vmatprep.mubr.msk.bf16.mxu0 %vm2600_vm4, %v6704_v18 }
 0x3b7   : > { %2687 = vmatmul.mubr.bf16.gmra.mrb[72].mxu0 %v6706_v25 }
 0x3b8   : > { %5758 = vmatprep.mubr.msk.bf16.mxu0 %vm2600_vm4, %v6707_v3 }
 0x3bf   : > { %2697 = vmatmul.mubr.bf16.gmra.mrb[76].mxu0 %v6709_v17 }
 0x3c0   : > { %5759 = vmatprep.mubr.msk.bf16.mxu0 %vm2600_vm4, %v6710_v58 }
 0x3c7   : > { %2707 = vmatmul.mubr.bf16.gmra.mrb[80].mxu0 %v6712_v0 }
 0x3c8   : > { %5760 = vmatprep.mubr.msk.bf16.mxu0 %vm2600_vm4, %v6713_v42  ;;  %v6769_v42 = vld [vmem:[#allocation8 + $0xf8] ss:$8 sps:$4 sm:$0xff]  }
 0x3cf   : > { %2717 = vmatmul.mubr.bf16.gmra.mrb[84].mxu0 %v6715_v57  ;;  %v6774_v57 = vld [vmem:[#allocation8 + $0x10c] ss:$8 sps:$4 sm:$0xff]  }
 0x3d0   : > { %5761 = vmatprep.mubr.msk.bf16.mxu0 %vm2600_vm4, %v6716_v9 }
 0x3d7   : > { %2727 = vmatmul.mubr.bf16.gmra.mrb[88].mxu0 %v6718_v45 }
 0x3d8   : > { %5762 = vmatprep.mubr.msk.bf16.mxu0 %vm2600_vm4, %v6719_v28 }
 0x3df   : > { %2737 = vmatmul.mubr.bf16.gmra.mrb[92].mxu0 %v6721_v22 }
 0x3e0   : > { %4351 = vmatprep.mubr.bf16.mxu0 %v9045_v4 }
 0x47a   : > { %v2668_v15 = vpop.f32.mrb[64].mxu0 }
 0x47b   : > { %v2670_v49 = vpop.f32.mrb[65].mxu0 }
 0x47c   : > { %v2672_v20 = vpop.f32.mrb[66].mxu0 }
 0x47d   : > { %v2748_v61 = vpack.c.bf16 %v2672_v20, %v2668_v15  ;;  %v2674_v8 = vpop.f32.mrb[67].mxu0 }
 0x47e   : > { %v2749_v40 = vpack.c.bf16 %v2674_v8, %v2670_v49 }
 0x47f   : > { %v3120_v41 = vshll.u32 %v2748_v61, 16  ;;  %v3118_v53 = vshrl.u32 %v2748_v61, 16  ;;  %v3573_v13 = vrot.slane %v2748_v61, 1 }
 0x480   : > { %5787 = vmatprep.mubr.msk.bf16.mxu1 %vm2902_vm8, %v2749_v40  ;;  %v3131_v60 = vshll.u32 %v2749_v40, 16  ;;  %v3129_v35 = vshrl.u32 %v2749_v40, 16  ;;  %v3576_v10 = vrot.slane %v2749_v40, 1 }
 0x481   : > { %2970 = vmatmul.mubr.bf16.vlgmr.msra.gmra.mrb[0].mxu1 %v2748_v61  ;;  %v3122_v48 = vrot.slane %v3120_v41, 1  ;;  %v6777_v61 = vld [vmem:[#allocation8 + $0x11c] ss:$8 sps:$4 sm:$0xff]  }
 0x482   : > { %v2678_v30 = vpop.f32.mrb[68].mxu0  ;;  %3389 = vmatpush1.bf16.msra.mxu1 %v6757_v47  ;;  %v3133_v43 = vrot.slane %v3131_v60, 1 }
 0x483   : > { %v2680_v33 = vpop.f32.mrb[69].mxu0  ;;  %3390 = vmatprep.subr.bf16.mxu1 %v6762_v7  ;;  %v3123_v46 = vor.u32 %v3122_v48, %v3118_v53 }
 0x484   : > { %v2682_v63 = vpop.f32.mrb[70].mxu0  ;;  %v3134_v37 = vor.u32 %v3133_v43, %v3129_v35 }
 0x485   : > { %v2750_v24 = vpack.c.bf16 %v2682_v63, %v2678_v30  ;;  %v2684_v52 = vpop.f32.mrb[71].mxu0  ;;  %v6775_v30 = vld [vmem:[#allocation8 + $0x118] ss:$8 sps:$4 sm:$0xff]  }
 0x486   : > { %v2751_v56 = vpack.c.bf16 %v2684_v52, %v2680_v33  ;;  %3391 = vmatpush1.bf16.msra.mxu1 %v6760_v31  ;;  %v6780_v31 = vld [vmem:[#allocation8 + $0x12c] ss:$8 sps:$4 sm:$0xff]  }
 0x487   : > { %v3125_v44 = vshll.u32 %v2750_v24, 16  ;;  %v3574_v26 = vrot.slane %v2750_v24, 1  ;;  %3392 = vmatprep.subr.bf16.mxu1 %v6765_v23  ;;  %v3139_v9 = vshrl.u32 %v2750_v24, 16 }
 0x488   : > { %5788 = vmatprep.mubr.msk.bf16.mxu1 %vm2902_vm8, %v2751_v56  ;;  %v3135_v32 = vshll.u32 %v2751_v56, 16  ;;  %v3577_v29 = vrot.slane %v2751_v56, 1  ;;  %v3147_v22 = vshrl.u32 %v2751_v56, 16 }
 0x489   : > { %v3127_v1 = vrot.slane %v3125_v44, 1  ;;  %2980 = vmatmul.mubr.bf16.gmra.mrb[4].mxu1 %v2750_v24  ;;  %v8312_v11 = vsel %vm1387_vm2, %v3573_v13, %v3574_v26  ;;  %v6778_v13 = vld [vmem:[#allocation8 + $0x128] ss:$8 sps:$4 sm:$0xff]  }
 0x48a   : > { %v2688_v51 = vpop.f32.mrb[72].mxu0  ;;  %3393 = vmatpush1.bf16.msra.mxu1 %v6763_v34  ;;  %v3137_v27 = vrot.slane %v3135_v32, 1  ;;  %v8315_v5 = vsel %vm1387_vm2, %v3576_v10, %v3577_v29  ;;  %v6783_v32 = vld [vmem:[#allocation8 + $0x13c] ss:$8 sps:$4 sm:$0xff]  }
 0x48b   : > { %v2690_v50 = vpop.f32.mrb[73].mxu0  ;;  %3394 = vmatprep.subr.bf16.mxu1 %v6768_v14  ;;  %v8318_v18 = vsel %vm929_vm1, %v3123_v46, %v3127_v1  ;;  %v3141_v36 = vor.u32 %v3139_v9, %v3127_v1 }
 0x48c   : > { %v2692_v25 = vpop.f32.mrb[74].mxu0  ;;  %v8321_v3 = vsel %vm929_vm1, %v3134_v37, %v3137_v27  ;;  %v3149_v39 = vor.u32 %v3147_v22, %v3137_v27  ;;  %v6781_v37 = vld [vmem:[#allocation8 + $0x138] ss:$8 sps:$4 sm:$0xff]   ;;  %v6786_v27 = vld [vmem:[#allocation8 + $0x14c] ss:$8 sps:$4 sm:$0xff]  }
 0x48d   : > { %v2752_v17 = vpack.c.bf16 %v2692_v25, %v2688_v51  ;;  %v2694_v58 = vpop.f32.mrb[75].mxu0  ;;  %v6784_v22 = vld [vmem:[#allocation8 + $0x148] ss:$8 sps:$4 sm:$0xff]  }
 0x48e   : > { %v2753_v0 = vpack.c.bf16 %v2694_v58, %v2690_v50  ;;  %3395 = vmatpush1.bf16.msra.mxu1 %v6766_v38  ;;  %v3116_v58 = vld [vmem:[#allocation8 + $0x168] sm:$0x33] }
 0x48f   : > { %3396 = vmatprep.subr.bf16.mxu1 %v6771_v54  ;;  %v3143_v45 = vshll.u32 %v2752_v17, 16  ;;  %v3579_v28 = vrot.slane %v2752_v17, 1  ;;  %v3154_v33 = vshrl.u32 %v2752_v17, 16 }
 0x490   : > { %5789 = vmatprep.mubr.msk.bf16.mxu1 %vm2902_vm8, %v2753_v0  ;;  %v3150_v55 = vshll.u32 %v2753_v0, 16  ;;  %v3581_v12 = vrot.slane %v2753_v0, 1  ;;  %v3162_v48 = vshrl.u32 %v2753_v0, 16 }
 0x491   : > { %2990 = vmatmul.mubr.bf16.gmra.mrb[8].mxu1 %v2752_v17  ;;  %v3145_v16 = vrot.slane %v3143_v45, 1  ;;  %v8325_v62 = vsel %vm1387_vm2, %v3574_v26, %v3579_v28 }
 0x492   : > { %v2698_v19 = vpop.f32.mrb[76].mxu0  ;;  %3397 = vmatpush1.bf16.msra.mxu1 %v6769_v42  ;;  %v3152_v15 = vrot.slane %v3150_v55, 1  ;;  %v8328_v49 = vsel %vm1387_vm2, %v3577_v29, %v3581_v12 }
 0x493   : > { %v2700_v20 = vpop.f32.mrb[77].mxu0  ;;  %3398 = vmatprep.subr.bf16.mxu1 %v6774_v57  ;;  %v8331_v8 = vsel %vm929_vm1, %v3141_v36, %v3145_v16  ;;  %v3156_v43 = vor.u32 %v3154_v33, %v3145_v16 }
 0x494   : > { %v2702_v40 = vpop.f32.mrb[78].mxu0  ;;  %v8334_v47 = vsel %vm929_vm1, %v3149_v39, %v3152_v15  ;;  %v3164_v44 = vor.u32 %v3162_v48, %v3152_v15 }
 0x495   : > { %v2754_v7 = vpack.c.bf16 %v2702_v40, %v2698_v19  ;;  %v2704_v41 = vpop.f32.mrb[79].mxu0  ;;  %v6789_v19 = vld [vmem:[#allocation8 + $0x15c] ss:$8 sps:$4 sm:$0xff]  }
 0x496   : > { %v2755_v60 = vpack.c.bf16 %v2704_v41, %v2700_v20  ;;  %3399 = vmatpush1.bf16.msra.mxu1 %v6772_v6  ;;  %v5818_v6 = vcombine.high %v3116_v58, %v3116_v58  ;;  %v6787_v41 = vld [vmem:[#allocation8 + $0x158] ss:$8 sps:$4 sm:$0xff]  }
 0x497   : > { %3400 = vmatprep.subr.bf16.mxu1 %v6777_v61  ;;  %v3158_v23 = vshll.u32 %v2754_v7, 16  ;;  %v3583_v63 = vrot.slane %v2754_v7, 1  ;;  %v3169_v50 = vshrl.u32 %v2754_v7, 16 }
 0x498   : > { %5790 = vmatprep.mubr.msk.bf16.mxu1 %vm2902_vm8, %v2755_v60  ;;  %v3165_v24 = vshll.u32 %v2755_v60, 16  ;;  %v3585_v52 = vrot.slane %v2755_v60, 1  ;;  %v3177_v17 = vshrl.u32 %v2755_v60, 16  ;;  %v5817_v60 = vcombine.low %v3116_v58, %v3116_v58 }
 0x499   : > { %3000 = vmatmul.mubr.bf16.gmra.mrb[12].mxu1 %v2754_v7  ;;  %v3160_v56 = vrot.slane %v3158_v23, 1  ;;  %v8338_v34 = vsel %vm1387_vm2, %v3579_v28, %v3583_v63 }
 0x49a   : > { %v2708_v53 = vpop.f32.mrb[80].mxu0  ;;  %3401 = vmatpush1.bf16.msra.mxu1 %v6775_v30  ;;  %v3167_v26 = vrot.slane %v3165_v24, 1  ;;  %v8341_v14 = vsel %vm1387_vm2, %v3581_v12, %v3585_v52  ;;  %v3386_v30 = vand.u32 %v5818_v6, %v8305_v2 }
 0x49b   : > { %v2710_v35 = vpop.f32.mrb[81].mxu0  ;;  %3402 = vmatprep.subr.bf16.mxu1 %v6780_v31  ;;  %v8344_v10 = vsel %vm929_vm1, %v3156_v43, %v3160_v56  ;;  %v3171_v57 = vor.u32 %v3169_v50, %v3160_v56 }
 0x49c   : > { %v2712_v29 = vpop.f32.mrb[82].mxu0  ;;  %v8347_v1 = vsel %vm929_vm1, %v3164_v44, %v3167_v26  ;;  %v3179_v55 = vor.u32 %v3177_v17, %v3167_v26 }
 0x49d   : > { %v2756_v46 = vpack.c.bf16 %v2712_v29, %v2708_v53  ;;  %v2714_v51 = vpop.f32.mrb[83].mxu0  ;;  %v6794_v29 = vld [vmem:[#allocation8 + $0x174] ss:$8 sps:$4 sm:$0xff]  }
 0x49e   : > { %v2757_v38 = vpack.c.bf16 %v2714_v51, %v2710_v35  ;;  %3403 = vmatpush1.bf16.msra.mxu1 %v6778_v13  ;;  %v3383_v13 = vand.u32 %v5817_v60, %v8305_v2 }
 0x49f   : > { %3404 = vmatprep.subr.bf16.mxu1 %v6783_v32  ;;  %v3173_v54 = vshll.u32 %v2756_v46, 16  ;;  %v3587_v25 = vrot.slane %v2756_v46, 1  ;;  %v3184_v31 = vshrl.u32 %v2756_v46, 16 }
 0x4a0   : > { %5791 = vmatprep.mubr.msk.bf16.mxu1 %vm2902_vm8, %v2757_v38  ;;  %v3180_v0 = vshll.u32 %v2757_v38, 16  ;;  %v3589_v42 = vrot.slane %v2757_v38, 1 }
 0x4a1   : > { %3010 = vmatmul.mubr.bf16.gmra.mrb[16].mxu1 %v2756_v46  ;;  %v3175_v9 = vrot.slane %v3173_v54, 1  ;;  %v8351_v45 = vsel %vm1387_vm2, %v3583_v63, %v3587_v25  ;;  %v3192_v63 = vshrl.u32 %v2757_v38, 16 }
 0x4a2   : > { %v2718_v28 = vpop.f32.mrb[84].mxu0  ;;  %3405 = vmatpush1.bf16.msra.mxu1 %v6781_v37  ;;  %v3182_v12 = vrot.slane %v3180_v0, 1  ;;  %v8354_v36 = vsel %vm1387_vm2, %v3585_v52, %v3589_v42 }
 0x4a3   : > { %v2720_v16 = vpop.f32.mrb[85].mxu0  ;;  %3406 = vmatprep.subr.bf16.mxu1 %v6786_v27  ;;  %v8357_v39 = vsel %vm929_vm1, %v3171_v57, %v3175_v9  ;;  %v3186_v52 = vor.u32 %v3184_v31, %v3175_v9 }
 0x4a4   : > { %v2722_v15 = vpop.f32.mrb[86].mxu0  ;;  %v8360_v20 = vsel %vm929_vm1, %v3179_v55, %v3182_v12  ;;  %v3194_v44 = vor.u32 %v3192_v63, %v3182_v12 }
 0x4a5   : > { %v2758_v61 = vpack.c.bf16 %v2722_v15, %v2718_v28  ;;  %v2724_v40 = vpop.f32.mrb[87].mxu0 }
 0x4a6   : > { %v2759_v7 = vpack.c.bf16 %v2724_v40, %v2720_v16  ;;  %3407 = vmatpush1.bf16.msra.mxu1 %v6784_v22 }
 0x4a7   : > { %3408 = vmatprep.subr.bf16.mxu1 %v6789_v19  ;;  %v3188_v33 = vshll.u32 %v2758_v61, 16  ;;  %v3591_v23 = vrot.slane %v2758_v61, 1  ;;  %v3199_v54 = vshrl.u32 %v2758_v61, 16 }
 0x4a8   : > { %5792 = vmatprep.mubr.msk.bf16.mxu1 %vm2902_vm8, %v2759_v7  ;;  %v3195_v48 = vshll.u32 %v2759_v7, 16  ;;  %v3593_v24 = vrot.slane %v2759_v7, 1  ;;  %v3207_v58 = vshrl.u32 %v2759_v7, 16 }
 0x4a9   : > { %3020 = vmatmul.mubr.bf16.gmra.mrb[20].mxu1 %v2758_v61  ;;  %v3190_v43 = vrot.slane %v3188_v33, 1  ;;  %v8365_v56 = vsel %vm1387_vm2, %v3587_v25, %v3591_v23 }
 0x4aa   : > { %v2728_v53 = vpop.f32.mrb[88].mxu0  ;;  %3409 = vmatpush1.bf16.msra.mxu1 %v6787_v41  ;;  %v3197_v26 = vrot.slane %v3195_v48, 1  ;;  %v8369_v35 = vsel %vm1387_vm2, %v3589_v42, %v3593_v24 }
 0x4ab   : > { %v2730_v32 = vpop.f32.mrb[89].mxu0  ;;  %3410 = vmatprep.subr.bf16.mxu1 %v3386_v30  ;;  %v8372_v46 = vsel %vm929_vm1, %v3186_v52, %v3190_v43  ;;  %v3201_v57 = vor.u32 %v3199_v54, %v3190_v43  ;;  %v6804_v54 = vld [vmem:[#allocation8 + $0x1b0] ss:$8 sps:$4 sm:$0xff]  }
 0x4ac   : > { %v2732_v51 = vpop.f32.mrb[90].mxu0  ;;  %v8375_v38 = vsel %vm929_vm1, %v3194_v44, %v3197_v26  ;;  %v3209_v55 = vor.u32 %v3207_v58, %v3197_v26  ;;  %v6813_v58 = vld [vmem:[#allocation8 + $0x1e0] ss:$8 sps:$4 sm:$0xff]  }
 0x4ad   : > { %v2760_v37 = vpack.c.bf16 %v2732_v51, %v2728_v53  ;;  %v2734_v27 = vpop.f32.mrb[91].mxu0  ;;  %v6800_v51 = vld [vmem:[#allocation8 + $0x194] ss:$8 sps:$4 sm:$0xff]  }
 0x4ae   : > { %v2761_v50 = vpack.c.bf16 %v2734_v27, %v2730_v32  ;;  %3411 = vmatpush1.bf16.msra.mxu1 %v3383_v13  ;;  %v6792_v32 = vld [vmem:[#allocation8 + $0x170] ss:$8 sps:$4 sm:$0xff]   ;;  %v6803_v27 = vld [vmem:[#allocation8 + $0x1a4] ss:$8 sps:$4 sm:$0xff]  }
 0x4af   : > { %3756 = vmatprep.subr.bf16.mxu1 %v6794_v29  ;;  %v3203_v25 = vshll.u32 %v2760_v37, 16  ;;  %v3595_v17 = vrot.slane %v2760_v37, 1  ;;  %v3214_v60 = vshrl.u32 %v2760_v37, 16  ;;  %v6797_v29 = vld [vmem:[#allocation8 + $0x184] ss:$8 sps:$4 sm:$0xff]  }
 0x4b0   : > { %5793 = vmatprep.mubr.msk.bf16.mxu1 %vm2902_vm8, %v2761_v50  ;;  %v3210_v0 = vshll.u32 %v2761_v50, 16  ;;  %v3597_v42 = vrot.slane %v2761_v50, 1  ;;  %v3222_v33 = vshrl.u32 %v2761_v50, 16  ;;  %v6801_v50 = vld [vmem:[#allocation8 + $0x1a0] ss:$8 sps:$4 sm:$0xff]  }
 0x4b1   : > { %3030 = vmatmul.mubr.bf16.gmra.mrb[24].mxu1 %v2760_v37  ;;  %v3205_v9 = vrot.slane %v3203_v25, 1  ;;  %v8379_v28 = vsel %vm1387_vm2, %v3591_v23, %v3595_v17  ;;  %v6798_v37 = vld [vmem:[#allocation8 + $0x190] ss:$8 sps:$4 sm:$0xff]   ;;  %v6807_v25 = vld [vmem:[#allocation8 + $0x1c0] ss:$8 sps:$4 sm:$0xff]  }
 0x4b2   : > { %v2738_v22 = vpop.f32.mrb[92].mxu0  ;;  %v3212_v12 = vrot.slane %v3210_v0, 1  ;;  %v8382_v16 = vsel %vm1387_vm2, %v3593_v24, %v3597_v42  ;;  %v6816_v0 = vld [vmem:[#allocation8 + $0x1f0] ss:$8 sps:$4 sm:$0xff]  }
 0x4b3   : > { %v2740_v19 = vpop.f32.mrb[93].mxu0  ;;  %v8385_v6 = vsel %vm929_vm1, %v3201_v57, %v3205_v9  ;;  %v3216_v48 = vor.u32 %v3214_v60, %v3205_v9  ;;  %v6819_v57 = vld [vmem:[#allocation8 + $0x200] ss:$8 sps:$4 sm:$0xff]  }
 0x4b4   : > { %v2742_v15 = vpop.f32.mrb[94].mxu0  ;;  %v8388_v61 = vsel %vm929_vm1, %v3209_v55, %v3212_v12  ;;  %v3224_v43 = vor.u32 %v3222_v33, %v3212_v12 }
 0x4b5   : > { %v8390_v40 = vpack.c.bf16 %v2742_v15, %v2738_v22  ;;  %v2744_v7 = vpop.f32.mrb[95].mxu0 }
 0x4b6   : > { %v8392_v41 = vpack.c.bf16 %v2744_v7, %v2740_v19 }
 0x4b7   : > { %v3218_v30 = vshll.u32 %v8390_v40, 16  ;;  %v3599_v31 = vrot.slane %v8390_v40, 1  ;;  %v3229_v15 = vshrl.u32 %v8390_v40, 16 }
 0x4b8   : > { %5794 = vmatprep.mubr.msk.bf16.mxu1 %vm2902_vm8, %v8392_v41  ;;  %v3225_v23 = vshll.u32 %v8392_v41, 16  ;;  %v3601_v63 = vrot.slane %v8392_v41, 1  ;;  %v3232_v12 = vshrl.u32 %v8392_v41, 16 }
 0x4b9   : > { %3040 = vmatmul.mubr.bf16.gmra.mrb[28].mxu1 %v8390_v40  ;;  %v8401_v24 = vrot.slane %v3218_v30, 1  ;;  %v8406_v52 = vsel %vm1387_vm2, %v3595_v17, %v3599_v31  ;;  %v6810_v17 = vld [vmem:[#allocation8 + $0x1d0] ss:$8 sps:$4 sm:$0xff]  }
 0x4ba   : > { %5819 = vmatprep.mubr.msk.bf16.mxu1 %vm2902_vm8, %v8321_v3  ;;  %v8410_v53 = vrot.slane %v3225_v23, 1  ;;  %v8415_v13 = vsel %vm1387_vm2, %v3597_v42, %v3601_v63  ;;  %v6795_v3 = vld [vmem:[#allocation8 + $0x180] ss:$8 sps:$4 sm:$0xff]  }
 0x4bb   : > { %v8419_v44 = vsel %vm929_vm1, %v3216_v48, %v8401_v24  ;;  %v3556_v42 = vld [vmem:[#allocation8 + $0x220] sm:$0x33] }
 0x4bc   : > { %v3228_v26 = vsel %vm929_vm1, %v3224_v43, %v8410_v53  ;;  %v5850_v9 = vcombine.high %v3556_v42, %v3556_v42  ;;  %v5849_v22 = vcombine.low %v3556_v42, %v3556_v42  ;;  %v3234_v19 = vor.u32 %v3232_v12, %v8410_v53 }
 0x4be   : > { %v3754_v55 = vand.u32 %v5850_v9, %v8305_v2 }
 0x4c1   : > { %3421 = vmatmul.mubr.bf16.vlgmr.msra.gmra.mrb[0].mxu1 %v8318_v18  ;;  %v6806_v18 = vld [vmem:[#allocation8 + $0x1b4] ss:$8 sps:$4 sm:$0xff]  }
 0x4c2   : > { %5820 = vmatprep.mubr.msk.bf16.mxu1 %vm2902_vm8, %v8334_v47  ;;  %3757 = vmatpush1.bf16.msra.mxu1 %v6792_v32  ;;  %v6809_v47 = vld [vmem:[#allocation8 + $0x1c4] ss:$8 sps:$4 sm:$0xff]  }
 0x4c3   : > { %3758 = vmatprep.subr.bf16.mxu1 %v6797_v29 }
 0x4c6   : > { %3759 = vmatpush1.bf16.msra.mxu1 %v6795_v3 }
 0x4c7   : > { %3760 = vmatprep.subr.bf16.mxu1 %v6800_v51 }
 0x4c9   : > { %3431 = vmatmul.mubr.bf16.gmra.mrb[4].mxu1 %v8331_v8  ;;  %v6812_v8 = vld [vmem:[#allocation8 + $0x1d4] ss:$8 sps:$4 sm:$0xff]  }
 0x4ca   : > { %5821 = vmatprep.mubr.msk.bf16.mxu1 %vm2902_vm8, %v8347_v1  ;;  %3761 = vmatpush1.bf16.msra.mxu1 %v6798_v37  ;;  %v6815_v1 = vld [vmem:[#allocation8 + $0x1e4] ss:$8 sps:$4 sm:$0xff]  }
 0x4cb   : > { %3762 = vmatprep.subr.bf16.mxu1 %v6803_v27 }
 0x4ce   : > { %3763 = vmatpush1.bf16.msra.mxu1 %v6801_v50 }
 0x4cf   : > { %3764 = vmatprep.subr.bf16.mxu1 %v6806_v18 }
 0x4d1   : > { %3441 = vmatmul.mubr.bf16.gmra.mrb[8].mxu1 %v8344_v10  ;;  %v6818_v10 = vld [vmem:[#allocation8 + $0x1f4] ss:$8 sps:$4 sm:$0xff]  }
 0x4d2   : > { %5822 = vmatprep.mubr.msk.bf16.mxu1 %vm2902_vm8, %v8360_v20  ;;  %3765 = vmatpush1.bf16.msra.mxu1 %v6804_v54  ;;  %v6821_v20 = vld [vmem:[#allocation8 + $0x204] ss:$8 sps:$4 sm:$0xff]  }
 0x4d3   : > { %3766 = vmatprep.subr.bf16.mxu1 %v6809_v47 }
 0x4d6   : > { %3767 = vmatpush1.bf16.msra.mxu1 %v6807_v25 }
 0x4d7   : > { %3768 = vmatprep.subr.bf16.mxu1 %v6812_v8 }
 0x4d9   : > { %3451 = vmatmul.mubr.bf16.gmra.mrb[12].mxu1 %v8357_v39  ;;  %v6824_v39 = vld [vmem:[#allocation8 + $0x214] ss:$8 sps:$4 sm:$0xff]  }
 0x4da   : > { %5823 = vmatprep.mubr.msk.bf16.mxu1 %vm2902_vm8, %v8375_v38  ;;  %3769 = vmatpush1.bf16.msra.mxu1 %v6810_v17  ;;  %v6822_v38 = vld [vmem:[#allocation8 + $0x210] ss:$8 sps:$4 sm:$0xff]  }
 0x4db   : > { %3770 = vmatprep.subr.bf16.mxu1 %v6815_v1 }
 0x4de   : > { %3771 = vmatpush1.bf16.msra.mxu1 %v6813_v58 }
 0x4df   : > { %3772 = vmatprep.subr.bf16.mxu1 %v6818_v10 }
 0x4e1   : > { %3461 = vmatmul.mubr.bf16.gmra.mrb[16].mxu1 %v8372_v46  ;;  %v3751_v46 = vand.u32 %v5849_v22, %v8305_v2  ;;  %v2747_v2 = vld [vmem:[%s8941_s6] sm:$0x3] }
 0x4e2   : > { %5824 = vmatprep.mubr.msk.bf16.mxu1 %vm2902_vm8, %v8388_v61  ;;  %3773 = vmatpush1.bf16.msra.mxu1 %v6816_v0 }
 0x4e3   : > { %3774 = vmatprep.subr.bf16.mxu1 %v6821_v20 }
 0x4e6   : > { %3775 = vmatpush1.bf16.msra.mxu1 %v6819_v57 }
 0x4e7   : > { %3776 = vmatprep.subr.bf16.mxu1 %v6824_v39 }
 0x4e9   : > { %3471 = vmatmul.mubr.bf16.gmra.mrb[20].mxu1 %v8385_v6  ;;  %v3231_v6 = vor.u32 %v3229_v15, %v8401_v24 }
 0x4ea   : > { %5825 = vmatprep.mubr.msk.bf16.mxu1 %vm2902_vm8, %v3228_v26  ;;  %3777 = vmatpush1.bf16.msra.mxu1 %v6822_v38 }
 0x4eb   : > { %3778 = vmatprep.subr.bf16.mxu1 %v3754_v55 }
 0x4ee   : > { %3779 = vmatpush1.bf16.msra.mxu1 %v3751_v46 }
 0x4ef   : > { %4498 = vmatprep.subr.bf16.mxu1 %v9045_v4 }
 0x4f1   : > { %3481 = vmatmul.mubr.bf16.gmra.mrb[24].mxu1 %v8419_v44 }
 0x4f2   : > { %5826 = vmatprep.mubr.msk.bf16.mxu1 %vm2902_vm8, %v3234_v19 }
 0x4f9   : > { %3491 = vmatmul.mubr.bf16.gmra.mrb[28].mxu1 %v3231_v6 }
 0x4fa   : > { %5851 = vmatprep.mubr.msk.bf16.mxu1 %vm2902_vm8, %v8315_v5 }
 0x501   : > { %3789 = vmatmul.mubr.bf16.vlgmr.msra.gmra.mrb[0].mxu1 %v8312_v11  ;;  %v9046_v11 = vld [vmem:[#allocation19_spill] sm:$0xff] }
 0x502   : > { %5852 = vmatprep.mubr.msk.bf16.mxu1 %vm2902_vm8, %v8328_v49  ;;  %v9047_v5 = vsub.s32 0, %v9046_v11  ;;  %v9048_v49 = vsub.s32 1, %v9046_v11 }
 0x509   : > { %3799 = vmatmul.mubr.bf16.gmra.mrb[4].mxu1 %v8325_v62  ;;  %v8480_v62 = vrot.slane %v2747_v2, %v9047_v5 }
 0x50a   : > { %5853 = vmatprep.mubr.msk.bf16.mxu1 %vm2902_vm8, %v8341_v14 }
 0x511   : > { %3809 = vmatmul.mubr.bf16.gmra.mrb[8].mxu1 %v8338_v34  ;;  %v8484_v34 = vrot.slane %v2747_v2, %v9048_v49 }
 0x512   : > { %5854 = vmatprep.mubr.msk.bf16.mxu1 %vm2902_vm8, %v8354_v36 }
 0x519   : > { %3819 = vmatmul.mubr.bf16.gmra.mrb[12].mxu1 %v8351_v45 }
 0x51a   : > { %5855 = vmatprep.mubr.msk.bf16.mxu1 %vm2902_vm8, %v8369_v35 }
 0x521   : > { %3829 = vmatmul.mubr.bf16.gmra.mrb[16].mxu1 %v8365_v56 }
 0x522   : > { %5856 = vmatprep.mubr.msk.bf16.mxu1 %vm2902_vm8, %v8382_v16 }
 0x529   : > { %3839 = vmatmul.mubr.bf16.gmra.mrb[20].mxu1 %v8379_v28 }
 0x52a   : > { %5857 = vmatprep.mubr.msk.bf16.mxu1 %vm2902_vm8, %v8415_v13 }
 0x531   : > { %3849 = vmatmul.mubr.bf16.gmra.mrb[24].mxu1 %v8406_v52 }
 0x532   : > { %5858 = vmatprep.mubr.msk.bf16.mxu1 %vm2902_vm8, %v3601_v63 }
 0x539   : > { %3859 = vmatmul.mubr.bf16.gmra.mrb[28].mxu1 %v3599_v31 }
 0x5d4   : > { %v3790_v14 = vpop.f32.mrb[0].mxu1 }
 0x5d5   : > { %v6089_v45 = vadd.f32 %v3790_v14, %v8480_v62  ;;  %v3792_v36 = vpop.f32.mrb[1].mxu1 }
 0x5d6   : > { %v6090_v56 = vadd.f32 %v3792_v36, %v8484_v34  ;;  %v3794_v35 = vpop.f32.mrb[2].mxu1 }
 0x5d7   : > { %v3901_v28 = vmax.f32 %v6089_v45, 0.0  ;;  %v6091_v16 = vadd.f32 %v3794_v35, %v8480_v62  ;;  %v3796_v61 = vpop.f32.mrb[3].mxu1 }
 0x5d8   : > { %v3902_v40 = vmax.f32 %v6090_v56, 0.0  ;;  %v6092_v7 = vadd.f32 %v3796_v61, %v8484_v34 }
 0x5d9   : > { %v3903_v41 = vmax.f32 %v6091_v16, 0.0  ;;  %v3965_v30 = vrot.slane %v3901_v28, 1 }
 0x5da   : > { %v3904_v60 = vmax.f32 %v6092_v7, 0.0  ;;  %v3968_v33 = vrot.slane %v3902_v40, 1 }
 0x5db   : > { %v3966_v31 = vrot.slane %v3903_v41, 1 }
 0x5dc   : > { %v3969_v23 = vrot.slane %v3904_v60, 1  ;;  %v3800_v63 = vpop.f32.mrb[4].mxu1 }
 0x5dd   : > { %v6093_v48 = vadd.f32 %v3800_v63, %v8480_v62  ;;  %v3802_v24 = vpop.f32.mrb[5].mxu1  ;;  %v3967_v52 = vsel %vm1387_vm2, %v3965_v30, %v3966_v31 }
 0x5de   : > { %v6094_v43 = vadd.f32 %v3802_v24, %v8484_v34  ;;  %v3804_v53 = vpop.f32.mrb[6].mxu1  ;;  %v3970_v13 = vsel %vm1387_vm2, %v3968_v33, %v3969_v23  ;;  %v8494_v44 = vmax.f32 %v3901_v28, %v3967_v52 }
 0x5df   : > { %v3905_v26 = vmax.f32 %v6093_v48, 0.0  ;;  %v6095_v32 = vadd.f32 %v3804_v53, %v8480_v62  ;;  %v3806_v29 = vpop.f32.mrb[7].mxu1  ;;  %v8497_v3 = vmax.f32 %v3902_v40, %v3970_v13 }
 0x5e0   : > { %v3906_v51 = vmax.f32 %v6094_v43, 0.0  ;;  %v6096_v37 = vadd.f32 %v3806_v29, %v8484_v34 }
 0x5e1   : > { %v3971_v27 = vrot.slane %v3905_v26, 1  ;;  %v3907_v50 = vmax.f32 %v6095_v32, 0.0  ;;  %v6600_v18 = vpack.i.bf16 %v8497_v3, %v8494_v44 }
 0x5e2   : > { %v3973_v54 = vrot.slane %v3906_v51, 1  ;;  %v3908_v47 = vmax.f32 %v6096_v37, 0.0 }
 0x5e3   : > { %v3975_v25 = vrot.slane %v3907_v50, 1  ;;  %6601 = vrot.lane.b32.xlu0 %v6600_v18, %s7183_s30  ;;  %v3972_v8 = vsel %vm1387_vm2, %v3966_v31, %v3971_v27 }
 0x5e4   : > { %v3977_v17 = vrot.slane %v3908_v47, 1  ;;  %v3810_v1 = vpop.f32.mrb[8].mxu1  ;;  %v3974_v58 = vsel %vm1387_vm2, %v3969_v23, %v3973_v54  ;;  %v8505_v10 = vmax.f32 %v3903_v41, %v3972_v8 }
 0x5e5   : > { %v6097_v0 = vadd.f32 %v3810_v1, %v8480_v62  ;;  %v3812_v20 = vpop.f32.mrb[9].mxu1  ;;  %v8508_v42 = vmax.f32 %v3904_v60, %v3974_v58  ;;  %v3976_v57 = vsel %vm1387_vm2, %v3971_v27, %v3975_v25 }
 0x5e6   : > { %v6098_v39 = vadd.f32 %v3812_v20, %v8484_v34  ;;  %v3814_v9 = vpop.f32.mrb[10].mxu1  ;;  %v3978_v38 = vsel %vm1387_vm2, %v3973_v54, %v3977_v17  ;;  %v8513_v22 = vmax.f32 %v3905_v26, %v3976_v57 }
 0x5e7   : > { %v3909_v55 = vmax.f32 %v6097_v0, 0.0  ;;  %v6099_v46 = vadd.f32 %v3814_v9, %v8480_v62  ;;  %v3816_v12 = vpop.f32.mrb[11].mxu1  ;;  %v6605_v19 = vpack.i.bf16 %v8508_v42, %v8505_v10  ;;  %v8518_v15 = vmax.f32 %v3906_v51, %v3978_v38 }
 0x5e8   : > { %v3910_v6 = vmax.f32 %v6098_v39, 0.0  ;;  %v6100_v2 = vadd.f32 %v3816_v12, %v8484_v34 }
 0x5e9   : > { %v3979_v11 = vrot.slane %v3909_v55, 1  ;;  %v3911_v5 = vmax.f32 %v6099_v46, 0.0  ;;  %6606 = vrot.lane.b32.xlu1 %v6605_v19, %s7183_s30  ;;  %v6610_v49 = vpack.i.bf16 %v8518_v15, %v8513_v22 }
 0x5ea   : > { %v3981_v14 = vrot.slane %v3910_v6, 1  ;;  %v3912_v45 = vmax.f32 %v6100_v2, 0.0 }
 0x5eb   : > { %v3983_v36 = vrot.slane %v3911_v5, 1  ;;  %6611 = vrot.lane.b32.xlu0 %v6610_v49, %s7183_s30  ;;  %v3980_v56 = vsel %vm1387_vm2, %v3975_v25, %v3979_v11 }
 0x5ec   : > { %v3985_v35 = vrot.slane %v3912_v45, 1  ;;  %v3820_v28 = vpop.f32.mrb[12].mxu1  ;;  %v3982_v16 = vsel %vm1387_vm2, %v3977_v17, %v3981_v14  ;;  %v8527_v61 = vmax.f32 %v3907_v50, %v3980_v56 }
 0x5ed   : > { %v6101_v40 = vadd.f32 %v3820_v28, %v8480_v62  ;;  %v3822_v7 = vpop.f32.mrb[13].mxu1  ;;  %v8530_v41 = vmax.f32 %v3908_v47, %v3982_v16  ;;  %v3984_v60 = vsel %vm1387_vm2, %v3979_v11, %v3983_v36 }
 0x5ee   : > { %v6102_v30 = vadd.f32 %v3822_v7, %v8484_v34  ;;  %v3824_v31 = vpop.f32.mrb[14].mxu1  ;;  %v3986_v33 = vsel %vm1387_vm2, %v3981_v14, %v3985_v35  ;;  %v8535_v23 = vmax.f32 %v3909_v55, %v3984_v60 }
 0x5ef   : > { %v3913_v63 = vmax.f32 %v6101_v40, 0.0  ;;  %v6103_v48 = vadd.f32 %v3824_v31, %v8480_v62  ;;  %v3826_v24 = vpop.f32.mrb[15].mxu1  ;;  %v6615_v52 = vpack.i.bf16 %v8530_v41, %v8527_v61  ;;  %v8540_v43 = vmax.f32 %v3910_v6, %v3986_v33 }
 0x5f0   : > { %v3914_v53 = vmax.f32 %v6102_v30, 0.0  ;;  %v6104_v13 = vadd.f32 %v3826_v24, %v8484_v34 }
 0x5f1   : > { %v3987_v26 = vrot.slane %v3913_v63, 1  ;;  %v3915_v32 = vmax.f32 %v6103_v48, 0.0  ;;  %6616 = vrot.lane.b32.xlu1 %v6615_v52, %s7183_s30  ;;  %v6620_v29 = vpack.i.bf16 %v8540_v43, %v8535_v23 }
 0x5f2   : > { %v3989_v51 = vrot.slane %v3914_v53, 1  ;;  %v3916_v37 = vmax.f32 %v6104_v13, 0.0 }
 0x5f3   : > { %v3991_v27 = vrot.slane %v3915_v32, 1  ;;  %6621 = vrot.lane.b32.xlu0 %v6620_v29, %s7183_s30  ;;  %v3988_v50 = vsel %vm1387_vm2, %v3983_v36, %v3987_v26 }
 0x5f4   : > { %v3993_v18 = vrot.slane %v3916_v37, 1  ;;  %v3830_v54 = vpop.f32.mrb[16].mxu1  ;;  %v3990_v47 = vsel %vm1387_vm2, %v3985_v35, %v3989_v51  ;;  %v8549_v25 = vmax.f32 %v3911_v5, %v3988_v50 }
 0x5f5   : > { %v6105_v8 = vadd.f32 %v3830_v54, %v8480_v62  ;;  %v3832_v17 = vpop.f32.mrb[17].mxu1  ;;  %v8552_v1 = vmax.f32 %v3912_v45, %v3990_v47  ;;  %v3992_v58 = vsel %vm1387_vm2, %v3987_v26, %v3991_v27 }
 0x5f6   : > { %v6106_v0 = vadd.f32 %v3832_v17, %v8484_v34  ;;  %v3834_v20 = vpop.f32.mrb[18].mxu1  ;;  %v3994_v57 = vsel %vm1387_vm2, %v3989_v51, %v3993_v18  ;;  %v8557_v39 = vmax.f32 %v3913_v63, %v3992_v58 }
 0x5f7   : > { %v3917_v9 = vmax.f32 %v6105_v8, 0.0  ;;  %v6107_v38 = vadd.f32 %v3834_v20, %v8480_v62  ;;  %v3836_v55 = vpop.f32.mrb[19].mxu1  ;;  %v6625_v46 = vpack.i.bf16 %v8552_v1, %v8549_v25  ;;  %v8562_v12 = vmax.f32 %v3914_v53, %v3994_v57 }
 0x5f8   : > { %v3918_v19 = vmax.f32 %v6106_v0, 0.0  ;;  %v6108_v6 = vadd.f32 %v3836_v55, %v8484_v34 }
 0x5f9   : > { %v3995_v2 = vrot.slane %v3917_v9, 1  ;;  %v3919_v11 = vmax.f32 %v6107_v38, 0.0  ;;  %6626 = vrot.lane.b32.xlu1 %v6625_v46, %s7183_s30  ;;  %v6630_v5 = vpack.i.bf16 %v8562_v12, %v8557_v39 }
 0x5fa   : > { %v3997_v49 = vrot.slane %v3918_v19, 1  ;;  %v3920_v14 = vmax.f32 %v6108_v6, 0.0 }
 0x5fb   : > { %v3999_v45 = vrot.slane %v3919_v11, 1  ;;  %6631 = vrot.lane.b32.xlu0 %v6630_v5, %s7183_s30  ;;  %v3996_v36 = vsel %vm1387_vm2, %v3991_v27, %v3995_v2 }
 0x5fc   : > { %v4001_v56 = vrot.slane %v3920_v14, 1  ;;  %v3840_v35 = vpop.f32.mrb[20].mxu1  ;;  %v3998_v28 = vsel %vm1387_vm2, %v3993_v18, %v3997_v49  ;;  %v8571_v16 = vmax.f32 %v3915_v32, %v3996_v36 }
 0x5fd   : > { %v6109_v40 = vadd.f32 %v3840_v35, %v8480_v62  ;;  %v3842_v7 = vpop.f32.mrb[21].mxu1  ;;  %v8574_v60 = vmax.f32 %v3916_v37, %v3998_v28  ;;  %v4000_v30 = vsel %vm1387_vm2, %v3995_v2, %v3999_v45 }
 0x5fe   : > { %v6110_v31 = vadd.f32 %v3842_v7, %v8484_v34  ;;  %v3844_v33 = vpop.f32.mrb[22].mxu1  ;;  %v4002_v63 = vsel %vm1387_vm2, %v3997_v49, %v4001_v56  ;;  %v8579_v48 = vmax.f32 %v3917_v9, %v4000_v30 }
 0x5ff   : > { %v3921_v24 = vmax.f32 %v6109_v40, 0.0  ;;  %v6111_v52 = vadd.f32 %v3844_v33, %v8480_v62  ;;  %v3846_v53 = vpop.f32.mrb[23].mxu1  ;;  %v6635_v13 = vpack.i.bf16 %v8574_v60, %v8571_v16  ;;  %v8584_v26 = vmax.f32 %v3918_v19, %v4002_v63 }
 0x600   : > { %v3922_v32 = vmax.f32 %v6110_v31, 0.0  ;;  %v6112_v29 = vadd.f32 %v3846_v53, %v8484_v34 }
 0x601   : > { %v4003_v51 = vrot.slane %v3921_v24, 1  ;;  %v3923_v37 = vmax.f32 %v6111_v52, 0.0  ;;  %6636 = vrot.lane.b32.xlu1 %v6635_v13, %s7183_s30  ;;  %v6640_v27 = vpack.i.bf16 %v8584_v26, %v8579_v48 }
 0x602   : > { %v4005_v50 = vrot.slane %v3922_v32, 1  ;;  %v3924_v18 = vmax.f32 %v6112_v29, 0.0 }
 0x603   : > { %v4007_v54 = vrot.slane %v3923_v37, 1  ;;  %6641 = vrot.lane.b32.xlu0 %v6640_v27, %s7183_s30  ;;  %v4004_v47 = vsel %vm1387_vm2, %v3999_v45, %v4003_v51 }
 0x604   : > { %v4009_v8 = vrot.slane %v3924_v18, 1  ;;  %v3850_v17 = vpop.f32.mrb[24].mxu1  ;;  %v4006_v58 = vsel %vm1387_vm2, %v4001_v56, %v4005_v50  ;;  %v8593_v0 = vmax.f32 %v3919_v11, %v4004_v47 }
 0x605   : > { %v6113_v20 = vadd.f32 %v3850_v17, %v8480_v62  ;;  %v3852_v57 = vpop.f32.mrb[25].mxu1  ;;  %v8596_v9 = vmax.f32 %v3920_v14, %v4006_v58  ;;  %v4008_v38 = vsel %vm1387_vm2, %v4003_v51, %v4007_v54 }
 0x606   : > { %v6114_v55 = vadd.f32 %v3852_v57, %v8484_v34  ;;  %v3854_v46 = vpop.f32.mrb[26].mxu1  ;;  %v4010_v19 = vsel %vm1387_vm2, %v4005_v50, %v4009_v8  ;;  %v8601_v6 = vmax.f32 %v3921_v24, %v4008_v38 }
 0x607   : > { %v3925_v2 = vmax.f32 %v6113_v20, 0.0  ;;  %v6115_v5 = vadd.f32 %v3854_v46, %v8480_v62  ;;  %v3856_v49 = vpop.f32.mrb[27].mxu1  ;;  %v6645_v11 = vpack.i.bf16 %v8596_v9, %v8593_v0  ;;  %v8606_v45 = vmax.f32 %v3922_v32, %v4010_v19 }
 0x608   : > { %v3926_v14 = vmax.f32 %v6114_v55, 0.0  ;;  %v6116_v36 = vadd.f32 %v3856_v49, %v8484_v34 }
 0x609   : > { %v4011_v56 = vrot.slane %v3925_v2, 1  ;;  %v3927_v35 = vmax.f32 %v6115_v5, 0.0  ;;  %6646 = vrot.lane.b32.xlu1 %v6645_v11, %s7183_s30  ;;  %v6650_v28 = vpack.i.bf16 %v8606_v45, %v8601_v6 }
 0x60a   : > { %v4013_v40 = vrot.slane %v3926_v14, 1  ;;  %v3928_v7 = vmax.f32 %v6116_v36, 0.0 }
 0x60b   : > { %v4015_v30 = vrot.slane %v3927_v35, 1  ;;  %6651 = vrot.lane.b32.xlu0 %v6650_v28, %s7183_s30  ;;  %v4012_v31 = vsel %vm1387_vm2, %v4007_v54, %v4011_v56 }
 0x60c   : > { %v4017_v33 = vrot.slane %v3928_v7, 1  ;;  %v3860_v63 = vpop.f32.mrb[28].mxu1  ;;  %v4014_v24 = vsel %vm1387_vm2, %v4009_v8, %v4013_v40  ;;  %v8615_v52 = vmax.f32 %v3923_v37, %v4012_v31 }
 0x60d   : > { %v6117_v53 = vadd.f32 %v3860_v63, %v8480_v62  ;;  %v3862_v13 = vpop.f32.mrb[29].mxu1  ;;  %v8618_v32 = vmax.f32 %v3924_v18, %v4014_v24  ;;  %v4016_v29 = vsel %vm1387_vm2, %v4011_v56, %v4015_v30  ;;  %v6830_v63 = vld [vmem:[#allocation10 + $0x8] sm:$0xff]   ;;  %v6831_v24 = vld [vmem:[#allocation10 + $0x10] sm:$0xff]  }
 0x60e   : > { %v6118_v51 = vadd.f32 %v3862_v13, %v8484_v34  ;;  %v3864_v27 = vpop.f32.mrb[30].mxu1  ;;  %v4018_v50 = vsel %vm1387_vm2, %v4013_v40, %v4017_v33  ;;  %v8623_v47 = vmax.f32 %v3925_v2, %v4016_v29  ;;  %v6833_v13 = vld [vmem:[#allocation10 + $0x20] sm:$0xff]   ;;  %v6834_v29 = vld [vmem:[#allocation10 + $0x28] sm:$0xff]  }
 0x60f   : > { %v3929_v54 = vmax.f32 %v6117_v53, 0.0  ;;  %v6119_v17 = vadd.f32 %v3864_v27, %v8480_v62  ;;  %v3866_v8 = vpop.f32.mrb[31].mxu1  ;;  %v6655_v37 = vpack.i.bf16 %v8618_v32, %v8615_v52  ;;  %v8628_v58 = vmax.f32 %v3926_v14, %v4018_v50  ;;  %v6832_v53 = vld [vmem:[#allocation10 + $0x18] sm:$0xff]   ;;  %v6837_v50 = vld [vmem:[#allocation10 + $0x40] sm:$0xff]  }
 0x610   : > { %v3930_v18 = vmax.f32 %v6118_v51, 0.0  ;;  %v6120_v20 = vadd.f32 %v3866_v8, %v8484_v34  ;;  %v6835_v51 = vld [vmem:[#allocation10 + $0x30] sm:$0xff]   ;;  %v6836_v27 = vld [vmem:[#allocation10 + $0x38] sm:$0xff]  }
 0x611   : > { %v4019_v57 = vrot.slane %v3929_v54, 1  ;;  %v3931_v38 = vmax.f32 %v6119_v17, 0.0  ;;  %6656 = vrot.lane.b32.xlu1 %v6655_v37, %s7183_s30  ;;  %v6660_v55 = vpack.i.bf16 %v8628_v58, %v8623_v47  ;;  %v6839_v17 = vld [vmem:[#allocation10 + $0x50] sm:$0xff]   ;;  %v6841_v8 = vld [vmem:[#allocation10 + $0x58] sm:$0xff]  }
 0x612   : > { %v4021_v46 = vrot.slane %v3930_v18, 1  ;;  %v3932_v19 = vmax.f32 %v6120_v20, 0.0 }
 0x613   : > { %v4023_v2 = vrot.slane %v3931_v38, 1  ;;  %6661 = vrot.lane.b32.xlu0 %v6660_v55, %s7183_s30  ;;  %v4020_v62 = vsel %vm1387_vm2, %v4015_v30, %v4019_v57 }
 0x614   : > { %v4025_v5 = vrot.slane %v3932_v19, 1  ;;  %v4022_v49 = vsel %vm1387_vm2, %v4017_v33, %v4021_v46  ;;  %v8637_v11 = vmax.f32 %v3927_v35, %v4020_v62  ;;  %v6829_v33 = vld [vmem:[#allocation10] sm:$0xff]  }
 0x615   : > { %v8639_v34 = vmax.f32 %v3928_v7, %v4022_v49  ;;  %v4024_v14 = vsel %vm1387_vm2, %v4019_v57, %v4023_v2  ;;  %v8645_v28 = vmax.f32 %v3931_v38, %v4023_v2  ;;  %4499 = vmatpush1.bf16.msra.mxu1 %v6829_v33 }
 0x616   : > { %v4026_v36 = vsel %vm1387_vm2, %v4021_v46, %v4025_v5  ;;  %v8643_v56 = vmax.f32 %v3929_v54, %v4024_v14  ;;  %v8647_v40 = vmax.f32 %v3932_v19, %v4025_v5  ;;  %4500 = vmatprep.subr.bf16.mxu1 %v9045_v4  ;;  %v6838_v54 = vld [vmem:[#allocation10 + $0x48] sm:$0xff]  }
 0x617   : > { %v6665_v30 = vpack.i.bf16 %v8639_v34, %v8637_v11  ;;  %v8651_v31 = vmax.f32 %v3930_v18, %v4026_v36 }
 0x618   : > { %v6675_v7 = vpack.i.bf16 %v8647_v40, %v8645_v28 }
 0x619   : > { %6666 = vrot.lane.b32.xlu1 %v6665_v30, %s7183_s30  ;;  %v6670_v35 = vpack.i.bf16 %v8651_v31, %v8643_v56  ;;  %4501 = vmatpush1.bf16.msra.mxu1 %v6830_v63 }
 0x61a   : > { %4502 = vmatprep.subr.bf16.mxu1 %v9045_v4 }
 0x61b   : > { %6671 = vrot.lane.b32.xlu0 %v6670_v35, %s7183_s30 }
 0x61d   : > { %6676 = vrot.lane.b32.xlu1 %v6675_v7, %s7183_s30  ;;  %4503 = vmatpush1.bf16.msra.mxu1 %v6831_v24  ;;  %s7098_s30 = scalar_lea.vmem %s7097_s9, 256 }
 0x61e   : > { %4504 = vmatprep.subr.bf16.mxu1 %v9045_v4  ;;  %p7100_p12 = scmp.lt.s32.totalorder %s7098_s30, %s7092_s14 }
 0x620   : > { %p7101_p13 = por %p7100_p12, %p7099_p11 }
 0x621   : > { %4505 = vmatpush1.bf16.msra.mxu1 %v6832_v53 }
 0x622   : > { %4506 = vmatprep.subr.bf16.mxu1 %v9045_v4  ;;  %p7102_p8 = pnand %p7101_p13, %p7095_p1 }
 0x625   : > { %4507 = vmatpush1.bf16.msra.mxu1 %v6833_v13 }
 0x626   : > { %4508 = vmatprep.subr.bf16.mxu1 %v9045_v4 }
 0x629   : > { %4509 = vmatpush1.bf16.msra.mxu1 %v6834_v29 }
 0x62a   : > { %4510 = vmatprep.subr.bf16.mxu1 %v9045_v4 }
 0x62d   : > { %4511 = vmatpush1.bf16.msra.mxu1 %v6835_v51 }
 0x62e   : > { %4512 = vmatprep.subr.bf16.mxu1 %v9045_v4 }
 0x631   : > { %4513 = vmatpush1.bf16.msra.mxu1 %v6836_v27 }
 0x632   : > { %4514 = vmatprep.subr.bf16.mxu1 %v9045_v4 }
 0x635   : > { %4515 = vmatpush1.bf16.msra.mxu1 %v6837_v50 }
 0x636   : > { %4516 = vmatprep.subr.bf16.mxu1 %v9045_v4 }
 0x639   : > { %4517 = vmatpush1.bf16.msra.mxu1 %v6838_v54 }
 0x63a   : > { %4518 = vmatprep.subr.bf16.mxu1 %v9045_v4 }
 0x63d   : > { %4519 = vmatpush1.bf16.msra.mxu1 %v6839_v17 }
 0x63e   : > { %4520 = vmatprep.subr.bf16.mxu1 %v9045_v4 }
 0x641   : > { %4521 = vmatpush1.bf16.msra.mxu1 %v6841_v8 }
 0x642   : > { %4522 = vmatprep.subr.bf16.mxu1 %v9045_v4 }
 0x655   : > { %v6602_v37 = vpop.permute.xlu0 %6601 }
 0x656   : > { %v6604_v18 = vunpack.i.h.bf16 %v6602_v37  ;;  %v6603_v20 = vunpack.i.l.bf16 %v6602_v37 }
 0x658   : > { %v4187_v38 = vsel %vm2319_vm3, %v6603_v20, %v6604_v18  ;;  %v4236_v2 = vmax.f32 %v8497_v3, %v6604_v18 }
 0x659   : > { %v4235_v49 = vmax.f32 %v8494_v44, %v4187_v38 }
 0x65b   : > { %v6607_v57 = vpop.permute.xlu1 %6606 }
 0x65c   : > { %v6609_v55 = vunpack.i.h.bf16 %v6607_v57  ;;  %v6608_v46 = vunpack.i.l.bf16 %v6607_v57 }
 0x65d   : > { %v6612_v19 = vpop.permute.xlu0 %6611 }
 0x65e   : > { %v4238_v62 = vmax.f32 %v8508_v42, %v6609_v55  ;;  %v4188_v5 = vsel %vm2319_vm3, %v6608_v46, %v6609_v55  ;;  %v6614_v36 = vunpack.i.h.bf16 %v6612_v19  ;;  %v6613_v30 = vunpack.i.l.bf16 %v6612_v19 }
 0x65f   : > { %v4237_v14 = vmax.f32 %v8505_v10, %v4188_v5 }
 0x660   : > { %v4274_v35 = vpack.c.bf16 %v4238_v62, %v4236_v2  ;;  %v4189_v63 = vsel %vm2319_vm3, %v6613_v30, %v6614_v36  ;;  %v4240_v42 = vmax.f32 %v8518_v15, %v6614_v36 }
 0x661   : > { %v4273_v7 = vpack.c.bf16 %v4237_v14, %v4235_v49  ;;  %v4239_v10 = vmax.f32 %v8513_v22, %v4189_v63 }
 0x662   : > { %4319 = vmatprep.subr.bf16.mxu0 %v4274_v35 }
 0x663   : > { %4320 = vmatpush1.bf16.msra.mxu0 %v4273_v7  ;;  %v6617_v33 = vpop.permute.xlu1 %6616 }
 0x664   : > { %v6619_v24 = vunpack.i.h.bf16 %v6617_v33  ;;  %v6618_v53 = vunpack.i.l.bf16 %v6617_v33 }
 0x665   : > { %v6622_v3 = vpop.permute.xlu0 %6621 }
 0x666   : > { %v4242_v13 = vmax.f32 %v8530_v41, %v6619_v24  ;;  %v4190_v44 = vsel %vm2319_vm3, %v6618_v53, %v6619_v24  ;;  %v6624_v51 = vunpack.i.h.bf16 %v6622_v3  ;;  %v6623_v27 = vunpack.i.l.bf16 %v6622_v3 }
 0x667   : > { %v4241_v29 = vmax.f32 %v8527_v61, %v4190_v44 }
 0x668   : > { %v4276_v50 = vpack.c.bf16 %v4242_v13, %v4240_v42  ;;  %v4191_v8 = vsel %vm2319_vm3, %v6623_v27, %v6624_v51  ;;  %v4244_v41 = vmax.f32 %v8540_v43, %v6624_v51 }
 0x669   : > { %v4275_v54 = vpack.c.bf16 %v4241_v29, %v4239_v10  ;;  %v4243_v61 = vmax.f32 %v8535_v23, %v4191_v8 }
 0x66a   : > { %4321 = vmatprep.subr.bf16.mxu0 %v4276_v50 }
 0x66b   : > { %4322 = vmatpush1.bf16.msra.mxu0 %v4275_v54  ;;  %v6627_v17 = vpop.permute.xlu1 %6626 }
 0x66c   : > { %v6629_v37 = vunpack.i.h.bf16 %v6627_v17  ;;  %v6628_v18 = vunpack.i.l.bf16 %v6627_v17 }
 0x66d   : > { %v6632_v15 = vpop.permute.xlu0 %6631 }
 0x66e   : > { %v4246_v20 = vmax.f32 %v8552_v1, %v6629_v37  ;;  %v4192_v22 = vsel %vm2319_vm3, %v6628_v18, %v6629_v37  ;;  %v6634_v38 = vunpack.i.h.bf16 %v6632_v15  ;;  %v6633_v55 = vunpack.i.l.bf16 %v6632_v15 }
 0x66f   : > { %v4245_v57 = vmax.f32 %v8549_v25, %v4192_v22 }
 0x670   : > { %v4278_v46 = vpack.c.bf16 %v4246_v20, %v4244_v41  ;;  %v4193_v62 = vsel %vm2319_vm3, %v6633_v55, %v6634_v38  ;;  %v4248_v1 = vmax.f32 %v8562_v12, %v6634_v38 }
 0x671   : > { %v4277_v19 = vpack.c.bf16 %v4245_v57, %v4243_v61  ;;  %v4247_v25 = vmax.f32 %v8557_v39, %v4193_v62 }
 0x672   : > { %4323 = vmatprep.subr.bf16.mxu0 %v4278_v46 }
 0x673   : > { %4324 = vmatpush1.bf16.msra.mxu0 %v4277_v19  ;;  %v6637_v2 = vpop.permute.xlu1 %6636 }
 0x674   : > { %v6639_v5 = vunpack.i.h.bf16 %v6637_v2  ;;  %v6638_v49 = vunpack.i.l.bf16 %v6637_v2 }
 0x675   : > { %v6642_v43 = vpop.permute.xlu0 %6641 }
 0x676   : > { %v4250_v14 = vmax.f32 %v8574_v60, %v6639_v5  ;;  %v4194_v23 = vsel %vm2319_vm3, %v6638_v49, %v6639_v5  ;;  %v6644_v30 = vunpack.i.h.bf16 %v6642_v43  ;;  %v6643_v35 = vunpack.i.l.bf16 %v6642_v43 }
 0x677   : > { %v4249_v36 = vmax.f32 %v8571_v16, %v4194_v23 }
 0x678   : > { %v4280_v7 = vpack.c.bf16 %v4250_v14, %v4248_v1  ;;  %v4195_v24 = vsel %vm2319_vm3, %v6643_v35, %v6644_v30  ;;  %v4252_v60 = vmax.f32 %v8584_v26, %v6644_v30 }
 0x679   : > { %v4279_v33 = vpack.c.bf16 %v4249_v36, %v4247_v25  ;;  %v4251_v16 = vmax.f32 %v8579_v48, %v4195_v24 }
 0x67a   : > { %4325 = vmatprep.subr.bf16.mxu0 %v4280_v7  ;;  %v6827_v7 = vld [vmem:[#allocation5] sm:$0xff]  }
 0x67b   : > { %4326 = vmatpush1.bf16.msra.mxu0 %v4279_v33  ;;  %v6647_v63 = vpop.permute.xlu1 %6646 }
 0x67c   : > { %v6649_v53 = vunpack.i.h.bf16 %v6647_v63  ;;  %v6648_v3 = vunpack.i.l.bf16 %v6647_v63 }
 0x67d   : > { %v6652_v12 = vpop.permute.xlu0 %6651 }
 0x67e   : > { %v4254_v42 = vmax.f32 %v8596_v9, %v6649_v53  ;;  %v4196_v39 = vsel %vm2319_vm3, %v6648_v3, %v6649_v53  ;;  %v6654_v44 = vunpack.i.h.bf16 %v6652_v12  ;;  %v6653_v10 = vunpack.i.l.bf16 %v6652_v12  ;;  %v6843_v3 = vld [vmem:[#allocation10 + $0x68] sm:$0xff]  }
 0x67f   : > { %v4253_v13 = vmax.f32 %v8593_v0, %v4196_v39 }
 0x680   : > { %v4282_v29 = vpack.c.bf16 %v4254_v42, %v4252_v60  ;;  %v4197_v50 = vsel %vm2319_vm3, %v6653_v10, %v6654_v44  ;;  %v4256_v9 = vmax.f32 %v8606_v45, %v6654_v44  ;;  %v6845_v44 = vld [vmem:[#allocation10 + $0x78] sm:$0xff]  }
 0x681   : > { %v4281_v51 = vpack.c.bf16 %v4253_v13, %v4251_v16  ;;  %v4255_v0 = vmax.f32 %v8601_v6, %v4197_v50  ;;  %v6848_v50 = vld [vmem:[#allocation10 + $0x90] sm:$0xff]  }
 0x682   : > { %4327 = vmatprep.subr.bf16.mxu0 %v4282_v29 }
 0x683   : > { %4328 = vmatpush1.bf16.msra.mxu0 %v4281_v51  ;;  %v6657_v27 = vpop.permute.xlu1 %6656  ;;  %v6846_v51 = vld [vmem:[#allocation10 + $0x80] sm:$0xff]  }
 0x684   : > { %v6659_v54 = vunpack.i.h.bf16 %v6657_v27  ;;  %v6658_v17 = vunpack.i.l.bf16 %v6657_v27  ;;  %v6847_v27 = vld [vmem:[#allocation10 + $0x88] sm:$0xff]  }
 0x685   : > { %v6662_v26 = vpop.permute.xlu0 %6661 }
 0x686   : > { %v4258_v8 = vmax.f32 %v8618_v32, %v6659_v54  ;;  %v4198_v48 = vsel %vm2319_vm3, %v6658_v17, %v6659_v54  ;;  %v6664_v18 = vunpack.i.h.bf16 %v6662_v26  ;;  %v6663_v15 = vunpack.i.l.bf16 %v6662_v26  ;;  %v6849_v54 = vld [vmem:[#allocation10 + $0x98] sm:$0xff]   ;;  %v6850_v17 = vld [vmem:[#allocation10 + $0xa0] sm:$0xff]   ;;  %v6851_v26 = vld [vmem:[#allocation10 + $0xa8] sm:$0xff]  }
 0x687   : > { %v4257_v37 = vmax.f32 %v8615_v52, %v4198_v48  ;;  %v6854_v48 = vld [vmem:[#allocation10 + $0xc0] sm:$0xff]  }
 0x688   : > { %v4284_v41 = vpack.c.bf16 %v4258_v8, %v4256_v9  ;;  %v4199_v61 = vsel %vm2319_vm3, %v6663_v15, %v6664_v18  ;;  %v4260_v52 = vmax.f32 %v8628_v58, %v6664_v18  ;;  %v6852_v9 = vld [vmem:[#allocation10 + $0xb0] sm:$0xff]   ;;  %v6853_v8 = vld [vmem:[#allocation10 + $0xb8] sm:$0xff]  }
 0x689   : > { %v4283_v20 = vpack.c.bf16 %v4257_v37, %v4255_v0  ;;  %v4259_v19 = vmax.f32 %v8623_v47, %v4199_v61  ;;  %v6855_v0 = vld [vmem:[#allocation10 + $0xc8] sm:$0xff]   ;;  %v6856_v18 = vld [vmem:[#allocation10 + $0xd0] sm:$0xff]  }
 0x68a   : > { %4329 = vmatprep.subr.bf16.mxu0 %v4284_v41  ;;  %v6859_v61 = vld [vmem:[#allocation10 + $0xe8] sm:$0xff]  }
 0x68b   : > { %4330 = vmatpush1.bf16.msra.mxu0 %v4283_v20  ;;  %v6667_v22 = vpop.permute.xlu1 %6666  ;;  %v6857_v20 = vld [vmem:[#allocation10 + $0xd8] sm:$0xff]  }
 0x68c   : > { %v6669_v57 = vunpack.i.h.bf16 %v6667_v22  ;;  %v6668_v38 = vunpack.i.l.bf16 %v6667_v22  ;;  %v6858_v22 = vld [vmem:[#allocation10 + $0xe0] sm:$0xff]  }
 0x68d   : > { %v6672_v45 = vpop.permute.xlu0 %6671 }
 0x68e   : > { %v4262_v32 = vmax.f32 %v8639_v34, %v6669_v57  ;;  %v4200_v55 = vsel %vm2319_vm3, %v6668_v38, %v6669_v57  ;;  %v6674_v46 = vunpack.i.h.bf16 %v6672_v45  ;;  %v6673_v6 = vunpack.i.l.bf16 %v6672_v45  ;;  %v6860_v57 = vld [vmem:[#allocation10 + $0xf0] sm:$0xff]   ;;  %v6861_v38 = vld [vmem:[#allocation10 + $0xf8] sm:$0xff]   ;;  %v6862_v45 = vld [vmem:[#allocation10 + $0x100] sm:$0xff]  }
 0x68f   : > { %v4261_v2 = vmax.f32 %v8637_v11, %v4200_v55  ;;  %v6677_v62 = vpop.permute.xlu1 %6676 }
 0x690   : > { %v4201_v5 = vsel %vm2319_vm3, %v6673_v6, %v6674_v46  ;;  %v6679_v49 = vunpack.i.h.bf16 %v6677_v62  ;;  %v6678_v43 = vunpack.i.l.bf16 %v6677_v62  ;;  %v4286_v1 = vpack.c.bf16 %v4262_v32, %v4260_v52  ;;  %v6863_v52 = vld [vmem:[#allocation10 + $0x108] sm:$0xff]   ;;  %v6866_v62 = vld [vmem:[#allocation10 + $0x120] sm:$0xff]  }
 0x691   : > { %v4285_v14 = vpack.c.bf16 %v4261_v2, %v4259_v19  ;;  %v4264_v23 = vmax.f32 %v8651_v31, %v6674_v46  ;;  %v4263_v36 = vmax.f32 %v8643_v56, %v4201_v5  ;;  %v6840_v56 = vld [vmem:[#allocation5 + $0x10] sm:$0xff]   ;;  %v6842_v31 = vld [vmem:[#allocation10 + $0x60] sm:$0xff]   ;;  %v6865_v2 = vld [vmem:[#allocation10 + $0x118] sm:$0xff]  }
 0x692   : > { %v4266_v34 = vmax.f32 %v8647_v40, %v6679_v49  ;;  %v4202_v25 = vsel %vm2319_vm3, %v6678_v43, %v6679_v49  ;;  %4331 = vmatprep.subr.bf16.mxu0 %v4286_v1  ;;  %v6828_v40 = vld [vmem:[#allocation5 + $0x8] sm:$0xff]   ;;  %v6864_v19 = vld [vmem:[#allocation10 + $0x110] sm:$0xff]  }
 0x693   : > { %v4265_v58 = vmax.f32 %v8645_v28, %v4202_v25  ;;  %4332 = vmatpush1.bf16.msra.mxu0 %v4285_v14  ;;  %v4493_v28 = vsel %vm1387_vm2, 4294967295, %v7184_v59  ;;  %v6844_v59 = vld [vmem:[#allocation10 + $0x70] sm:$0xff]   ;;  %v6867_v5 = vld [vmem:[#allocation10 + $0x128] sm:$0xff]   ;;  %v6869_v14 = vld [vmem:[#allocation10 + $0x138] sm:$0xff]  }
 0x694   : > { %v4288_v47 = vpack.c.bf16 %v4266_v34, %v4264_v23  ;;  %v6868_v49 = vld [vmem:[#allocation10 + $0x130] sm:$0xff]   ;;  %v6870_v34 = vld [vmem:[#allocation10 + $0x140] sm:$0xff]   ;;  %v6871_v25 = vld [vmem:[#allocation10 + $0x148] sm:$0xff]  }
 0x695   : > { %v4287_v11 = vpack.c.bf16 %v4265_v58, %v4263_v36  ;;  %v6872_v36 = vld [vmem:[#allocation10 + $0x150] sm:$0xff]   ;;  %v6873_v58 = vld [vmem:[#allocation10 + $0x158] sm:$0xff]  }
 0x696   : > { %v4317_v30 = vand.u32 %v4288_v47, %v8246_v21  ;;  %v6874_v47 = vld [vmem:[#allocation10 + $0x160] sm:$0xff]  }
 0x697   : > { %v4314_v35 = vand.u32 %v4287_v11, %v8246_v21  ;;  %v8729_v21 = vsel %vm4492_vm9, %v4493_v28, 0  ;;  %v6875_v11 = vld [vmem:[#allocation10 + $0x168] sm:$0xff]   ;;  %v6878_v28 = vld [vmem:[#allocation10 + $0x180] sm:$0xff]  }
 0x698   : > { %4333 = vmatprep.subr.bf16.mxu0 %v4317_v30  ;;  %v4496_v33 = vand.u32 %v6842_v31, %v8729_v21  ;;  %v4655_v37 = vand.u32 %v6855_v0, %v8729_v21  ;;  %v4808_v43 = vand.u32 %v6868_v49, %v8729_v21  ;;  %v6876_v30 = vld [vmem:[#allocation10 + $0x170] sm:$0xff]   ;;  %v6895_v0 = vld [vmem:[#allocation10 + $0x208] sm:$0xff]  }
 0x699   : > { %4334 = vmatpush1.bf16.msra.mxu0 %v4314_v35  ;;  %v6908_v35 = vld [vmem:[%s9049_s8] sm:$0xff]   ;;  %v6910_v31 = vld [vmem:[%s9049_s8 + $0x10] sm:$0xff]  }
 0x69a   : > { %4523 = vmatpush1.bf16.msra.mxu1 %v4496_v33  ;;  %v6879_v33 = vld [vmem:[#allocation10 + $0x188] sm:$0xff]  }
 0x69b   : > { %4657 = vmatprep.subr.bf16.mxu1 %v9045_v4 }
 0x69c   : > { %5862 = vmatmul.mubr.msk.bf16.vlgmr.msra.gmra.mrb[96].mxu0 %vm2600_vm4, %v6827_v7  ;;  %v6877_v7 = vld [vmem:[#allocation10 + $0x178] sm:$0xff]  }
 0x69d   : > { %4361 = vmatprep.mubr.bf16.mxu0 %v9045_v4 }
 0x6a4   : > { %5863 = vmatmul.mubr.msk.bf16.gmra.mrb[100].mxu0 %vm2600_vm4, %v6828_v40  ;;  %v7185_v40 = vmov 0.0  }
 0x6a5   : > { %4371 = vmatprep.mubr.bf16.mxu0 %v9045_v4  ;;  %5989 = vmatprep.subr.bf16.mxu0 %v7185_v40 }
 0x6a6   : > { %5990 = vmatpush3.bf16.msra.mxu0 %v6908_v35  ;;  %v5950_v35 = vld [vmem:[%s9051_s12] ss:$0 sm:$0xff]  ;;  %s5529_s12 = scalar_lea.sflag [#allocation4], %s7503_s20 }
 0x6a7   : > { %5991 = vmatprep.subr.bf16.mxu0 %v7185_v40 }
 0x6ac   : > { %5864 = vmatmul.mubr.msk.bf16.gmra.mrb[104].mxu0 %vm2600_vm4, %v6840_v56  ;;  %v6909_v56 = vld [vmem:[%s9049_s8 + $0x8] sm:$0xff]  }
 0x6ad   : > { %5992 = vmatpush3.bf16.msra.mxu0 %v6909_v56  ;;  %6005 = vmatprep.mubr.msk.bf16.mxu0 %vm7186_vm12, %v7185_v40 }
 0x6ae   : > { %5993 = vmatprep.subr.bf16.mxu0 %v7185_v40 }
 0x6b1   : > { %5994 = vmatpush3.bf16.msra.mxu0 %v6910_v31 }
 0x6b2   : > { %5995 = vmatprep.subr.bf16.mxu0 %v7185_v40 }
 0x76f   : > { %v4353_v63 = vpop.f32.mrb[96].mxu0 }
 0x770   : > { %v4355_v24 = vpop.f32.mrb[97].mxu0  ;;  %v4383_v60 = vpack.c.bf16 %v4353_v63, %v4353_v63  ;;  %v6911_v63 = vld [vmem:[%s9049_s8 + $0x18] sm:$0xff]  }
 0x771   : > { %v4384_v53 = vpack.c.bf16 %v4355_v24, %v4355_v24  ;;  %v4357_v12 = vpop.f32.mrb[98].mxu0  ;;  %v6880_v24 = vld [vmem:[#allocation10 + $0x190] sm:$0xff]   ;;  %5996 = vmatpush3.bf16.msra.mxu0 %v6911_v63 }
 0x772   : > { %v4359_v42 = vpop.f32.mrb[99].mxu0  ;;  %v4545_v41 = vpack.c.bf16 %v4357_v12, %v4357_v12  ;;  %5997 = vmatprep.subr.bf16.mxu0 %v7185_v40 }
 0x773   : > { %5878 = vmatprep.mubr.msk.bf16.mxu1 %vm4488_vm10, %v4384_v53  ;;  %v4546_v39 = vpack.c.bf16 %v4359_v42, %v4359_v42  ;;  %v6881_v53 = vld [vmem:[#allocation10 + $0x198] sm:$0xff]   ;;  %v6882_v42 = vld [vmem:[#allocation10 + $0x1a0] sm:$0xff]  }
 0x774   : > { %4531 = vmatmul.mubr.bf16.vlgmr.msra.gmra.mrb[32].mxu1 %v4383_v60  ;;  %v4961_v12 = vand.u32 %v6881_v53, %v8729_v21  ;;  %v6913_v60 = vld [vmem:[%s9049_s8 + $0x28] sm:$0xff]  }
 0x775   : > { %4658 = vmatpush1.bf16.msra.mxu1 %v6843_v3  ;;  %5893 = vmatprep.mubr.msk.bf16.mxu1 %vm4488_vm10, %v4546_v39  ;;  %v6912_v3 = vld [vmem:[%s9049_s8 + $0x20] sm:$0xff]  }
 0x776   : > { %4659 = vmatprep.subr.bf16.mxu1 %v9045_v4  ;;  %5998 = vmatpush3.bf16.msra.mxu0 %v6912_v3 }
 0x777   : > { %v8736_v16 = vpop.f32.mrb[100].mxu0  ;;  %5999 = vmatprep.subr.bf16.mxu0 %v7185_v40 }
 0x778   : > { %v4365_v13 = vpop.f32.mrb[101].mxu0  ;;  %v4698_v1 = vpack.c.bf16 %v8736_v16, %v8736_v16  ;;  %v6883_v16 = vld [vmem:[#allocation10 + $0x1a8] sm:$0xff]  }
 0x779   : > { %4660 = vmatpush1.bf16.msra.mxu1 %v6844_v59  ;;  %v8738_v10 = vpop.f32.mrb[102].mxu0  ;;  %v4699_v15 = vpack.c.bf16 %v4365_v13, %v4365_v13  ;;  %v6884_v13 = vld [vmem:[#allocation10 + $0x1b0] sm:$0xff]  }
 0x77a   : > { %4661 = vmatprep.subr.bf16.mxu1 %v9045_v4  ;;  %v8741_v29 = vpop.f32.mrb[103].mxu0  ;;  %v4851_v59 = vpack.c.bf16 %v8738_v10, %v8738_v10  ;;  %6000 = vmatpush3.bf16.msra.mxu0 %v6913_v60  ;;  %v6886_v10 = vld [vmem:[#allocation10 + $0x1c0] sm:$0xff]  }
 0x77b   : > { %v4852_v23 = vpack.c.bf16 %v8741_v29, %v8741_v29  ;;  %6001 = vmatprep.subr.bf16.mxu0 %v7185_v40  ;;  %v6887_v29 = vld [vmem:[#allocation10 + $0x1c8] sm:$0xff]  }
 0x77d   : > { %4662 = vmatpush1.bf16.msra.mxu1 %v6845_v44  ;;  %v6885_v44 = vld [vmem:[#allocation10 + $0x1b8] sm:$0xff]  }
 0x77e   : > { %4663 = vmatprep.subr.bf16.mxu1 %v9045_v4 }
 0x77f   : > { %v8761_v32 = vpop.f32.mrb[104].mxu0 }
 0x780   : > { %v8764_v55 = vpop.f32.mrb[105].mxu0 }
 0x781   : > { %4664 = vmatpush1.bf16.msra.mxu1 %v6846_v51  ;;  %v8766_v46 = vpop.f32.mrb[106].mxu0  ;;  %v5005_v39 = vpack.c.bf16 %v8764_v55, %v8764_v55  ;;  %v6888_v51 = vld [vmem:[#allocation10 + $0x1d0] sm:$0xff]   ;;  %v6906_v55 = vld [vmem:[#allocation10 + $0x260] sm:$0xff]  }
 0x782   : > { %4665 = vmatprep.subr.bf16.mxu1 %v9045_v4  ;;  %v8768_v6 = vpop.f32.mrb[107].mxu0 }
 0x785   : > { %4666 = vmatpush1.bf16.msra.mxu1 %v6847_v27  ;;  %v6889_v27 = vld [vmem:[#allocation10 + $0x1d8] sm:$0xff]  }
 0x786   : > { %4667 = vmatprep.subr.bf16.mxu1 %v9045_v4 }
 0x789   : > { %4668 = vmatpush1.bf16.msra.mxu1 %v6848_v50  ;;  %v6890_v50 = vld [vmem:[#allocation10 + $0x1e0] sm:$0xff]  }
 0x78a   : > { %4669 = vmatprep.subr.bf16.mxu1 %v9045_v4 }
 0x78d   : > { %4670 = vmatpush1.bf16.msra.mxu1 %v6849_v54  ;;  %v6891_v54 = vld [vmem:[#allocation10 + $0x1e8] sm:$0xff]  }
 0x78e   : > { %4671 = vmatprep.subr.bf16.mxu1 %v9045_v4 }
 0x791   : > { %4672 = vmatpush1.bf16.msra.mxu1 %v6850_v17  ;;  %v6892_v17 = vld [vmem:[#allocation10 + $0x1f0] sm:$0xff]  }
 0x792   : > { %4673 = vmatprep.subr.bf16.mxu1 %v9045_v4 }
 0x795   : > { %4674 = vmatpush1.bf16.msra.mxu1 %v6851_v26  ;;  %v6893_v26 = vld [vmem:[#allocation10 + $0x1f8] sm:$0xff]  }
 0x796   : > { %4675 = vmatprep.subr.bf16.mxu1 %v9045_v4 }
 0x799   : > { %4676 = vmatpush1.bf16.msra.mxu1 %v6852_v9  ;;  %v6894_v9 = vld [vmem:[#allocation10 + $0x200] sm:$0xff]  }
 0x79a   : > { %4677 = vmatprep.subr.bf16.mxu1 %v9045_v4 }
 0x79d   : > { %4678 = vmatpush1.bf16.msra.mxu1 %v6853_v8  ;;  %v5114_v8 = vand.u32 %v6894_v9, %v8729_v21 }
 0x79e   : > { %4679 = vmatprep.subr.bf16.mxu1 %v9045_v4 }
 0x7a1   : > { %4680 = vmatpush1.bf16.msra.mxu1 %v6854_v48  ;;  %v5004_v48 = vpack.c.bf16 %v8761_v32, %v8761_v32  ;;  %v6905_v32 = vld [vmem:[#allocation10 + $0x258] sm:$0xff]  }
 0x7a2   : > { %4681 = vmatprep.subr.bf16.mxu1 %v9045_v4 }
 0x7a5   : > { %4682 = vmatpush1.bf16.msra.mxu1 %v4655_v37  ;;  %v5158_v37 = vpack.c.bf16 %v8768_v6, %v8768_v6  ;;  %v6907_v6 = vld [vmem:[#allocation10 + $0x268] sm:$0xff]  }
 0x7a6   : > { %4810 = vmatprep.subr.bf16.mxu1 %v9045_v4 }
 0x7a8   : > { %4690 = vmatmul.mubr.bf16.vlgmr.msra.gmra.mrb[32].mxu1 %v4545_v41  ;;  %v6898_v41 = vld [vmem:[#allocation10 + $0x220] sm:$0xff]  }
 0x7a9   : > { %4811 = vmatpush1.bf16.msra.mxu1 %v6856_v18  ;;  %5907 = vmatprep.mubr.msk.bf16.mxu1 %vm4488_vm10, %v4699_v15  ;;  %v6896_v18 = vld [vmem:[#allocation10 + $0x210] sm:$0xff]   ;;  %v6897_v15 = vld [vmem:[#allocation10 + $0x218] sm:$0xff]  }
 0x7aa   : > { %4812 = vmatprep.subr.bf16.mxu1 %v9045_v4 }
 0x7ad   : > { %4813 = vmatpush1.bf16.msra.mxu1 %v6857_v20  ;;  %v6899_v20 = vld [vmem:[#allocation10 + $0x228] sm:$0xff]  }
 0x7ae   : > { %4814 = vmatprep.subr.bf16.mxu1 %v9045_v4 }
 0x7b1   : > { %4815 = vmatpush1.bf16.msra.mxu1 %v6858_v22  ;;  %v6900_v22 = vld [vmem:[#allocation10 + $0x230] sm:$0xff]  }
 0x7b2   : > { %4816 = vmatprep.subr.bf16.mxu1 %v9045_v4 }
 0x7b5   : > { %4817 = vmatpush1.bf16.msra.mxu1 %v6859_v61  ;;  %v6901_v61 = vld [vmem:[#allocation10 + $0x238] sm:$0xff]  }
 0x7b6   : > { %4818 = vmatprep.subr.bf16.mxu1 %v9045_v4 }
 0x7b9   : > { %4819 = vmatpush1.bf16.msra.mxu1 %v6860_v57  ;;  %v6902_v57 = vld [vmem:[#allocation10 + $0x240] sm:$0xff]  }
 0x7ba   : > { %4820 = vmatprep.subr.bf16.mxu1 %v9045_v4 }
 0x7bd   : > { %4821 = vmatpush1.bf16.msra.mxu1 %v6861_v38  ;;  %v6903_v38 = vld [vmem:[#allocation10 + $0x248] sm:$0xff]  }
 0x7be   : > { %4822 = vmatprep.subr.bf16.mxu1 %v9045_v4 }
 0x7c1   : > { %4823 = vmatpush1.bf16.msra.mxu1 %v6862_v45  ;;  %v6904_v45 = vld [vmem:[#allocation10 + $0x250] sm:$0xff]  }
 0x7c2   : > { %4824 = vmatprep.subr.bf16.mxu1 %v9045_v4 }
 0x7c5   : > { %4825 = vmatpush1.bf16.msra.mxu1 %v6863_v52  ;;  %v5267_v52 = vand.u32 %v6907_v6, %v8729_v21 }
 0x7c6   : > { %4826 = vmatprep.subr.bf16.mxu1 %v9045_v4 }
 0x7c9   : > { %4827 = vmatpush1.bf16.msra.mxu1 %v6864_v19  ;;  %v5157_v19 = vpack.c.bf16 %v8766_v46, %v8766_v46 }
 0x7ca   : > { %4828 = vmatprep.subr.bf16.mxu1 %v9045_v4 }
 0x7cd   : > { %4829 = vmatpush1.bf16.msra.mxu1 %v6865_v2  ;;  %v6914_v2 = vld [vmem:[%s9049_s8 + $0x30] sm:$0xff]  }
 0x7ce   : > { %4830 = vmatprep.subr.bf16.mxu1 %v9045_v4  ;;  %6002 = vmatpush3.bf16.msra.mxu0 %v6914_v2 }
 0x7cf   : > { %6003 = vmatprep.subr.bf16.mxu0 %v7185_v40 }
 0x7d1   : > { %4831 = vmatpush1.bf16.msra.mxu1 %v6866_v62  ;;  %v6915_v62 = vld [vmem:[%s9049_s8 + $0x38] ss:$0 sps:$4 sm:$0xff]  }
 0x7d2   : > { %4832 = vmatprep.subr.bf16.mxu1 %v9045_v4  ;;  %v5385_v21 = vsel %vm5383_vm11, %v6915_v62, 0 }
 0x7d3   : > { %6004 = vmatpush3.bf16.msra.mxu0 %v5385_v21 }
 0x7d4   : > { %6009 = vmatprep.subr.bf16.mxu0 %v7185_v40 }
 0x7d5   : > { %4833 = vmatpush1.bf16.msra.mxu1 %v6867_v5 }
 0x7d6   : > { %4834 = vmatprep.subr.bf16.mxu1 %v9045_v4 }
 0x7d9   : > { %4835 = vmatpush1.bf16.msra.mxu1 %v4808_v43 }
 0x7da   : > { %4963 = vmatprep.subr.bf16.mxu1 %v9045_v4 }
 0x7dc   : > { %4843 = vmatmul.mubr.bf16.vlgmr.msra.gmra.mrb[32].mxu1 %v4698_v1 }
 0x7dd   : > { %4964 = vmatpush1.bf16.msra.mxu1 %v6869_v14  ;;  %5921 = vmatprep.mubr.msk.bf16.mxu1 %vm4488_vm10, %v4852_v23  ;;  %v6916_v23 = vld [vmem:[#allocation11] sm:$0xff]  }
 0x7de   : > { %4965 = vmatprep.subr.bf16.mxu1 %v9045_v4 }
 0x7e1   : > { %4966 = vmatpush1.bf16.msra.mxu1 %v6870_v34 }
 0x7e2   : > { %4967 = vmatprep.subr.bf16.mxu1 %v9045_v4 }
 0x7e5   : > { %4968 = vmatpush1.bf16.msra.mxu1 %v6871_v25  ;;  %v6917_v25 = vld [vmem:[#allocation11 + $0x8] sm:$0xff]  }
 0x7e6   : > { %4969 = vmatprep.subr.bf16.mxu1 %v9045_v4 }
 0x7e9   : > { %4970 = vmatpush1.bf16.msra.mxu1 %v6872_v36  ;;  %v6918_v36 = vld [vmem:[#allocation11 + $0x10] sm:$0xff]  }
 0x7ea   : > { %4971 = vmatprep.subr.bf16.mxu1 %v9045_v4 }
 0x7ed   : > { %4972 = vmatpush1.bf16.msra.mxu1 %v6873_v58  ;;  %v6919_v58 = vld [vmem:[#allocation11 + $0x18] sm:$0xff]  }
 0x7ee   : > { %4973 = vmatprep.subr.bf16.mxu1 %v9045_v4 }
 0x7f1   : > { %4974 = vmatpush1.bf16.msra.mxu1 %v6874_v47  ;;  %v6920_v47 = vld [vmem:[#allocation11 + $0x20] sm:$0xff]  }
 0x7f2   : > { %4975 = vmatprep.subr.bf16.mxu1 %v9045_v4 }
 0x7f5   : > { %4976 = vmatpush1.bf16.msra.mxu1 %v6875_v11  ;;  %v6921_v11 = vld [vmem:[#allocation11 + $0x28] ss:$0 sps:$4 sm:$0x33]  }
 0x7f6   : > { %4977 = vmatprep.subr.bf16.mxu1 %v9045_v4 }
 0x7f9   : > { %4978 = vmatpush1.bf16.msra.mxu1 %v6876_v30  ;;  %v5485_v30 = vsel %vm2928_vm7, %v6921_v11, 0 }
 0x7fa   : > { %4979 = vmatprep.subr.bf16.mxu1 %v9045_v4 }
 0x7fd   : > { %4980 = vmatpush1.bf16.msra.mxu1 %v6877_v7 }
 0x7fe   : > { %4981 = vmatprep.subr.bf16.mxu1 %v9045_v4 }
 0x801   : > { %4982 = vmatpush1.bf16.msra.mxu1 %v6878_v28 }
 0x802   : > { %4983 = vmatprep.subr.bf16.mxu1 %v9045_v4 }
 0x805   : > { %4984 = vmatpush1.bf16.msra.mxu1 %v6879_v33 }
 0x806   : > { %4985 = vmatprep.subr.bf16.mxu1 %v9045_v4 }
 0x809   : > { %4986 = vmatpush1.bf16.msra.mxu1 %v6880_v24 }
 0x80a   : > { %4987 = vmatprep.subr.bf16.mxu1 %v9045_v4 }
 0x80d   : > { %4988 = vmatpush1.bf16.msra.mxu1 %v4961_v12 }
 0x80e   : > { %5116 = vmatprep.subr.bf16.mxu1 %v9045_v4 }
 0x810   : > { %4996 = vmatmul.mubr.bf16.vlgmr.msra.gmra.mrb[32].mxu1 %v4851_v59 }
 0x811   : > { %5117 = vmatpush1.bf16.msra.mxu1 %v6882_v42  ;;  %5935 = vmatprep.mubr.msk.bf16.mxu1 %vm4488_vm10, %v5005_v39 }
 0x812   : > { %5118 = vmatprep.subr.bf16.mxu1 %v9045_v4 }
 0x815   : > { %5119 = vmatpush1.bf16.msra.mxu1 %v6883_v16 }
 0x816   : > { %5120 = vmatprep.subr.bf16.mxu1 %v9045_v4 }
 0x819   : > { %5121 = vmatpush1.bf16.msra.mxu1 %v6884_v13 }
 0x81a   : > { %5122 = vmatprep.subr.bf16.mxu1 %v9045_v4 }
 0x81d   : > { %5123 = vmatpush1.bf16.msra.mxu1 %v6885_v44 }
 0x81e   : > { %5124 = vmatprep.subr.bf16.mxu1 %v9045_v4 }
 0x821   : > { %5125 = vmatpush1.bf16.msra.mxu1 %v6886_v10 }
 0x822   : > { %5126 = vmatprep.subr.bf16.mxu1 %v9045_v4 }
 0x825   : > { %5127 = vmatpush1.bf16.msra.mxu1 %v6887_v29 }
 0x826   : > { %5128 = vmatprep.subr.bf16.mxu1 %v9045_v4 }
 0x829   : > { %5129 = vmatpush1.bf16.msra.mxu1 %v6888_v51 }
 0x82a   : > { %5130 = vmatprep.subr.bf16.mxu1 %v9045_v4 }
 0x82d   : > { %5131 = vmatpush1.bf16.msra.mxu1 %v6889_v27 }
 0x82e   : > { %5132 = vmatprep.subr.bf16.mxu1 %v9045_v4 }
 0x831   : > { %5133 = vmatpush1.bf16.msra.mxu1 %v6890_v50 }
 0x832   : > { %5134 = vmatprep.subr.bf16.mxu1 %v9045_v4 }
 0x835   : > { %5135 = vmatpush1.bf16.msra.mxu1 %v6891_v54 }
 0x836   : > { %5136 = vmatprep.subr.bf16.mxu1 %v9045_v4 }
 0x839   : > { %5137 = vmatpush1.bf16.msra.mxu1 %v6892_v17 }
 0x83a   : > { %5138 = vmatprep.subr.bf16.mxu1 %v9045_v4 }
 0x83d   : > { %5139 = vmatpush1.bf16.msra.mxu1 %v6893_v26 }
 0x83e   : > { %5140 = vmatprep.subr.bf16.mxu1 %v9045_v4 }
 0x841   : > { %5141 = vmatpush1.bf16.msra.mxu1 %v5114_v8 }
 0x842   : > { %5269 = vmatprep.subr.bf16.mxu1 %v9045_v4 }
 0x844   : > { %5149 = vmatmul.mubr.bf16.vlgmr.msra.gmra.mrb[32].mxu1 %v5004_v48 }
 0x845   : > { %5270 = vmatpush1.bf16.msra.mxu1 %v6895_v0  ;;  %5949 = vmatprep.mubr.msk.bf16.mxu1 %vm4488_vm10, %v5158_v37 }
 0x846   : > { %5271 = vmatprep.subr.bf16.mxu1 %v9045_v4 }
 0x849   : > { %5272 = vmatpush1.bf16.msra.mxu1 %v6896_v18 }
 0x84a   : > { %5273 = vmatprep.subr.bf16.mxu1 %v9045_v4 }
 0x84d   : > { %5274 = vmatpush1.bf16.msra.mxu1 %v6897_v15 }
 0x84e   : > { %5275 = vmatprep.subr.bf16.mxu1 %v9045_v4 }
 0x851   : > { %5276 = vmatpush1.bf16.msra.mxu1 %v6898_v41 }
 0x852   : > { %5277 = vmatprep.subr.bf16.mxu1 %v9045_v4 }
 0x855   : > { %5278 = vmatpush1.bf16.msra.mxu1 %v6899_v20 }
 0x856   : > { %5279 = vmatprep.subr.bf16.mxu1 %v9045_v4 }
 0x859   : > { %5280 = vmatpush1.bf16.msra.mxu1 %v6900_v22 }
 0x85a   : > { %5281 = vmatprep.subr.bf16.mxu1 %v9045_v4 }
 0x85d   : > { %5282 = vmatpush1.bf16.msra.mxu1 %v6901_v61 }
 0x85e   : > { %5283 = vmatprep.subr.bf16.mxu1 %v9045_v4 }
 0x861   : > { %5284 = vmatpush1.bf16.msra.mxu1 %v6902_v57 }
 0x862   : > { %5285 = vmatprep.subr.bf16.mxu1 %v9045_v4 }
 0x865   : > { %5286 = vmatpush1.bf16.msra.mxu1 %v6903_v38 }
 0x866   : > { %5287 = vmatprep.subr.bf16.mxu1 %v9045_v4 }
 0x869   : > { %5288 = vmatpush1.bf16.msra.mxu1 %v6904_v45 }
 0x86a   : > { %5289 = vmatprep.subr.bf16.mxu1 %v9045_v4 }
 0x86d   : > { %5290 = vmatpush1.bf16.msra.mxu1 %v6905_v32 }
 0x86e   : > { %5291 = vmatprep.subr.bf16.mxu1 %v9045_v4 }
 0x871   : > { %5292 = vmatpush1.bf16.msra.mxu1 %v6906_v55 }
 0x872   : > { %5293 = vmatprep.subr.bf16.mxu1 %v9045_v4  ;;  %v5879_v4 = vld [vmem:[%s9050_s18] ss:$0 sm:$0xff] }
 0x875   : > { %5294 = vmatpush1.bf16.msra.mxu1 %v5267_v52 }
 0x878   : > { %5302 = vmatmul.mubr.bf16.vlgmr.msra.gmra.mrb[32].mxu1 %v5157_v19 }
 0x94b   : > { %v5303_v46 = vpop.f32.mrb[32].mxu1 }
 0x94c   : > { %v6121_v5 = vadd.f32 %v5879_v4, %v5303_v46  ;;  %v5305_v49 = vpop.f32.mrb[33].mxu1 }
 0x94d   : > { %v5306_v43 = vpop.f32.mrb[34].mxu1 }
 0x94e   : > { %v5310_v1 = vmax.f32 %v6121_v5, 0.0  ;;  %v5307_v14 = vpop.f32.mrb[35].mxu1 }
 0x950   : > { %v5311_v34 = vpack.c.bf16 %v5310_v1, %v5310_v1 }
 0x952   : > { %6006 = vmatmul.mubr.msk.bf16.vlgmr.msra.gmra.mrb[108].mxu0 %vm5379_vm13, %v5311_v34 }
 0x953   : > { %6010 = vmatpush3.bf16.msra.mxu0 %v6916_v23  ;;  %6021 = vmatprep.mubr.msk.bf16.mxu0 %vm7186_vm12, %v7185_v40 }
 0x954   : > { %6011 = vmatprep.subr.bf16.mxu0 %v7185_v40 }
 0x957   : > { %6012 = vmatpush3.bf16.msra.mxu0 %v6917_v25 }
 0x958   : > { %6013 = vmatprep.subr.bf16.mxu0 %v7185_v40 }
 0x95b   : > { %6014 = vmatpush3.bf16.msra.mxu0 %v6918_v36 }
 0x95c   : > { %6015 = vmatprep.subr.bf16.mxu0 %v7185_v40 }
 0x95f   : > { %6016 = vmatpush3.bf16.msra.mxu0 %v6919_v58 }
 0x960   : > { %6017 = vmatprep.subr.bf16.mxu0 %v7185_v40 }
 0x963   : > { %6018 = vmatpush3.bf16.msra.mxu0 %v6920_v47 }
 0x964   : > { %6019 = vmatprep.subr.bf16.mxu0 %v7185_v40  ;;  %v5960_v40 = vld [vmem:[%s9052_s15] ss:$0 sm:$0xff] }
 0x967   : > { %6020 = vmatpush3.bf16.msra.mxu0 %v5485_v30 }
 0xa25   : > { %v5421_v7 = vpop.f32.mrb[108].mxu0 }
 0xa26   : > { %v5422_v56 = vadd.f32 %v5950_v35, %v5421_v7  ;;  %v6007_v28 = vpop.f32.mrb[109].mxu0 }
 0xa27   : > { %v5424_v31 = vpop.f32.mrb[110].mxu0 }
 0xa28   : > { %v5427_v33 = vmax.f32 %v5422_v56, 0.0  ;;  %v6008_v63 = vpop.f32.mrb[111].mxu0 }
 0xa2a   : > { %v5428_v24 = vpack.c.bf16 %v5427_v33, %v5427_v33 }
 0xa2c   : > { %6022 = vmatmul.mubr.msk.bf16.vlgmr.msra.gmra.mrb[112].mxu0 %vm5480_vm14, %v5428_v24 }
 0xaff   : > { %v5521_v53 = vpop.f32.mrb[112].mxu0 }
 0xb00   : > { %v5522_v3 = vadd.f32 %v5960_v40, %v5521_v53  ;;  %v6023_v12 = vpop.f32.mrb[113].mxu0 }
 0xb01   : > { %v5524_v60 = vpop.f32.mrb[114].mxu0 }
 0xb02   : > { %5527 = vst [vmem:[%s531_s29] sm:$0xff] %v5522_v3  ;;  %v6024_v42 = vpop.f32.mrb[115].mxu0 }
 0xb03   : > { %7105 = shalt.err (!%p7102_p8)
}
 0xb04   : > { %s7106_s20 = scalar_lea.hbm %s8891_s10, 128  ;;  %s7110_s29 = scalar_lea.hbm %s9053_s2, 256 }
 0xb05   : > { %p7107_p6 = scmp.ne.s32.totalorder %s8891_s10, %s7106_s20  ;;  %p7111_p3 = scmp.lt.u32.totalorder %s8891_s10, %s9053_s2 }
 0xb06   : > { %p7112_p0 = scmp.lt.u32.totalorder %s7110_s29, %s7106_s20  ;;  %p7114_p2 = scmp.lt.u32.totalorder %s7106_s20, %s8891_s10 }
 0xb07   : > { %p7108_p9 = pnand %p7107_p6, %p9054_p7 }
 0xb08   : > { %p7113_p5 = por %p7112_p0, %p7111_p3 }
 0xb09   : > { %p7109_p4 = pneg %p7108_p9 }
 0xb0a   : > { %p7115_p10 = por %p7114_p2, %p7113_p5 }
 0xb0c   : > { %p7116_p1 = pnand %p7115_p10, %p7109_p4 }
 0xb0e   : > { %7119 = shalt.err (!%p7116_p1)
}
 0xb0f   : > { %6356 = dma.vmem_to_hbm [thread:$0]  (%p9054_p7), %s8893_s13, 128, %s8891_s10, %s5529_s12  }
 0xb10 PF: > { %s5554_s14 = sand.u32 1, %s7158_s25   ;;  %p9055_p11 = scmp.ne.s32.totalorder %s8998_s22, 0 }
 0xb11   : > { %p9056_p12 = scmp.ge.s32.totalorder %s7170_s28, 2  ;;  %s5555_s23 = scalar_lea.sflag [#allocation4], %s5554_s14 }
 0xb13   : > { %p6379_p13 = pnand %p9056_p12, %p9055_p11 }
 0xb15   : > { %7153 = dma.done.wait (!%p6379_p13), %s5555_s23, 128  }
 0xb16   : > { %7155 = vsyncadd (!%p6379_p13), %s5555_s23, 4294967168  ;;  %p29_p8 = scmp.ge.s32.totalorder %s7427_s16, 4   ;;  %s9057_s25 = smov %s7162_s26 }
 0xb17   : > { %s9058_s26 = smov %s7166_s27  ;;  %s9059_s27 = smov %s7439_s21 }
 0xb18   : > { %s9060_s28 = smov %s7427_s16  ;;  %31 = sbr.rel (!%p29_p8) target bundleno = 15 (0xf), region = 146 }
 0xb1f   :  { %5560 = vsyncpa [#allocation3], 1 }
 0xb20   :  { %5562 = vsyncpa [#allocation3 + $0x1], 1 }
 0xb21   :  { %5563 = vsyncpa [#allocation6], 1 }
 0xb22   :  { %5564 = vsyncpa [#allocation9], 1 }
 0xb23   :  { %5565 = vsyncpa [#allocation12], 1 }
 0xb24   :  { %5566 = vsyncpa [#allocation4], 1 }
 0xb25   :  { %5568 = vsyncpa [#allocation4 + $0x1], 1 }

</bundles_post_ra>
